<compile_context>
chip_gen: v7x
topology: tpu7x:2x2x1
jax: 0.10.0
libtpu: 0.0.40
codegen_flags: <defaults>
</compile_context>

<pallas_src>
import functools

import jax
import jax.numpy as jnp
from jax import lax
from jax.experimental import pallas as pl
from jax.experimental.pallas import tpu as pltpu


def _round_up(x, m):
    return (x + m - 1) // m * m


B_BLK = 8          # batch rows per grid step (= sublane count)
LANE = 128         # lane width
T_CHUNK_MAX = 64   # max time steps per hoisted input-GEMM chunk
UNROLL = 8         # bounded unroll of the serial recurrence


# ----------------------------------------------------------------------------
# Fused multi-layer LSTM kernel (one grid step = one batch block of 8 rows).
# ----------------------------------------------------------------------------
def make_encoder_lstm_kernel(num_layers, T, Hp, t_chunk):
    G = 4 * Hp

    def kernel(*refs):
        # refs layout:
        #   refs[0]                                x        (T, 8, E_pad)  bf16
        #   refs[1+3l], refs[2+3l], refs[3+3l]     W_ih^T, W_hh^T (bf16), bias (fp32)
        #   refs[1+3L], refs[2+3L]                 h_out, c_out  (L, 8, Hp) fp32
        #   refs[3+3L]                             seq_scr  (T, 8, Hp)      bf16
        #   refs[4+3L]                             xg_scr   (t_chunk, 8, G) fp32
        x_ref = refs[0]
        h_out = refs[1 + 3 * num_layers]
        c_out = refs[2 + 3 * num_layers]
        seq_scr = refs[3 + 3 * num_layers]
        xg_scr = refs[4 + 3 * num_layers]

        for l in range(num_layers):
            wih_ref = refs[1 + 3 * l]            # (in_pad, 4Hp) bf16, gates i,f,o,g
            whh_ref = refs[2 + 3 * l]            # (Hp, 4Hp)     bf16
            b_ref = refs[3 + 3 * l]              # (1, 4Hp)      fp32
            in_ref = x_ref if l == 0 else seq_scr
            in_dim = in_ref.shape[2]
            last_layer = (l == num_layers - 1)

            h = jnp.zeros((B_BLK, Hp), jnp.float32)
            c = jnp.zeros((B_BLK, Hp), jnp.float32)

            for t0 in range(0, T, t_chunk):      # static chunk loop
                tc = min(t_chunk, T - t0)

                # Hoisted input GEMM for this time chunk: one (tc*8, in) @ (in, 4Hp)
                # bf16 matmul with fp32 accumulation + fused bias.  Collapsing (t, b)
                # is a layout no-op because the batch block is exactly 8 sublanes.
                chunk = in_ref[t0:t0 + tc]                       # (tc, 8, in) bf16
                xg = jnp.dot(chunk.reshape(tc * B_BLK, in_dim), wih_ref[...],
                             preferred_element_type=jnp.float32)
                xg = (xg + b_ref[...]).reshape(tc, B_BLK, G)
                xg_scr[0:tc] = xg

                def step(i, carry, _t0=t0, _whh=whh_ref, _last=last_layer):
                    h, c = carry
                    # Recurrent part only: (8, Hp) @ (Hp, 4Hp), bf16 -> fp32 on MXU.
                    gates = jnp.dot(h.astype(jnp.bfloat16), _whh[...],
                                    preferred_element_type=jnp.float32) + xg_scr[i]
                    # Gate order (i, f, o, g): one contiguous sigmoid slab + one tanh.
                    # TODO(synk): on v6e/v7x the elementwise gate math could run in
                    # bf16 (keeping c fp32) for ~2x VPU/EUP work; kept fp32 for v5e.
                    sig = jax.nn.sigmoid(gates[:, :3 * Hp])
                    i_g = sig[:, 0 * Hp:1 * Hp]
                    f_g = sig[:, 1 * Hp:2 * Hp]
                    o_g = sig[:, 2 * Hp:3 * Hp]
                    g_g = jnp.tanh(gates[:, 3 * Hp:])
                    c_new = f_g * c + i_g * g_g
                    h_new = o_g * jnp.tanh(c_new)
                    if not _last:
                        # Inter-layer activation stays in VMEM, in bf16.
                        seq_scr[_t0 + i] = h_new.astype(jnp.bfloat16)
                    return (h_new, c_new)

                h, c = lax.fori_loop(0, tc, step, (h, c), unroll=min(UNROLL, tc))

            h_out[l] = h                         # single trailing store per layer
            c_out[l] = c

    return kernel


def encoder_lstm_pallas(x_pad, layer_weights, T, B_pad, E_pad, Hp):
    """x_pad: (T, B_pad, E_pad) bf16; layer_weights: [(w_ih_t, w_hh_t, bias), ...]."""
    L = len(layer_weights)
    n_b = B_pad // B_BLK
    t_chunk = min(T, T_CHUNK_MAX)
    G = 4 * Hp

    # TODO(synk): at realistic H (>=1024) the per-layer weights should be streamed
    # (layer grid axis or manual double-buffered DMA) instead of held resident.
    flat = []
    in_specs = [pl.BlockSpec((T, B_BLK, E_pad), lambda b: (0, b, 0))]
    for (w_ih_t, w_hh_t, bias) in layer_weights:
        flat.extend([w_ih_t, w_hh_t, bias])
        in_specs.append(pl.BlockSpec(w_ih_t.shape, lambda b: (0, 0)))
        in_specs.append(pl.BlockSpec(w_hh_t.shape, lambda b: (0, 0)))
        in_specs.append(pl.BlockSpec(bias.shape, lambda b: (0, 0)))

    out_specs = (pl.BlockSpec((L, B_BLK, Hp), lambda b: (0, b, 0)),
                 pl.BlockSpec((L, B_BLK, Hp), lambda b: (0, b, 0)))

    # Explicit VMEM budget: double-buffered inputs/outputs + resident scratch,
    # with headroom; clamped to stay under v7x's 64 MiB physical VMEM.
    w_bytes = sum(int(w.size) * w.dtype.itemsize
                  for (wi, wh, b) in layer_weights for w in (wi, wh, b))
    io_bytes = T * B_BLK * E_pad * 2 + 2 * (L * B_BLK * Hp * 4)
    scr_bytes = T * B_BLK * Hp * 2 + t_chunk * B_BLK * G * 4
    vmem_limit = int(max(16 << 20,
                         min(2 * (w_bytes + io_bytes) + scr_bytes + (4 << 20),
                             56 << 20)))

    kernel = make_encoder_lstm_kernel(L, T, Hp, t_chunk)

    return pl.pallas_call(
        kernel,
        out_shape=(
            jax.ShapeDtypeStruct((L, B_pad, Hp), jnp.float32),
            jax.ShapeDtypeStruct((L, B_pad, Hp), jnp.float32),
        ),
        grid_spec=pltpu.PrefetchScalarGridSpec(
            num_scalar_prefetch=0,
            grid=(n_b,),
            in_specs=in_specs,
            out_specs=out_specs,
            scratch_shapes=[
                pltpu.VMEM((T, B_BLK, Hp), jnp.bfloat16),       # inter-layer acts
                pltpu.VMEM((t_chunk, B_BLK, G), jnp.float32),   # xg chunk buffer
            ]),
        compiler_params=pltpu.CompilerParams(
            dimension_semantics=("parallel",),   # batch blocks -> 2 TCs on v7x
            vmem_limit_bytes=vmem_limit),
    )(x_pad, *flat)


# ----------------------------------------------------------------------------
# Wrapper-side preparation: embedding, padding, gate reorder, bf16 casts
# ----------------------------------------------------------------------------
def init_encoder_params(key, input_size, embedding_size, hidden_size, num_layers):
    keys = jax.random.split(key, 1 + 4 * num_layers)
    params = {}
    # nn.Embedding default init: N(0, 1)
    params["embedding"] = jax.random.normal(
        keys[0], (input_size, embedding_size), dtype=jnp.float32)

    bound = 1.0 / jnp.sqrt(hidden_size)
    layers = []
    for l in range(num_layers):
        in_dim = embedding_size if l == 0 else hidden_size
        k = keys[1 + 4 * l: 1 + 4 * (l + 1)]
        w_ih = jax.random.uniform(k[0], (4 * hidden_size, in_dim),
                                  minval=-bound, maxval=bound, dtype=jnp.float32)
        w_hh = jax.random.uniform(k[1], (4 * hidden_size, hidden_size),
                                  minval=-bound, maxval=bound, dtype=jnp.float32)
        b_ih = jax.random.uniform(k[2], (4 * hidden_size,),
                                  minval=-bound, maxval=bound, dtype=jnp.float32)
        b_hh = jax.random.uniform(k[3], (4 * hidden_size,),
                                  minval=-bound, maxval=bound, dtype=jnp.float32)
        layers.append({"w_ih": w_ih, "w_hh": w_hh, "b_ih": b_ih, "b_hh": b_hh})
    params["lstm"] = layers
    return params


def _pad_axis(x, axis, new_size):
    pad = new_size - x.shape[axis]
    if pad <= 0:
        return x
    widths = [(0, 0)] * x.ndim
    widths[axis] = (0, pad)
    return jnp.pad(x, widths)


def _prep_gates(arr, H, Hp):
    """Last axis: PyTorch gate order (i,f,g,o) over 4H  ->  (i,f,o,g) over 4*Hp,
    each gate section zero-padded from H to Hp lanes (zero bias in the padding keeps
    padded h/c lanes exactly 0 through the recurrence)."""
    i = arr[..., 0 * H:1 * H]
    f = arr[..., 1 * H:2 * H]
    g = arr[..., 2 * H:3 * H]
    o = arr[..., 3 * H:4 * H]
    return jnp.concatenate([_pad_axis(p, -1, Hp) for p in (i, f, o, g)], axis=-1)


def prepare_encoder_inputs(params, tokens):
    T, B = tokens.shape
    E = params["embedding"].shape[1]
    H = params["lstm"][0]["w_hh"].shape[1]
    L = len(params["lstm"])

    B_pad = _round_up(max(B, B_BLK), B_BLK)
    E_pad = _round_up(E, LANE)
    Hp = _round_up(H, LANE)

    # Embedding lookup (tiny gather; stays in the JAX wrapper).
    # TODO(synk): could be folded into the kernel via scalar-prefetched token ids +
    # Element-indexed BlockSpec to skip the HBM round trip of the embedded sequence.
    emb = jnp.take(params["embedding"], tokens, axis=0)              # (T, B, E)
    # TODO(synk): dropout is identity here (eval-mode semantics); training-mode
    # dropout would need a PRNG mask and is intentionally not implemented.
    x = _pad_axis(_pad_axis(emb, 1, B_pad), 2, E_pad).astype(jnp.bfloat16)

    prepped = []
    for l, layer in enumerate(params["lstm"]):
        in_pad = E_pad if l == 0 else Hp
        w_ih_t = _prep_gates(jnp.transpose(layer["w_ih"]), H, Hp)    # (in, 4Hp)
        w_ih_t = _pad_axis(w_ih_t, 0, in_pad).astype(jnp.bfloat16)
        w_hh_t = _prep_gates(jnp.transpose(layer["w_hh"]), H, Hp)    # (H, 4Hp)
        w_hh_t = _pad_axis(w_hh_t, 0, Hp).astype(jnp.bfloat16)
        bias = _prep_gates((layer["b_ih"] + layer["b_hh"]).reshape(1, -1), H, Hp)
        prepped.append((w_ih_t, w_hh_t, bias))                       # bias fp32

    dims = dict(T=T, B=B, E=E, H=H, L=L, B_pad=B_pad, E_pad=E_pad, Hp=Hp)
    return x, prepped, dims


def encoder_forward(params, tokens):
    """tokens: (T, B) int32  ->  (hidden, cell) each (num_layers, B, H) fp32."""
    x_pad, prepped, d = prepare_encoder_inputs(params, tokens)
    hidden_p, cell_p = encoder_lstm_pallas(
        x_pad, prepped, d["T"], d["B_pad"], d["E_pad"], d["Hp"])
    return hidden_p[:, :d["B"], :d["H"]], cell_p[:, :d["B"], :d["H"]]


# ----------------------------------------------------------------------------
# Pure-JAX references
# ----------------------------------------------------------------------------
def encoder_forward_matched_ref(params, tokens):
    """Mirrors the kernel's numerics (bf16 matmul operands, fp32 accumulation /
    gates / cell, bf16 inter-layer activations) -> tight correctness check."""
    x, prepped, d = prepare_encoder_inputs(params, tokens)
    T, B_pad, Hp = d["T"], d["B_pad"], d["Hp"]
    G = 4 * Hp
    hs, cs = [], []
    cur = x
    for (wih, whh, b) in prepped:
        in_dim = cur.shape[-1]
        xg = jnp.dot(cur.reshape(T * B_pad, in_dim), wih,
                     preferred_element_type=jnp.float32)
        xg = (xg + b).reshape(T, B_pad, G)

        def step(carry, xg_t, _whh=whh):
            h, c = carry
            gates = jnp.dot(h.astype(jnp.bfloat16), _whh,
                            preferred_element_type=jnp.float32) + xg_t
            sig = jax.nn.sigmoid(gates[:, :3 * Hp])
            i_g = sig[:, 0 * Hp:1 * Hp]
            f_g = sig[:, 1 * Hp:2 * Hp]
            o_g = sig[:, 2 * Hp:3 * Hp]
            g_g = jnp.tanh(gates[:, 3 * Hp:])
            c_new = f_g * c + i_g * g_g
            h_new = o_g * jnp.tanh(c_new)
            return (h_new, c_new), h_new.astype(jnp.bfloat16)

        init = (jnp.zeros((B_pad, Hp), jnp.float32),
                jnp.zeros((B_pad, Hp), jnp.float32))
        (h_T, c_T), outs = lax.scan(step, init, xg)
        cur = outs
        hs.append(h_T)
        cs.append(c_T)
    hidden = jnp.stack(hs, 0)[:, :d["B"], :d["H"]]
    cell = jnp.stack(cs, 0)[:, :d["B"], :d["H"]]
    return hidden, cell


def lstm_layer_ref(x_seq, w_ih, w_hh, b_ih, b_hh):
    """Original fp32 PyTorch semantics (gate order i, f, g, o)."""
    H = w_hh.shape[1]
    B = x_seq.shape[1]

    def step(carry, x_t):
        h, c = carry
        gates = x_t @ w_ih.T + h @ w_hh.T + b_ih + b_hh
        i = jax.nn.sigmoid(gates[:, 0 * H:1 * H])
        f = jax.nn.sigmoid(gates[:, 1 * H:2 * H])
        g = jnp.tanh(gates[:, 2 * H:3 * H])
        o = jax.nn.sigmoid(gates[:, 3 * H:4 * H])
        c_new = f * c + i * g
        h_new = o * jnp.tanh(c_new)
        return (h_new, c_new), h_new

    h0 = jnp.zeros((B, H), jnp.float32)
    c0 = jnp.zeros((B, H), jnp.float32)
    (h_T, c_T), outs = lax.scan(step, (h0, c0), x_seq)
    return outs, h_T, c_T


def encoder_forward_ref(params, tokens):
    x = jnp.take(params["embedding"], tokens, axis=0)
    hiddens, cells = [], []
    for layer in params["lstm"]:
        x, h_T, c_T = lstm_layer_ref(x, layer["w_ih"], layer["w_hh"],
                                     layer["b_ih"], layer["b_hh"])
        hiddens.append(h_T)
        cells.append(c_T)
    return jnp.stack(hiddens, 0), jnp.stack(cells, 0)


if __name__ == "__main__":
    # Small shapes consistent with the module's forward.
    input_size = 50        # vocabulary size
    embedding_size = 32
    hidden_size = 32
    num_layers = 2
    seq_len = 8
    batch = 2

    key = jax.random.PRNGKey(0)
    k_tok, k_params = jax.random.split(key)

    tokens = jax.random.randint(k_tok, (seq_len, batch), 0, input_size, dtype=jnp.int32)
    params = init_encoder_params(k_params, input_size, embedding_size,
                                 hidden_size, num_layers)

    hidden, cell = jax.jit(functools.partial(encoder_forward, params))(tokens)
    hidden = jax.block_until_ready(hidden)
    cell = jax.block_until_ready(cell)

    assert hidden.shape == (num_layers, batch, hidden_size)
    assert cell.shape == (num_layers, batch, hidden_size)

    # Tight check against a precision-matched JAX reference (same bf16/fp32 mix).
    h_m, c_m = encoder_forward_matched_ref(params, tokens)
    assert jnp.allclose(hidden, h_m, atol=2e-3, rtol=2e-3), \
        f"hidden mismatch vs matched ref: {jnp.max(jnp.abs(hidden - h_m))}"
    assert jnp.allclose(cell, c_m, atol=2e-3, rtol=2e-3), \
        f"cell mismatch vs matched ref: {jnp.max(jnp.abs(cell - c_m))}"

    # Loose drift check against the full-fp32 PyTorch-semantics reference
    # (bf16 matmul operands introduce ~1e-2-level drift over the recurrence).
    h_r, c_r = encoder_forward_ref(params, tokens)
    assert jnp.allclose(hidden, h_r, atol=1e-1, rtol=1e-1)
    assert jnp.allclose(cell, c_r, atol=1e-1, rtol=1e-1)

    print("KERNEL_OK")
</pallas_src>

<mosaic_0001>
module attributes {stable_mosaic.version = 11 : i64} {
  func.func @kernel(%arg0: i32, %arg1: memref<8x8x128xbf16, #tpu.memory_space<vmem>>, %arg2: memref<128x512xbf16, #tpu.memory_space<vmem>>, %arg3: memref<128x512xbf16, #tpu.memory_space<vmem>>, %arg4: memref<1x512xf32, #tpu.memory_space<vmem>>, %arg5: memref<128x512xbf16, #tpu.memory_space<vmem>>, %arg6: memref<128x512xbf16, #tpu.memory_space<vmem>>, %arg7: memref<1x512xf32, #tpu.memory_space<vmem>>, %arg8: memref<2x8x128xf32, #tpu.memory_space<vmem>>, %arg9: memref<2x8x128xf32, #tpu.memory_space<vmem>>, %arg10: memref<8x8x128xbf16, #tpu.memory_space<vmem>>, %arg11: memref<8x8x512xf32, #tpu.memory_space<vmem>>) attributes {dimension_semantics = [#tpu.dimension_semantics<parallel>], iteration_bounds = array<i64: 1>, scalar_prefetch = 0 : i64, scratch_operands = 2 : i64, tpu.core_type = #tpu.core_type<tc>, window_params = [{transform_indices = @transform_0, window_bounds = array<i64: 8, 8, 128>}, {pipeline_mode = #tpu.pipeline_mode<synchronous>, transform_indices = @transform_1, window_bounds = array<i64: 128, 512>}, {pipeline_mode = #tpu.pipeline_mode<synchronous>, transform_indices = @transform_2, window_bounds = array<i64: 128, 512>}, {pipeline_mode = #tpu.pipeline_mode<synchronous>, transform_indices = @transform_3, window_bounds = array<i64: 1, 512>}, {pipeline_mode = #tpu.pipeline_mode<synchronous>, transform_indices = @transform_4, window_bounds = array<i64: 128, 512>}, {pipeline_mode = #tpu.pipeline_mode<synchronous>, transform_indices = @transform_5, window_bounds = array<i64: 128, 512>}, {pipeline_mode = #tpu.pipeline_mode<synchronous>, transform_indices = @transform_6, window_bounds = array<i64: 1, 512>}, {transform_indices = @transform_7, window_bounds = array<i64: 2, 8, 128>}, {transform_indices = @transform_8, window_bounds = array<i64: 2, 8, 128>}]} {
    %cst = arith.constant 0.000000e+00 : f32
    %0 = vector.broadcast %cst : f32 to vector<8x128xf32>
    %cst_0 = arith.constant 0.000000e+00 : f32
    %1 = vector.broadcast %cst_0 : f32 to vector<8x128xf32>
    %c0 = arith.constant 0 : index
    %c0_1 = arith.constant 0 : index
    %c0_2 = arith.constant 0 : index
    %2 = vector.load %arg1[%c0, %c0_1, %c0_2] : memref<8x8x128xbf16, #tpu.memory_space<vmem>>, vector<8x8x128xbf16>
    %3 = vector.shape_cast %2 : vector<8x8x128xbf16> to vector<64x128xbf16>
    %c0_3 = arith.constant 0 : index
    %c0_4 = arith.constant 0 : index
    %4 = vector.load %arg2[%c0_3, %c0_4] : memref<128x512xbf16, #tpu.memory_space<vmem>>, vector<128x512xbf16>
    %cst_5 = arith.constant dense<0.000000e+00> : vector<64x512xf32>
    %5 = tpu.matmul %3, %4, %cst_5 {dimension_numbers = #tpu.dot_dimension_numbers<[1], [0], [0], [1], [0, 0, 1, 1], [], []>} : vector<64x128xbf16>, vector<128x512xbf16>, vector<64x512xf32> -> vector<64x512xf32>
    %c0_6 = arith.constant 0 : index
    %c0_7 = arith.constant 0 : index
    %6 = vector.load %arg4[%c0_6, %c0_7] : memref<1x512xf32, #tpu.memory_space<vmem>>, vector<1x512xf32>
    %7 = vector.broadcast %6 : vector<1x512xf32> to vector<64x512xf32>
    %8 = arith.addf %5, %7 : vector<64x512xf32>
    %9 = vector.shape_cast %8 : vector<64x512xf32> to vector<8x8x512xf32>
    %c0_8 = arith.constant 0 : index
    %c0_9 = arith.constant 0 : index
    %c0_10 = arith.constant 0 : index
    %10 = vector.load %arg11[%c0_8, %c0_9, %c0_10] : memref<8x8x512xf32, #tpu.memory_space<vmem>>, vector<8x8x512xf32>
    tpu.vector_store %arg11[%c0_8, %c0_9, %c0_10], %9 {strides = array<i32>} : memref<8x8x512xf32, #tpu.memory_space<vmem>>, vector<8x8x512xf32>,
    %c0_i32 = arith.constant 0 : i32
    %11 = arith.truncf %0 : vector<8x128xf32> to vector<8x128xbf16>
    %c0_11 = arith.constant 0 : index
    %c0_12 = arith.constant 0 : index
    %12 = vector.load %arg3[%c0_11, %c0_12] : memref<128x512xbf16, #tpu.memory_space<vmem>>, vector<128x512xbf16>
    %cst_13 = arith.constant dense<0.000000e+00> : vector<8x512xf32>
    %13 = tpu.matmul %11, %12, %cst_13 {dimension_numbers = #tpu.dot_dimension_numbers<[1], [0], [0], [1], [0, 0, 1, 1], [], []>} : vector<8x128xbf16>, vector<128x512xbf16>, vector<8x512xf32> -> vector<8x512xf32>
    %14 = arith.index_cast %c0_i32 : i32 to index
    %c0_14 = arith.constant 0 : index
    %c0_15 = arith.constant 0 : index
    %15 = vector.load %arg11[%14, %c0_14, %c0_15] : memref<8x8x512xf32, #tpu.memory_space<vmem>>, vector<1x8x512xf32>
    %16 = vector.shape_cast %15 : vector<1x8x512xf32> to vector<8x512xf32>
    %17 = arith.addf %13, %16 : vector<8x512xf32>
    %18 = vector.extract_strided_slice %17 {offsets = [0, 0], sizes = [8, 384], strides = [1, 1]} : vector<8x512xf32> to vector<8x384xf32>
    %19 = arith.negf %18 : vector<8x384xf32>
    %20 = math.exp %19 : vector<8x384xf32>
    %cst_16 = arith.constant 1.000000e+00 : f32
    %21 = vector.broadcast %cst_16 : f32 to vector<8x384xf32>
    %22 = arith.addf %21, %20 : vector<8x384xf32>
    %23 = arith.divf %21, %22 : vector<8x384xf32>
    %24 = vector.extract_strided_slice %23 {offsets = [0, 0], sizes = [8, 128], strides = [1, 1]} : vector<8x384xf32> to vector<8x128xf32>
    %25 = vector.extract_strided_slice %23 {offsets = [0, 128], sizes = [8, 128], strides = [1, 1]} : vector<8x384xf32> to vector<8x128xf32>
    %26 = vector.extract_strided_slice %23 {offsets = [0, 256], sizes = [8, 128], strides = [1, 1]} : vector<8x384xf32> to vector<8x128xf32>
    %27 = vector.extract_strided_slice %17 {offsets = [0, 384], sizes = [8, 128], strides = [1, 1]} : vector<8x512xf32> to vector<8x128xf32>
    %28 = math.tanh %27 : vector<8x128xf32>
    %29 = arith.mulf %25, %1 : vector<8x128xf32>
    %30 = arith.mulf %24, %28 : vector<8x128xf32>
    %31 = arith.addf %29, %30 : vector<8x128xf32>
    %32 = math.tanh %31 : vector<8x128xf32>
    %33 = arith.mulf %26, %32 : vector<8x128xf32>
    %34 = arith.truncf %33 : vector<8x128xf32> to vector<8x128xbf16>
    %c0_i32_17 = arith.constant 0 : i32
    %35 = arith.addi %c0_i32_17, %c0_i32 : i32
    %36 = arith.index_cast %35 : i32 to index
    %c0_18 = arith.constant 0 : index
    %c0_19 = arith.constant 0 : index
    %37 = vector.load %arg10[%36, %c0_18, %c0_19] : memref<8x8x128xbf16, #tpu.memory_space<vmem>>, vector<1x8x128xbf16>
    %38 = vector.shape_cast %37 : vector<1x8x128xbf16> to vector<8x128xbf16>
    %39 = vector.shape_cast %34 : vector<8x128xbf16> to vector<1x8x128xbf16>
    tpu.vector_store %arg10[%36, %c0_18, %c0_19], %39 {strides = array<i32>} : memref<8x8x128xbf16, #tpu.memory_space<vmem>>, vector<1x8x128xbf16>,
    %c1_i32 = arith.constant 1 : i32
    %40 = arith.truncf %33 : vector<8x128xf32> to vector<8x128xbf16>
    %c0_20 = arith.constant 0 : index
    %c0_21 = arith.constant 0 : index
    %41 = vector.load %arg3[%c0_20, %c0_21] : memref<128x512xbf16, #tpu.memory_space<vmem>>, vector<128x512xbf16>
    %cst_22 = arith.constant dense<0.000000e+00> : vector<8x512xf32>
    %42 = tpu.matmul %40, %41, %cst_22 {dimension_numbers = #tpu.dot_dimension_numbers<[1], [0], [0], [1], [0, 0, 1, 1], [], []>} : vector<8x128xbf16>, vector<128x512xbf16>, vector<8x512xf32> -> vector<8x512xf32>
    %43 = arith.index_cast %c1_i32 : i32 to index
    %c0_23 = arith.constant 0 : index
    %c0_24 = arith.constant 0 : index
    %44 = vector.load %arg11[%43, %c0_23, %c0_24] : memref<8x8x512xf32, #tpu.memory_space<vmem>>, vector<1x8x512xf32>
    %45 = vector.shape_cast %44 : vector<1x8x512xf32> to vector<8x512xf32>
    %46 = arith.addf %42, %45 : vector<8x512xf32>
    %47 = vector.extract_strided_slice %46 {offsets = [0, 0], sizes = [8, 384], strides = [1, 1]} : vector<8x512xf32> to vector<8x384xf32>
    %48 = arith.negf %47 : vector<8x384xf32>
    %49 = math.exp %48 : vector<8x384xf32>
    %cst_25 = arith.constant 1.000000e+00 : f32
    %50 = vector.broadcast %cst_25 : f32 to vector<8x384xf32>
    %51 = arith.addf %50, %49 : vector<8x384xf32>
    %52 = arith.divf %50, %51 : vector<8x384xf32>
    %53 = vector.extract_strided_slice %52 {offsets = [0, 0], sizes = [8, 128], strides = [1, 1]} : vector<8x384xf32> to vector<8x128xf32>
    %54 = vector.extract_strided_slice %52 {offsets = [0, 128], sizes = [8, 128], strides = [1, 1]} : vector<8x384xf32> to vector<8x128xf32>
    %55 = vector.extract_strided_slice %52 {offsets = [0, 256], sizes = [8, 128], strides = [1, 1]} : vector<8x384xf32> to vector<8x128xf32>
    %56 = vector.extract_strided_slice %46 {offsets = [0, 384], sizes = [8, 128], strides = [1, 1]} : vector<8x512xf32> to vector<8x128xf32>
    %57 = math.tanh %56 : vector<8x128xf32>
    %58 = arith.mulf %54, %31 : vector<8x128xf32>
    %59 = arith.mulf %53, %57 : vector<8x128xf32>
    %60 = arith.addf %58, %59 : vector<8x128xf32>
    %61 = math.tanh %60 : vector<8x128xf32>
    %62 = arith.mulf %55, %61 : vector<8x128xf32>
    %63 = arith.truncf %62 : vector<8x128xf32> to vector<8x128xbf16>
    %c0_i32_26 = arith.constant 0 : i32
    %64 = arith.addi %c0_i32_26, %c1_i32 : i32
    %65 = arith.index_cast %64 : i32 to index
    %c0_27 = arith.constant 0 : index
    %c0_28 = arith.constant 0 : index
    %66 = vector.load %arg10[%65, %c0_27, %c0_28] : memref<8x8x128xbf16, #tpu.memory_space<vmem>>, vector<1x8x128xbf16>
    %67 = vector.shape_cast %66 : vector<1x8x128xbf16> to vector<8x128xbf16>
    %68 = vector.shape_cast %63 : vector<8x128xbf16> to vector<1x8x128xbf16>
    tpu.vector_store %arg10[%65, %c0_27, %c0_28], %68 {strides = array<i32>} : memref<8x8x128xbf16, #tpu.memory_space<vmem>>, vector<1x8x128xbf16>,
    %c2_i32 = arith.constant 2 : i32
    %69 = arith.truncf %62 : vector<8x128xf32> to vector<8x128xbf16>
    %c0_29 = arith.constant 0 : index
    %c0_30 = arith.constant 0 : index
    %70 = vector.load %arg3[%c0_29, %c0_30] : memref<128x512xbf16, #tpu.memory_space<vmem>>, vector<128x512xbf16>
    %cst_31 = arith.constant dense<0.000000e+00> : vector<8x512xf32>
    %71 = tpu.matmul %69, %70, %cst_31 {dimension_numbers = #tpu.dot_dimension_numbers<[1], [0], [0], [1], [0, 0, 1, 1], [], []>} : vector<8x128xbf16>, vector<128x512xbf16>, vector<8x512xf32> -> vector<8x512xf32>
    %72 = arith.index_cast %c2_i32 : i32 to index
    %c0_32 = arith.constant 0 : index
    %c0_33 = arith.constant 0 : index
    %73 = vector.load %arg11[%72, %c0_32, %c0_33] : memref<8x8x512xf32, #tpu.memory_space<vmem>>, vector<1x8x512xf32>
    %74 = vector.shape_cast %73 : vector<1x8x512xf32> to vector<8x512xf32>
    %75 = arith.addf %71, %74 : vector<8x512xf32>
    %76 = vector.extract_strided_slice %75 {offsets = [0, 0], sizes = [8, 384], strides = [1, 1]} : vector<8x512xf32> to vector<8x384xf32>
    %77 = arith.negf %76 : vector<8x384xf32>
    %78 = math.exp %77 : vector<8x384xf32>
    %cst_34 = arith.constant 1.000000e+00 : f32
    %79 = vector.broadcast %cst_34 : f32 to vector<8x384xf32>
    %80 = arith.addf %79, %78 : vector<8x384xf32>
    %81 = arith.divf %79, %80 : vector<8x384xf32>
    %82 = vector.extract_strided_slice %81 {offsets = [0, 0], sizes = [8, 128], strides = [1, 1]} : vector<8x384xf32> to vector<8x128xf32>
    %83 = vector.extract_strided_slice %81 {offsets = [0, 128], sizes = [8, 128], strides = [1, 1]} : vector<8x384xf32> to vector<8x128xf32>
    %84 = vector.extract_strided_slice %81 {offsets = [0, 256], sizes = [8, 128], strides = [1, 1]} : vector<8x384xf32> to vector<8x128xf32>
    %85 = vector.extract_strided_slice %75 {offsets = [0, 384], sizes = [8, 128], strides = [1, 1]} : vector<8x512xf32> to vector<8x128xf32>
    %86 = math.tanh %85 : vector<8x128xf32>
    %87 = arith.mulf %83, %60 : vector<8x128xf32>
    %88 = arith.mulf %82, %86 : vector<8x128xf32>
    %89 = arith.addf %87, %88 : vector<8x128xf32>
    %90 = math.tanh %89 : vector<8x128xf32>
    %91 = arith.mulf %84, %90 : vector<8x128xf32>
    %92 = arith.truncf %91 : vector<8x128xf32> to vector<8x128xbf16>
    %c0_i32_35 = arith.constant 0 : i32
    %93 = arith.addi %c0_i32_35, %c2_i32 : i32
    %94 = arith.index_cast %93 : i32 to index
    %c0_36 = arith.constant 0 : index
    %c0_37 = arith.constant 0 : index
    %95 = vector.load %arg10[%94, %c0_36, %c0_37] : memref<8x8x128xbf16, #tpu.memory_space<vmem>>, vector<1x8x128xbf16>
    %96 = vector.shape_cast %95 : vector<1x8x128xbf16> to vector<8x128xbf16>
    %97 = vector.shape_cast %92 : vector<8x128xbf16> to vector<1x8x128xbf16>
    tpu.vector_store %arg10[%94, %c0_36, %c0_37], %97 {strides = array<i32>} : memref<8x8x128xbf16, #tpu.memory_space<vmem>>, vector<1x8x128xbf16>,
    %c3_i32 = arith.constant 3 : i32
    %98 = arith.truncf %91 : vector<8x128xf32> to vector<8x128xbf16>
    %c0_38 = arith.constant 0 : index
    %c0_39 = arith.constant 0 : index
    %99 = vector.load %arg3[%c0_38, %c0_39] : memref<128x512xbf16, #tpu.memory_space<vmem>>, vector<128x512xbf16>
    %cst_40 = arith.constant dense<0.000000e+00> : vector<8x512xf32>
    %100 = tpu.matmul %98, %99, %cst_40 {dimension_numbers = #tpu.dot_dimension_numbers<[1], [0], [0], [1], [0, 0, 1, 1], [], []>} : vector<8x128xbf16>, vector<128x512xbf16>, vector<8x512xf32> -> vector<8x512xf32>
    %101 = arith.index_cast %c3_i32 : i32 to index
    %c0_41 = arith.constant 0 : index
    %c0_42 = arith.constant 0 : index
    %102 = vector.load %arg11[%101, %c0_41, %c0_42] : memref<8x8x512xf32, #tpu.memory_space<vmem>>, vector<1x8x512xf32>
    %103 = vector.shape_cast %102 : vector<1x8x512xf32> to vector<8x512xf32>
    %104 = arith.addf %100, %103 : vector<8x512xf32>
    %105 = vector.extract_strided_slice %104 {offsets = [0, 0], sizes = [8, 384], strides = [1, 1]} : vector<8x512xf32> to vector<8x384xf32>
    %106 = arith.negf %105 : vector<8x384xf32>
    %107 = math.exp %106 : vector<8x384xf32>
    %cst_43 = arith.constant 1.000000e+00 : f32
    %108 = vector.broadcast %cst_43 : f32 to vector<8x384xf32>
    %109 = arith.addf %108, %107 : vector<8x384xf32>
    %110 = arith.divf %108, %109 : vector<8x384xf32>
    %111 = vector.extract_strided_slice %110 {offsets = [0, 0], sizes = [8, 128], strides = [1, 1]} : vector<8x384xf32> to vector<8x128xf32>
    %112 = vector.extract_strided_slice %110 {offsets = [0, 128], sizes = [8, 128], strides = [1, 1]} : vector<8x384xf32> to vector<8x128xf32>
    %113 = vector.extract_strided_slice %110 {offsets = [0, 256], sizes = [8, 128], strides = [1, 1]} : vector<8x384xf32> to vector<8x128xf32>
    %114 = vector.extract_strided_slice %104 {offsets = [0, 384], sizes = [8, 128], strides = [1, 1]} : vector<8x512xf32> to vector<8x128xf32>
    %115 = math.tanh %114 : vector<8x128xf32>
    %116 = arith.mulf %112, %89 : vector<8x128xf32>
    %117 = arith.mulf %111, %115 : vector<8x128xf32>
    %118 = arith.addf %116, %117 : vector<8x128xf32>
    %119 = math.tanh %118 : vector<8x128xf32>
    %120 = arith.mulf %113, %119 : vector<8x128xf32>
    %121 = arith.truncf %120 : vector<8x128xf32> to vector<8x128xbf16>
    %c0_i32_44 = arith.constant 0 : i32
    %122 = arith.addi %c0_i32_44, %c3_i32 : i32
    %123 = arith.index_cast %122 : i32 to index
    %c0_45 = arith.constant 0 : index
    %c0_46 = arith.constant 0 : index
    %124 = vector.load %arg10[%123, %c0_45, %c0_46] : memref<8x8x128xbf16, #tpu.memory_space<vmem>>, vector<1x8x128xbf16>
    %125 = vector.shape_cast %124 : vector<1x8x128xbf16> to vector<8x128xbf16>
    %126 = vector.shape_cast %121 : vector<8x128xbf16> to vector<1x8x128xbf16>
    tpu.vector_store %arg10[%123, %c0_45, %c0_46], %126 {strides = array<i32>} : memref<8x8x128xbf16, #tpu.memory_space<vmem>>, vector<1x8x128xbf16>,
    %c4_i32 = arith.constant 4 : i32
    %127 = arith.truncf %120 : vector<8x128xf32> to vector<8x128xbf16>
    %c0_47 = arith.constant 0 : index
    %c0_48 = arith.constant 0 : index
    %128 = vector.load %arg3[%c0_47, %c0_48] : memref<128x512xbf16, #tpu.memory_space<vmem>>, vector<128x512xbf16>
    %cst_49 = arith.constant dense<0.000000e+00> : vector<8x512xf32>
    %129 = tpu.matmul %127, %128, %cst_49 {dimension_numbers = #tpu.dot_dimension_numbers<[1], [0], [0], [1], [0, 0, 1, 1], [], []>} : vector<8x128xbf16>, vector<128x512xbf16>, vector<8x512xf32> -> vector<8x512xf32>
    %130 = arith.index_cast %c4_i32 : i32 to index
    %c0_50 = arith.constant 0 : index
    %c0_51 = arith.constant 0 : index
    %131 = vector.load %arg11[%130, %c0_50, %c0_51] : memref<8x8x512xf32, #tpu.memory_space<vmem>>, vector<1x8x512xf32>
    %132 = vector.shape_cast %131 : vector<1x8x512xf32> to vector<8x512xf32>
    %133 = arith.addf %129, %132 : vector<8x512xf32>
    %134 = vector.extract_strided_slice %133 {offsets = [0, 0], sizes = [8, 384], strides = [1, 1]} : vector<8x512xf32> to vector<8x384xf32>
    %135 = arith.negf %134 : vector<8x384xf32>
    %136 = math.exp %135 : vector<8x384xf32>
    %cst_52 = arith.constant 1.000000e+00 : f32
    %137 = vector.broadcast %cst_52 : f32 to vector<8x384xf32>
    %138 = arith.addf %137, %136 : vector<8x384xf32>
    %139 = arith.divf %137, %138 : vector<8x384xf32>
    %140 = vector.extract_strided_slice %139 {offsets = [0, 0], sizes = [8, 128], strides = [1, 1]} : vector<8x384xf32> to vector<8x128xf32>
    %141 = vector.extract_strided_slice %139 {offsets = [0, 128], sizes = [8, 128], strides = [1, 1]} : vector<8x384xf32> to vector<8x128xf32>
    %142 = vector.extract_strided_slice %139 {offsets = [0, 256], sizes = [8, 128], strides = [1, 1]} : vector<8x384xf32> to vector<8x128xf32>
    %143 = vector.extract_strided_slice %133 {offsets = [0, 384], sizes = [8, 128], strides = [1, 1]} : vector<8x512xf32> to vector<8x128xf32>
    %144 = math.tanh %143 : vector<8x128xf32>
    %145 = arith.mulf %141, %118 : vector<8x128xf32>
    %146 = arith.mulf %140, %144 : vector<8x128xf32>
    %147 = arith.addf %145, %146 : vector<8x128xf32>
    %148 = math.tanh %147 : vector<8x128xf32>
    %149 = arith.mulf %142, %148 : vector<8x128xf32>
    %150 = arith.truncf %149 : vector<8x128xf32> to vector<8x128xbf16>
    %c0_i32_53 = arith.constant 0 : i32
    %151 = arith.addi %c0_i32_53, %c4_i32 : i32
    %152 = arith.index_cast %151 : i32 to index
    %c0_54 = arith.constant 0 : index
    %c0_55 = arith.constant 0 : index
    %153 = vector.load %arg10[%152, %c0_54, %c0_55] : memref<8x8x128xbf16, #tpu.memory_space<vmem>>, vector<1x8x128xbf16>
    %154 = vector.shape_cast %153 : vector<1x8x128xbf16> to vector<8x128xbf16>
    %155 = vector.shape_cast %150 : vector<8x128xbf16> to vector<1x8x128xbf16>
    tpu.vector_store %arg10[%152, %c0_54, %c0_55], %155 {strides = array<i32>} : memref<8x8x128xbf16, #tpu.memory_space<vmem>>, vector<1x8x128xbf16>,
    %c5_i32 = arith.constant 5 : i32
    %156 = arith.truncf %149 : vector<8x128xf32> to vector<8x128xbf16>
    %c0_56 = arith.constant 0 : index
    %c0_57 = arith.constant 0 : index
    %157 = vector.load %arg3[%c0_56, %c0_57] : memref<128x512xbf16, #tpu.memory_space<vmem>>, vector<128x512xbf16>
    %cst_58 = arith.constant dense<0.000000e+00> : vector<8x512xf32>
    %158 = tpu.matmul %156, %157, %cst_58 {dimension_numbers = #tpu.dot_dimension_numbers<[1], [0], [0], [1], [0, 0, 1, 1], [], []>} : vector<8x128xbf16>, vector<128x512xbf16>, vector<8x512xf32> -> vector<8x512xf32>
    %159 = arith.index_cast %c5_i32 : i32 to index
    %c0_59 = arith.constant 0 : index
    %c0_60 = arith.constant 0 : index
    %160 = vector.load %arg11[%159, %c0_59, %c0_60] : memref<8x8x512xf32, #tpu.memory_space<vmem>>, vector<1x8x512xf32>
    %161 = vector.shape_cast %160 : vector<1x8x512xf32> to vector<8x512xf32>
    %162 = arith.addf %158, %161 : vector<8x512xf32>
    %163 = vector.extract_strided_slice %162 {offsets = [0, 0], sizes = [8, 384], strides = [1, 1]} : vector<8x512xf32> to vector<8x384xf32>
    %164 = arith.negf %163 : vector<8x384xf32>
    %165 = math.exp %164 : vector<8x384xf32>
    %cst_61 = arith.constant 1.000000e+00 : f32
    %166 = vector.broadcast %cst_61 : f32 to vector<8x384xf32>
    %167 = arith.addf %166, %165 : vector<8x384xf32>
    %168 = arith.divf %166, %167 : vector<8x384xf32>
    %169 = vector.extract_strided_slice %168 {offsets = [0, 0], sizes = [8, 128], strides = [1, 1]} : vector<8x384xf32> to vector<8x128xf32>
    %170 = vector.extract_strided_slice %168 {offsets = [0, 128], sizes = [8, 128], strides = [1, 1]} : vector<8x384xf32> to vector<8x128xf32>
    %171 = vector.extract_strided_slice %168 {offsets = [0, 256], sizes = [8, 128], strides = [1, 1]} : vector<8x384xf32> to vector<8x128xf32>
    %172 = vector.extract_strided_slice %162 {offsets = [0, 384], sizes = [8, 128], strides = [1, 1]} : vector<8x512xf32> to vector<8x128xf32>
    %173 = math.tanh %172 : vector<8x128xf32>
    %174 = arith.mulf %170, %147 : vector<8x128xf32>
    %175 = arith.mulf %169, %173 : vector<8x128xf32>
    %176 = arith.addf %174, %175 : vector<8x128xf32>
    %177 = math.tanh %176 : vector<8x128xf32>
    %178 = arith.mulf %171, %177 : vector<8x128xf32>
    %179 = arith.truncf %178 : vector<8x128xf32> to vector<8x128xbf16>
    %c0_i32_62 = arith.constant 0 : i32
    %180 = arith.addi %c0_i32_62, %c5_i32 : i32
    %181 = arith.index_cast %180 : i32 to index
    %c0_63 = arith.constant 0 : index
    %c0_64 = arith.constant 0 : index
    %182 = vector.load %arg10[%181, %c0_63, %c0_64] : memref<8x8x128xbf16, #tpu.memory_space<vmem>>, vector<1x8x128xbf16>
    %183 = vector.shape_cast %182 : vector<1x8x128xbf16> to vector<8x128xbf16>
    %184 = vector.shape_cast %179 : vector<8x128xbf16> to vector<1x8x128xbf16>
    tpu.vector_store %arg10[%181, %c0_63, %c0_64], %184 {strides = array<i32>} : memref<8x8x128xbf16, #tpu.memory_space<vmem>>, vector<1x8x128xbf16>,
    %c6_i32 = arith.constant 6 : i32
    %185 = arith.truncf %178 : vector<8x128xf32> to vector<8x128xbf16>
    %c0_65 = arith.constant 0 : index
    %c0_66 = arith.constant 0 : index
    %186 = vector.load %arg3[%c0_65, %c0_66] : memref<128x512xbf16, #tpu.memory_space<vmem>>, vector<128x512xbf16>
    %cst_67 = arith.constant dense<0.000000e+00> : vector<8x512xf32>
    %187 = tpu.matmul %185, %186, %cst_67 {dimension_numbers = #tpu.dot_dimension_numbers<[1], [0], [0], [1], [0, 0, 1, 1], [], []>} : vector<8x128xbf16>, vector<128x512xbf16>, vector<8x512xf32> -> vector<8x512xf32>
    %188 = arith.index_cast %c6_i32 : i32 to index
    %c0_68 = arith.constant 0 : index
    %c0_69 = arith.constant 0 : index
    %189 = vector.load %arg11[%188, %c0_68, %c0_69] : memref<8x8x512xf32, #tpu.memory_space<vmem>>, vector<1x8x512xf32>
    %190 = vector.shape_cast %189 : vector<1x8x512xf32> to vector<8x512xf32>
    %191 = arith.addf %187, %190 : vector<8x512xf32>
    %192 = vector.extract_strided_slice %191 {offsets = [0, 0], sizes = [8, 384], strides = [1, 1]} : vector<8x512xf32> to vector<8x384xf32>
    %193 = arith.negf %192 : vector<8x384xf32>
    %194 = math.exp %193 : vector<8x384xf32>
    %cst_70 = arith.constant 1.000000e+00 : f32
    %195 = vector.broadcast %cst_70 : f32 to vector<8x384xf32>
    %196 = arith.addf %195, %194 : vector<8x384xf32>
    %197 = arith.divf %195, %196 : vector<8x384xf32>
    %198 = vector.extract_strided_slice %197 {offsets = [0, 0], sizes = [8, 128], strides = [1, 1]} : vector<8x384xf32> to vector<8x128xf32>
    %199 = vector.extract_strided_slice %197 {offsets = [0, 128], sizes = [8, 128], strides = [1, 1]} : vector<8x384xf32> to vector<8x128xf32>
    %200 = vector.extract_strided_slice %197 {offsets = [0, 256], sizes = [8, 128], strides = [1, 1]} : vector<8x384xf32> to vector<8x128xf32>
    %201 = vector.extract_strided_slice %191 {offsets = [0, 384], sizes = [8, 128], strides = [1, 1]} : vector<8x512xf32> to vector<8x128xf32>
    %202 = math.tanh %201 : vector<8x128xf32>
    %203 = arith.mulf %199, %176 : vector<8x128xf32>
    %204 = arith.mulf %198, %202 : vector<8x128xf32>
    %205 = arith.addf %203, %204 : vector<8x128xf32>
    %206 = math.tanh %205 : vector<8x128xf32>
    %207 = arith.mulf %200, %206 : vector<8x128xf32>
    %208 = arith.truncf %207 : vector<8x128xf32> to vector<8x128xbf16>
    %c0_i32_71 = arith.constant 0 : i32
    %209 = arith.addi %c0_i32_71, %c6_i32 : i32
    %210 = arith.index_cast %209 : i32 to index
    %c0_72 = arith.constant 0 : index
    %c0_73 = arith.constant 0 : index
    %211 = vector.load %arg10[%210, %c0_72, %c0_73] : memref<8x8x128xbf16, #tpu.memory_space<vmem>>, vector<1x8x128xbf16>
    %212 = vector.shape_cast %211 : vector<1x8x128xbf16> to vector<8x128xbf16>
    %213 = vector.shape_cast %208 : vector<8x128xbf16> to vector<1x8x128xbf16>
    tpu.vector_store %arg10[%210, %c0_72, %c0_73], %213 {strides = array<i32>} : memref<8x8x128xbf16, #tpu.memory_space<vmem>>, vector<1x8x128xbf16>,
    %c7_i32 = arith.constant 7 : i32
    %214 = arith.truncf %207 : vector<8x128xf32> to vector<8x128xbf16>
    %c0_74 = arith.constant 0 : index
    %c0_75 = arith.constant 0 : index
    %215 = vector.load %arg3[%c0_74, %c0_75] : memref<128x512xbf16, #tpu.memory_space<vmem>>, vector<128x512xbf16>
    %cst_76 = arith.constant dense<0.000000e+00> : vector<8x512xf32>
    %216 = tpu.matmul %214, %215, %cst_76 {dimension_numbers = #tpu.dot_dimension_numbers<[1], [0], [0], [1], [0, 0, 1, 1], [], []>} : vector<8x128xbf16>, vector<128x512xbf16>, vector<8x512xf32> -> vector<8x512xf32>
    %217 = arith.index_cast %c7_i32 : i32 to index
    %c0_77 = arith.constant 0 : index
    %c0_78 = arith.constant 0 : index
    %218 = vector.load %arg11[%217, %c0_77, %c0_78] : memref<8x8x512xf32, #tpu.memory_space<vmem>>, vector<1x8x512xf32>
    %219 = vector.shape_cast %218 : vector<1x8x512xf32> to vector<8x512xf32>
    %220 = arith.addf %216, %219 : vector<8x512xf32>
    %221 = vector.extract_strided_slice %220 {offsets = [0, 0], sizes = [8, 384], strides = [1, 1]} : vector<8x512xf32> to vector<8x384xf32>
    %222 = arith.negf %221 : vector<8x384xf32>
    %223 = math.exp %222 : vector<8x384xf32>
    %cst_79 = arith.constant 1.000000e+00 : f32
    %224 = vector.broadcast %cst_79 : f32 to vector<8x384xf32>
    %225 = arith.addf %224, %223 : vector<8x384xf32>
    %226 = arith.divf %224, %225 : vector<8x384xf32>
    %227 = vector.extract_strided_slice %226 {offsets = [0, 0], sizes = [8, 128], strides = [1, 1]} : vector<8x384xf32> to vector<8x128xf32>
    %228 = vector.extract_strided_slice %226 {offsets = [0, 128], sizes = [8, 128], strides = [1, 1]} : vector<8x384xf32> to vector<8x128xf32>
    %229 = vector.extract_strided_slice %226 {offsets = [0, 256], sizes = [8, 128], strides = [1, 1]} : vector<8x384xf32> to vector<8x128xf32>
    %230 = vector.extract_strided_slice %220 {offsets = [0, 384], sizes = [8, 128], strides = [1, 1]} : vector<8x512xf32> to vector<8x128xf32>
    %231 = math.tanh %230 : vector<8x128xf32>
    %232 = arith.mulf %228, %205 : vector<8x128xf32>
    %233 = arith.mulf %227, %231 : vector<8x128xf32>
    %234 = arith.addf %232, %233 : vector<8x128xf32>
    %235 = math.tanh %234 : vector<8x128xf32>
    %236 = arith.mulf %229, %235 : vector<8x128xf32>
    %237 = arith.truncf %236 : vector<8x128xf32> to vector<8x128xbf16>
    %c0_i32_80 = arith.constant 0 : i32
    %238 = arith.addi %c0_i32_80, %c7_i32 : i32
    %239 = arith.index_cast %238 : i32 to index
    %c0_81 = arith.constant 0 : index
    %c0_82 = arith.constant 0 : index
    %240 = vector.load %arg10[%239, %c0_81, %c0_82] : memref<8x8x128xbf16, #tpu.memory_space<vmem>>, vector<1x8x128xbf16>
    %241 = vector.shape_cast %240 : vector<1x8x128xbf16> to vector<8x128xbf16>
    %242 = vector.shape_cast %237 : vector<8x128xbf16> to vector<1x8x128xbf16>
    tpu.vector_store %arg10[%239, %c0_81, %c0_82], %242 {strides = array<i32>} : memref<8x8x128xbf16, #tpu.memory_space<vmem>>, vector<1x8x128xbf16>,
    %c8_i32 = arith.constant 8 : i32
    %c0_83 = arith.constant 0 : index
    %c0_84 = arith.constant 0 : index
    %c0_85 = arith.constant 0 : index
    %243 = vector.load %arg8[%c0_83, %c0_84, %c0_85] : memref<2x8x128xf32, #tpu.memory_space<vmem>>, vector<1x8x128xf32>
    %244 = vector.shape_cast %243 : vector<1x8x128xf32> to vector<8x128xf32>
    %245 = vector.shape_cast %236 : vector<8x128xf32> to vector<1x8x128xf32>
    tpu.vector_store %arg8[%c0_83, %c0_84, %c0_85], %245 {strides = array<i32>} : memref<2x8x128xf32, #tpu.memory_space<vmem>>, vector<1x8x128xf32>,
    %c0_86 = arith.constant 0 : index
    %c0_87 = arith.constant 0 : index
    %c0_88 = arith.constant 0 : index
    %246 = vector.load %arg9[%c0_86, %c0_87, %c0_88] : memref<2x8x128xf32, #tpu.memory_space<vmem>>, vector<1x8x128xf32>
    %247 = vector.shape_cast %246 : vector<1x8x128xf32> to vector<8x128xf32>
    %248 = vector.shape_cast %234 : vector<8x128xf32> to vector<1x8x128xf32>
    tpu.vector_store %arg9[%c0_86, %c0_87, %c0_88], %248 {strides = array<i32>} : memref<2x8x128xf32, #tpu.memory_space<vmem>>, vector<1x8x128xf32>,
    %cst_89 = arith.constant 0.000000e+00 : f32
    %249 = vector.broadcast %cst_89 : f32 to vector<8x128xf32>
    %cst_90 = arith.constant 0.000000e+00 : f32
    %250 = vector.broadcast %cst_90 : f32 to vector<8x128xf32>
    %c0_91 = arith.constant 0 : index
    %c0_92 = arith.constant 0 : index
    %c0_93 = arith.constant 0 : index
    %251 = vector.load %arg10[%c0_91, %c0_92, %c0_93] : memref<8x8x128xbf16, #tpu.memory_space<vmem>>, vector<8x8x128xbf16>
    %252 = vector.shape_cast %251 : vector<8x8x128xbf16> to vector<64x128xbf16>
    %c0_94 = arith.constant 0 : index
    %c0_95 = arith.constant 0 : index
    %253 = vector.load %arg5[%c0_94, %c0_95] : memref<128x512xbf16, #tpu.memory_space<vmem>>, vector<128x512xbf16>
    %cst_96 = arith.constant dense<0.000000e+00> : vector<64x512xf32>
    %254 = tpu.matmul %252, %253, %cst_96 {dimension_numbers = #tpu.dot_dimension_numbers<[1], [0], [0], [1], [0, 0, 1, 1], [], []>} : vector<64x128xbf16>, vector<128x512xbf16>, vector<64x512xf32> -> vector<64x512xf32>
    %c0_97 = arith.constant 0 : index
    %c0_98 = arith.constant 0 : index
    %255 = vector.load %arg7[%c0_97, %c0_98] : memref<1x512xf32, #tpu.memory_space<vmem>>, vector<1x512xf32>
    %256 = vector.broadcast %255 : vector<1x512xf32> to vector<64x512xf32>
    %257 = arith.addf %254, %256 : vector<64x512xf32>
    %258 = vector.shape_cast %257 : vector<64x512xf32> to vector<8x8x512xf32>
    %c0_99 = arith.constant 0 : index
    %c0_100 = arith.constant 0 : index
    %c0_101 = arith.constant 0 : index
    %259 = vector.load %arg11[%c0_99, %c0_100, %c0_101] : memref<8x8x512xf32, #tpu.memory_space<vmem>>, vector<8x8x512xf32>
    tpu.vector_store %arg11[%c0_99, %c0_100, %c0_101], %258 {strides = array<i32>} : memref<8x8x512xf32, #tpu.memory_space<vmem>>, vector<8x8x512xf32>,
    %c0_i32_102 = arith.constant 0 : i32
    %260 = arith.truncf %249 : vector<8x128xf32> to vector<8x128xbf16>
    %c0_103 = arith.constant 0 : index
    %c0_104 = arith.constant 0 : index
    %261 = vector.load %arg6[%c0_103, %c0_104] : memref<128x512xbf16, #tpu.memory_space<vmem>>, vector<128x512xbf16>
    %cst_105 = arith.constant dense<0.000000e+00> : vector<8x512xf32>
    %262 = tpu.matmul %260, %261, %cst_105 {dimension_numbers = #tpu.dot_dimension_numbers<[1], [0], [0], [1], [0, 0, 1, 1], [], []>} : vector<8x128xbf16>, vector<128x512xbf16>, vector<8x512xf32> -> vector<8x512xf32>
    %263 = arith.index_cast %c0_i32_102 : i32 to index
    %c0_106 = arith.constant 0 : index
    %c0_107 = arith.constant 0 : index
    %264 = vector.load %arg11[%263, %c0_106, %c0_107] : memref<8x8x512xf32, #tpu.memory_space<vmem>>, vector<1x8x512xf32>
    %265 = vector.shape_cast %264 : vector<1x8x512xf32> to vector<8x512xf32>
    %266 = arith.addf %262, %265 : vector<8x512xf32>
    %267 = vector.extract_strided_slice %266 {offsets = [0, 0], sizes = [8, 384], strides = [1, 1]} : vector<8x512xf32> to vector<8x384xf32>
    %268 = arith.negf %267 : vector<8x384xf32>
    %269 = math.exp %268 : vector<8x384xf32>
    %cst_108 = arith.constant 1.000000e+00 : f32
    %270 = vector.broadcast %cst_108 : f32 to vector<8x384xf32>
    %271 = arith.addf %270, %269 : vector<8x384xf32>
    %272 = arith.divf %270, %271 : vector<8x384xf32>
    %273 = vector.extract_strided_slice %272 {offsets = [0, 0], sizes = [8, 128], strides = [1, 1]} : vector<8x384xf32> to vector<8x128xf32>
    %274 = vector.extract_strided_slice %272 {offsets = [0, 128], sizes = [8, 128], strides = [1, 1]} : vector<8x384xf32> to vector<8x128xf32>
    %275 = vector.extract_strided_slice %272 {offsets = [0, 256], sizes = [8, 128], strides = [1, 1]} : vector<8x384xf32> to vector<8x128xf32>
    %276 = vector.extract_strided_slice %266 {offsets = [0, 384], sizes = [8, 128], strides = [1, 1]} : vector<8x512xf32> to vector<8x128xf32>
    %277 = math.tanh %276 : vector<8x128xf32>
    %278 = arith.mulf %274, %250 : vector<8x128xf32>
    %279 = arith.mulf %273, %277 : vector<8x128xf32>
    %280 = arith.addf %278, %279 : vector<8x128xf32>
    %281 = math.tanh %280 : vector<8x128xf32>
    %282 = arith.mulf %275, %281 : vector<8x128xf32>
    %c1_i32_109 = arith.constant 1 : i32
    %283 = arith.truncf %282 : vector<8x128xf32> to vector<8x128xbf16>
    %c0_110 = arith.constant 0 : index
    %c0_111 = arith.constant 0 : index
    %284 = vector.load %arg6[%c0_110, %c0_111] : memref<128x512xbf16, #tpu.memory_space<vmem>>, vector<128x512xbf16>
    %cst_112 = arith.constant dense<0.000000e+00> : vector<8x512xf32>
    %285 = tpu.matmul %283, %284, %cst_112 {dimension_numbers = #tpu.dot_dimension_numbers<[1], [0], [0], [1], [0, 0, 1, 1], [], []>} : vector<8x128xbf16>, vector<128x512xbf16>, vector<8x512xf32> -> vector<8x512xf32>
    %286 = arith.index_cast %c1_i32_109 : i32 to index
    %c0_113 = arith.constant 0 : index
    %c0_114 = arith.constant 0 : index
    %287 = vector.load %arg11[%286, %c0_113, %c0_114] : memref<8x8x512xf32, #tpu.memory_space<vmem>>, vector<1x8x512xf32>
    %288 = vector.shape_cast %287 : vector<1x8x512xf32> to vector<8x512xf32>
    %289 = arith.addf %285, %288 : vector<8x512xf32>
    %290 = vector.extract_strided_slice %289 {offsets = [0, 0], sizes = [8, 384], strides = [1, 1]} : vector<8x512xf32> to vector<8x384xf32>
    %291 = arith.negf %290 : vector<8x384xf32>
    %292 = math.exp %291 : vector<8x384xf32>
    %cst_115 = arith.constant 1.000000e+00 : f32
    %293 = vector.broadcast %cst_115 : f32 to vector<8x384xf32>
    %294 = arith.addf %293, %292 : vector<8x384xf32>
    %295 = arith.divf %293, %294 : vector<8x384xf32>
    %296 = vector.extract_strided_slice %295 {offsets = [0, 0], sizes = [8, 128], strides = [1, 1]} : vector<8x384xf32> to vector<8x128xf32>
    %297 = vector.extract_strided_slice %295 {offsets = [0, 128], sizes = [8, 128], strides = [1, 1]} : vector<8x384xf32> to vector<8x128xf32>
    %298 = vector.extract_strided_slice %295 {offsets = [0, 256], sizes = [8, 128], strides = [1, 1]} : vector<8x384xf32> to vector<8x128xf32>
    %299 = vector.extract_strided_slice %289 {offsets = [0, 384], sizes = [8, 128], strides = [1, 1]} : vector<8x512xf32> to vector<8x128xf32>
    %300 = math.tanh %299 : vector<8x128xf32>
    %301 = arith.mulf %297, %280 : vector<8x128xf32>
    %302 = arith.mulf %296, %300 : vector<8x128xf32>
    %303 = arith.addf %301, %302 : vector<8x128xf32>
    %304 = math.tanh %303 : vector<8x128xf32>
    %305 = arith.mulf %298, %304 : vector<8x128xf32>
    %c2_i32_116 = arith.constant 2 : i32
    %306 = arith.truncf %305 : vector<8x128xf32> to vector<8x128xbf16>
    %c0_117 = arith.constant 0 : index
    %c0_118 = arith.constant 0 : index
    %307 = vector.load %arg6[%c0_117, %c0_118] : memref<128x512xbf16, #tpu.memory_space<vmem>>, vector<128x512xbf16>
    %cst_119 = arith.constant dense<0.000000e+00> : vector<8x512xf32>
    %308 = tpu.matmul %306, %307, %cst_119 {dimension_numbers = #tpu.dot_dimension_numbers<[1], [0], [0], [1], [0, 0, 1, 1], [], []>} : vector<8x128xbf16>, vector<128x512xbf16>, vector<8x512xf32> -> vector<8x512xf32>
    %309 = arith.index_cast %c2_i32_116 : i32 to index
    %c0_120 = arith.constant 0 : index
    %c0_121 = arith.constant 0 : index
    %310 = vector.load %arg11[%309, %c0_120, %c0_121] : memref<8x8x512xf32, #tpu.memory_space<vmem>>, vector<1x8x512xf32>
    %311 = vector.shape_cast %310 : vector<1x8x512xf32> to vector<8x512xf32>
    %312 = arith.addf %308, %311 : vector<8x512xf32>
    %313 = vector.extract_strided_slice %312 {offsets = [0, 0], sizes = [8, 384], strides = [1, 1]} : vector<8x512xf32> to vector<8x384xf32>
    %314 = arith.negf %313 : vector<8x384xf32>
    %315 = math.exp %314 : vector<8x384xf32>
    %cst_122 = arith.constant 1.000000e+00 : f32
    %316 = vector.broadcast %cst_122 : f32 to vector<8x384xf32>
    %317 = arith.addf %316, %315 : vector<8x384xf32>
    %318 = arith.divf %316, %317 : vector<8x384xf32>
    %319 = vector.extract_strided_slice %318 {offsets = [0, 0], sizes = [8, 128], strides = [1, 1]} : vector<8x384xf32> to vector<8x128xf32>
    %320 = vector.extract_strided_slice %318 {offsets = [0, 128], sizes = [8, 128], strides = [1, 1]} : vector<8x384xf32> to vector<8x128xf32>
    %321 = vector.extract_strided_slice %318 {offsets = [0, 256], sizes = [8, 128], strides = [1, 1]} : vector<8x384xf32> to vector<8x128xf32>
    %322 = vector.extract_strided_slice %312 {offsets = [0, 384], sizes = [8, 128], strides = [1, 1]} : vector<8x512xf32> to vector<8x128xf32>
    %323 = math.tanh %322 : vector<8x128xf32>
    %324 = arith.mulf %320, %303 : vector<8x128xf32>
    %325 = arith.mulf %319, %323 : vector<8x128xf32>
    %326 = arith.addf %324, %325 : vector<8x128xf32>
    %327 = math.tanh %326 : vector<8x128xf32>
    %328 = arith.mulf %321, %327 : vector<8x128xf32>
    %c3_i32_123 = arith.constant 3 : i32
    %329 = arith.truncf %328 : vector<8x128xf32> to vector<8x128xbf16>
    %c0_124 = arith.constant 0 : index
    %c0_125 = arith.constant 0 : index
    %330 = vector.load %arg6[%c0_124, %c0_125] : memref<128x512xbf16, #tpu.memory_space<vmem>>, vector<128x512xbf16>
    %cst_126 = arith.constant dense<0.000000e+00> : vector<8x512xf32>
    %331 = tpu.matmul %329, %330, %cst_126 {dimension_numbers = #tpu.dot_dimension_numbers<[1], [0], [0], [1], [0, 0, 1, 1], [], []>} : vector<8x128xbf16>, vector<128x512xbf16>, vector<8x512xf32> -> vector<8x512xf32>
    %332 = arith.index_cast %c3_i32_123 : i32 to index
    %c0_127 = arith.constant 0 : index
    %c0_128 = arith.constant 0 : index
    %333 = vector.load %arg11[%332, %c0_127, %c0_128] : memref<8x8x512xf32, #tpu.memory_space<vmem>>, vector<1x8x512xf32>
    %334 = vector.shape_cast %333 : vector<1x8x512xf32> to vector<8x512xf32>
    %335 = arith.addf %331, %334 : vector<8x512xf32>
    %336 = vector.extract_strided_slice %335 {offsets = [0, 0], sizes = [8, 384], strides = [1, 1]} : vector<8x512xf32> to vector<8x384xf32>
    %337 = arith.negf %336 : vector<8x384xf32>
    %338 = math.exp %337 : vector<8x384xf32>
    %cst_129 = arith.constant 1.000000e+00 : f32
    %339 = vector.broadcast %cst_129 : f32 to vector<8x384xf32>
    %340 = arith.addf %339, %338 : vector<8x384xf32>
    %341 = arith.divf %339, %340 : vector<8x384xf32>
    %342 = vector.extract_strided_slice %341 {offsets = [0, 0], sizes = [8, 128], strides = [1, 1]} : vector<8x384xf32> to vector<8x128xf32>
    %343 = vector.extract_strided_slice %341 {offsets = [0, 128], sizes = [8, 128], strides = [1, 1]} : vector<8x384xf32> to vector<8x128xf32>
    %344 = vector.extract_strided_slice %341 {offsets = [0, 256], sizes = [8, 128], strides = [1, 1]} : vector<8x384xf32> to vector<8x128xf32>
    %345 = vector.extract_strided_slice %335 {offsets = [0, 384], sizes = [8, 128], strides = [1, 1]} : vector<8x512xf32> to vector<8x128xf32>
    %346 = math.tanh %345 : vector<8x128xf32>
    %347 = arith.mulf %343, %326 : vector<8x128xf32>
    %348 = arith.mulf %342, %346 : vector<8x128xf32>
    %349 = arith.addf %347, %348 : vector<8x128xf32>
    %350 = math.tanh %349 : vector<8x128xf32>
    %351 = arith.mulf %344, %350 : vector<8x128xf32>
    %c4_i32_130 = arith.constant 4 : i32
    %352 = arith.truncf %351 : vector<8x128xf32> to vector<8x128xbf16>
    %c0_131 = arith.constant 0 : index
    %c0_132 = arith.constant 0 : index
    %353 = vector.load %arg6[%c0_131, %c0_132] : memref<128x512xbf16, #tpu.memory_space<vmem>>, vector<128x512xbf16>
    %cst_133 = arith.constant dense<0.000000e+00> : vector<8x512xf32>
    %354 = tpu.matmul %352, %353, %cst_133 {dimension_numbers = #tpu.dot_dimension_numbers<[1], [0], [0], [1], [0, 0, 1, 1], [], []>} : vector<8x128xbf16>, vector<128x512xbf16>, vector<8x512xf32> -> vector<8x512xf32>
    %355 = arith.index_cast %c4_i32_130 : i32 to index
    %c0_134 = arith.constant 0 : index
    %c0_135 = arith.constant 0 : index
    %356 = vector.load %arg11[%355, %c0_134, %c0_135] : memref<8x8x512xf32, #tpu.memory_space<vmem>>, vector<1x8x512xf32>
    %357 = vector.shape_cast %356 : vector<1x8x512xf32> to vector<8x512xf32>
    %358 = arith.addf %354, %357 : vector<8x512xf32>
    %359 = vector.extract_strided_slice %358 {offsets = [0, 0], sizes = [8, 384], strides = [1, 1]} : vector<8x512xf32> to vector<8x384xf32>
    %360 = arith.negf %359 : vector<8x384xf32>
    %361 = math.exp %360 : vector<8x384xf32>
    %cst_136 = arith.constant 1.000000e+00 : f32
    %362 = vector.broadcast %cst_136 : f32 to vector<8x384xf32>
    %363 = arith.addf %362, %361 : vector<8x384xf32>
    %364 = arith.divf %362, %363 : vector<8x384xf32>
    %365 = vector.extract_strided_slice %364 {offsets = [0, 0], sizes = [8, 128], strides = [1, 1]} : vector<8x384xf32> to vector<8x128xf32>
    %366 = vector.extract_strided_slice %364 {offsets = [0, 128], sizes = [8, 128], strides = [1, 1]} : vector<8x384xf32> to vector<8x128xf32>
    %367 = vector.extract_strided_slice %364 {offsets = [0, 256], sizes = [8, 128], strides = [1, 1]} : vector<8x384xf32> to vector<8x128xf32>
    %368 = vector.extract_strided_slice %358 {offsets = [0, 384], sizes = [8, 128], strides = [1, 1]} : vector<8x512xf32> to vector<8x128xf32>
    %369 = math.tanh %368 : vector<8x128xf32>
    %370 = arith.mulf %366, %349 : vector<8x128xf32>
    %371 = arith.mulf %365, %369 : vector<8x128xf32>
    %372 = arith.addf %370, %371 : vector<8x128xf32>
    %373 = math.tanh %372 : vector<8x128xf32>
    %374 = arith.mulf %367, %373 : vector<8x128xf32>
    %c5_i32_137 = arith.constant 5 : i32
    %375 = arith.truncf %374 : vector<8x128xf32> to vector<8x128xbf16>
    %c0_138 = arith.constant 0 : index
    %c0_139 = arith.constant 0 : index
    %376 = vector.load %arg6[%c0_138, %c0_139] : memref<128x512xbf16, #tpu.memory_space<vmem>>, vector<128x512xbf16>
    %cst_140 = arith.constant dense<0.000000e+00> : vector<8x512xf32>
    %377 = tpu.matmul %375, %376, %cst_140 {dimension_numbers = #tpu.dot_dimension_numbers<[1], [0], [0], [1], [0, 0, 1, 1], [], []>} : vector<8x128xbf16>, vector<128x512xbf16>, vector<8x512xf32> -> vector<8x512xf32>
    %378 = arith.index_cast %c5_i32_137 : i32 to index
    %c0_141 = arith.constant 0 : index
    %c0_142 = arith.constant 0 : index
    %379 = vector.load %arg11[%378, %c0_141, %c0_142] : memref<8x8x512xf32, #tpu.memory_space<vmem>>, vector<1x8x512xf32>
    %380 = vector.shape_cast %379 : vector<1x8x512xf32> to vector<8x512xf32>
    %381 = arith.addf %377, %380 : vector<8x512xf32>
    %382 = vector.extract_strided_slice %381 {offsets = [0, 0], sizes = [8, 384], strides = [1, 1]} : vector<8x512xf32> to vector<8x384xf32>
    %383 = arith.negf %382 : vector<8x384xf32>
    %384 = math.exp %383 : vector<8x384xf32>
    %cst_143 = arith.constant 1.000000e+00 : f32
    %385 = vector.broadcast %cst_143 : f32 to vector<8x384xf32>
    %386 = arith.addf %385, %384 : vector<8x384xf32>
    %387 = arith.divf %385, %386 : vector<8x384xf32>
    %388 = vector.extract_strided_slice %387 {offsets = [0, 0], sizes = [8, 128], strides = [1, 1]} : vector<8x384xf32> to vector<8x128xf32>
    %389 = vector.extract_strided_slice %387 {offsets = [0, 128], sizes = [8, 128], strides = [1, 1]} : vector<8x384xf32> to vector<8x128xf32>
    %390 = vector.extract_strided_slice %387 {offsets = [0, 256], sizes = [8, 128], strides = [1, 1]} : vector<8x384xf32> to vector<8x128xf32>
    %391 = vector.extract_strided_slice %381 {offsets = [0, 384], sizes = [8, 128], strides = [1, 1]} : vector<8x512xf32> to vector<8x128xf32>
    %392 = math.tanh %391 : vector<8x128xf32>
    %393 = arith.mulf %389, %372 : vector<8x128xf32>
    %394 = arith.mulf %388, %392 : vector<8x128xf32>
    %395 = arith.addf %393, %394 : vector<8x128xf32>
    %396 = math.tanh %395 : vector<8x128xf32>
    %397 = arith.mulf %390, %396 : vector<8x128xf32>
    %c6_i32_144 = arith.constant 6 : i32
    %398 = arith.truncf %397 : vector<8x128xf32> to vector<8x128xbf16>
    %c0_145 = arith.constant 0 : index
    %c0_146 = arith.constant 0 : index
    %399 = vector.load %arg6[%c0_145, %c0_146] : memref<128x512xbf16, #tpu.memory_space<vmem>>, vector<128x512xbf16>
    %cst_147 = arith.constant dense<0.000000e+00> : vector<8x512xf32>
    %400 = tpu.matmul %398, %399, %cst_147 {dimension_numbers = #tpu.dot_dimension_numbers<[1], [0], [0], [1], [0, 0, 1, 1], [], []>} : vector<8x128xbf16>, vector<128x512xbf16>, vector<8x512xf32> -> vector<8x512xf32>
    %401 = arith.index_cast %c6_i32_144 : i32 to index
    %c0_148 = arith.constant 0 : index
    %c0_149 = arith.constant 0 : index
    %402 = vector.load %arg11[%401, %c0_148, %c0_149] : memref<8x8x512xf32, #tpu.memory_space<vmem>>, vector<1x8x512xf32>
    %403 = vector.shape_cast %402 : vector<1x8x512xf32> to vector<8x512xf32>
    %404 = arith.addf %400, %403 : vector<8x512xf32>
    %405 = vector.extract_strided_slice %404 {offsets = [0, 0], sizes = [8, 384], strides = [1, 1]} : vector<8x512xf32> to vector<8x384xf32>
    %406 = arith.negf %405 : vector<8x384xf32>
    %407 = math.exp %406 : vector<8x384xf32>
    %cst_150 = arith.constant 1.000000e+00 : f32
    %408 = vector.broadcast %cst_150 : f32 to vector<8x384xf32>
    %409 = arith.addf %408, %407 : vector<8x384xf32>
    %410 = arith.divf %408, %409 : vector<8x384xf32>
    %411 = vector.extract_strided_slice %410 {offsets = [0, 0], sizes = [8, 128], strides = [1, 1]} : vector<8x384xf32> to vector<8x128xf32>
    %412 = vector.extract_strided_slice %410 {offsets = [0, 128], sizes = [8, 128], strides = [1, 1]} : vector<8x384xf32> to vector<8x128xf32>
    %413 = vector.extract_strided_slice %410 {offsets = [0, 256], sizes = [8, 128], strides = [1, 1]} : vector<8x384xf32> to vector<8x128xf32>
    %414 = vector.extract_strided_slice %404 {offsets = [0, 384], sizes = [8, 128], strides = [1, 1]} : vector<8x512xf32> to vector<8x128xf32>
    %415 = math.tanh %414 : vector<8x128xf32>
    %416 = arith.mulf %412, %395 : vector<8x128xf32>
    %417 = arith.mulf %411, %415 : vector<8x128xf32>
    %418 = arith.addf %416, %417 : vector<8x128xf32>
    %419 = math.tanh %418 : vector<8x128xf32>
    %420 = arith.mulf %413, %419 : vector<8x128xf32>
    %c7_i32_151 = arith.constant 7 : i32
    %421 = arith.truncf %420 : vector<8x128xf32> to vector<8x128xbf16>
    %c0_152 = arith.constant 0 : index
    %c0_153 = arith.constant 0 : index
    %422 = vector.load %arg6[%c0_152, %c0_153] : memref<128x512xbf16, #tpu.memory_space<vmem>>, vector<128x512xbf16>
    %cst_154 = arith.constant dense<0.000000e+00> : vector<8x512xf32>
    %423 = tpu.matmul %421, %422, %cst_154 {dimension_numbers = #tpu.dot_dimension_numbers<[1], [0], [0], [1], [0, 0, 1, 1], [], []>} : vector<8x128xbf16>, vector<128x512xbf16>, vector<8x512xf32> -> vector<8x512xf32>
    %424 = arith.index_cast %c7_i32_151 : i32 to index
    %c0_155 = arith.constant 0 : index
    %c0_156 = arith.constant 0 : index
    %425 = vector.load %arg11[%424, %c0_155, %c0_156] : memref<8x8x512xf32, #tpu.memory_space<vmem>>, vector<1x8x512xf32>
    %426 = vector.shape_cast %425 : vector<1x8x512xf32> to vector<8x512xf32>
    %427 = arith.addf %423, %426 : vector<8x512xf32>
    %428 = vector.extract_strided_slice %427 {offsets = [0, 0], sizes = [8, 384], strides = [1, 1]} : vector<8x512xf32> to vector<8x384xf32>
    %429 = arith.negf %428 : vector<8x384xf32>
    %430 = math.exp %429 : vector<8x384xf32>
    %cst_157 = arith.constant 1.000000e+00 : f32
    %431 = vector.broadcast %cst_157 : f32 to vector<8x384xf32>
    %432 = arith.addf %431, %430 : vector<8x384xf32>
    %433 = arith.divf %431, %432 : vector<8x384xf32>
    %434 = vector.extract_strided_slice %433 {offsets = [0, 0], sizes = [8, 128], strides = [1, 1]} : vector<8x384xf32> to vector<8x128xf32>
    %435 = vector.extract_strided_slice %433 {offsets = [0, 128], sizes = [8, 128], strides = [1, 1]} : vector<8x384xf32> to vector<8x128xf32>
    %436 = vector.extract_strided_slice %433 {offsets = [0, 256], sizes = [8, 128], strides = [1, 1]} : vector<8x384xf32> to vector<8x128xf32>
    %437 = vector.extract_strided_slice %427 {offsets = [0, 384], sizes = [8, 128], strides = [1, 1]} : vector<8x512xf32> to vector<8x128xf32>
    %438 = math.tanh %437 : vector<8x128xf32>
    %439 = arith.mulf %435, %418 : vector<8x128xf32>
    %440 = arith.mulf %434, %438 : vector<8x128xf32>
    %441 = arith.addf %439, %440 : vector<8x128xf32>
    %442 = math.tanh %441 : vector<8x128xf32>
    %443 = arith.mulf %436, %442 : vector<8x128xf32>
    %c8_i32_158 = arith.constant 8 : i32
    %c1 = arith.constant 1 : index
    %c0_159 = arith.constant 0 : index
    %c0_160 = arith.constant 0 : index
    %444 = vector.load %arg8[%c1, %c0_159, %c0_160] : memref<2x8x128xf32, #tpu.memory_space<vmem>>, vector<1x8x128xf32>
    %445 = vector.shape_cast %444 : vector<1x8x128xf32> to vector<8x128xf32>
    %446 = vector.shape_cast %443 : vector<8x128xf32> to vector<1x8x128xf32>
    tpu.vector_store %arg8[%c1, %c0_159, %c0_160], %446 {strides = array<i32>} : memref<2x8x128xf32, #tpu.memory_space<vmem>>, vector<1x8x128xf32>,
    %c1_161 = arith.constant 1 : index
    %c0_162 = arith.constant 0 : index
    %c0_163 = arith.constant 0 : index
    %447 = vector.load %arg9[%c1_161, %c0_162, %c0_163] : memref<2x8x128xf32, #tpu.memory_space<vmem>>, vector<1x8x128xf32>
    %448 = vector.shape_cast %447 : vector<1x8x128xf32> to vector<8x128xf32>
    %449 = vector.shape_cast %441 : vector<8x128xf32> to vector<1x8x128xf32>
    tpu.vector_store %arg9[%c1_161, %c0_162, %c0_163], %449 {strides = array<i32>} : memref<2x8x128xf32, #tpu.memory_space<vmem>>, vector<1x8x128xf32>,
    return
  }
  func.func @transform_0(%arg0: i32) -> (i32, i32, i32) {
    %c0_i32 = arith.constant 0 : i32
    %c0_i32_0 = arith.constant 0 : i32
    %c0_i32_1 = arith.constant 0 : i32
    return %c0_i32, %arg0, %c0_i32_0 : i32, i32, i32
  }
  func.func @transform_1(%arg0: i32) -> (i32, i32) {
    %c0_i32 = arith.constant 0 : i32
    %c0_i32_0 = arith.constant 0 : i32
    %c0_i32_1 = arith.constant 0 : i32
    return %c0_i32, %c0_i32_0 : i32, i32
  }
  func.func @transform_2(%arg0: i32) -> (i32, i32) {
    %c0_i32 = arith.constant 0 : i32
    %c0_i32_0 = arith.constant 0 : i32
    %c0_i32_1 = arith.constant 0 : i32
    return %c0_i32, %c0_i32_0 : i32, i32
  }
  func.func @transform_3(%arg0: i32) -> (i32, i32) {
    %c0_i32 = arith.constant 0 : i32
    %c0_i32_0 = arith.constant 0 : i32
    %c0_i32_1 = arith.constant 0 : i32
    return %c0_i32, %c0_i32_0 : i32, i32
  }
  func.func @transform_4(%arg0: i32) -> (i32, i32) {
    %c0_i32 = arith.constant 0 : i32
    %c0_i32_0 = arith.constant 0 : i32
    %c0_i32_1 = arith.constant 0 : i32
    return %c0_i32, %c0_i32_0 : i32, i32
  }
  func.func @transform_5(%arg0: i32) -> (i32, i32) {
    %c0_i32 = arith.constant 0 : i32
    %c0_i32_0 = arith.constant 0 : i32
    %c0_i32_1 = arith.constant 0 : i32
    return %c0_i32, %c0_i32_0 : i32, i32
  }
  func.func @transform_6(%arg0: i32) -> (i32, i32) {
    %c0_i32 = arith.constant 0 : i32
    %c0_i32_0 = arith.constant 0 : i32
    %c0_i32_1 = arith.constant 0 : i32
    return %c0_i32, %c0_i32_0 : i32, i32
  }
  func.func @transform_7(%arg0: i32) -> (i32, i32, i32) {
    %c0_i32 = arith.constant 0 : i32
    %c0_i32_0 = arith.constant 0 : i32
    %c0_i32_1 = arith.constant 0 : i32
    return %c0_i32, %arg0, %c0_i32_0 : i32, i32, i32
  }
  func.func @transform_8(%arg0: i32) -> (i32, i32, i32) {
    %c0_i32 = arith.constant 0 : i32
    %c0_i32_0 = arith.constant 0 : i32
    %c0_i32_1 = arith.constant 0 : i32
    return %c0_i32, %arg0, %c0_i32_0 : i32, i32, i32
  }
}

</mosaic_0001>

<bundles_post_ra>
// kernel: encoder_forward.1
= control target key start
LH: loop header
LB: loop body
LE: loop exit
PB: predicated region body
PF: predicated region fallthrough
CT: control target
= control target key end

     0   :  { %v7168_v1 = vmov 0   ;;  %s7155_s1 = inlined_call_operand.vmem [shape: bf16[128,512], index: 1, kind: input, shape index: {}]   ;;  %s7156_s0 = inlined_call_operand.vmem [shape: bf16[8,8,128], index: 0, kind: input, shape index: {}]   ;;  %s7157_s2 = inlined_call_operand.vmem [shape: bf16[128,512], index: 2, kind: input, shape index: {}]   ;;  %s7158_s3 = inlined_call_operand.vmem [shape: f32[1,512], index: 3, kind: input, shape index: {}]   ;;  %s7159_s4 = inlined_call_operand.vmem [shape: bf16[128,512], index: 4, kind: input, shape index: {}]   ;;  %s7160_s5 = inlined_call_operand.vmem [shape: bf16[128,512], index: 5, kind: input, shape index: {}]   ;;  %s7161_s8 = inlined_call_operand.vmem [shape: f32[2,8,128], index: 8, kind: output, shape index: {1}]   ;;  %s7162_s7 = inlined_call_operand.vmem [shape: f32[2,8,128], index: 7, kind: output, shape index: {0}]   ;;  %s7163_s6 = inlined_call_operand.vmem [shape: f32[1,512], index: 6, kind: input, shape index: {}]  }
   0x1   :  { %v4827_v0 = vld [vmem:[%s7155_s1 + $0x4] ss:$16 sps:$4 sm:$0xff]   ;;  %307 = vmatprep.mubr.bf16.mxu0 %v7168_v1  ;;  %380 = vmatprep.mubr.bf16.mxu1 %v7168_v1  ;;  %v4829_v2 = vld [vmem:[%s7155_s1 + $0xc] ss:$16 sps:$4 sm:$0xff]   ;;  %v4831_v3 = vld [vmem:[%s7155_s1] ss:$16 sps:$4 sm:$0xff]  }
   0x2   :  { %275 = vmatprep.subr.bf16.mxu0 %v4827_v0  ;;  %v4832_v4 = vld [vmem:[%s7155_s1 + $0x8] ss:$16 sps:$4 sm:$0xff]   ;;  %348 = vmatprep.subr.bf16.mxu1 %v4829_v2  ;;  %v4833_v5 = vld [vmem:[%s7155_s1 + $0x24] ss:$16 sps:$4 sm:$0xff]   ;;  %v4835_v6 = vld [vmem:[%s7155_s1 + $0x2c] ss:$16 sps:$4 sm:$0xff]  }
   0x3   :  { %276 = vmatpush1.bf16.msra.mxu0 %v4831_v3  ;;  %349 = vmatpush1.bf16.msra.mxu1 %v4832_v4  ;;  %v4837_v7 = vld [vmem:[%s7155_s1 + $0x20] ss:$16 sps:$4 sm:$0xff]   ;;  %v4838_v8 = vld [vmem:[%s7155_s1 + $0x28] ss:$16 sps:$4 sm:$0xff]   ;;  %v4839_v9 = vld [vmem:[%s7155_s1 + $0x44] ss:$16 sps:$4 sm:$0xff]  }
   0x4   :  { %277 = vmatprep.subr.bf16.mxu0 %v4833_v5  ;;  %350 = vmatprep.subr.bf16.mxu1 %v4835_v6  ;;  %v4841_v10 = vld [vmem:[%s7155_s1 + $0x4c] ss:$16 sps:$4 sm:$0xff]   ;;  %v4843_v11 = vld [vmem:[%s7155_s1 + $0x40] ss:$16 sps:$4 sm:$0xff]   ;;  %v4844_v12 = vld [vmem:[%s7155_s1 + $0x48] ss:$16 sps:$4 sm:$0xff]   ;;  %v71_v6 = vlaneseq }
   0x5   :  { %v4845_v13 = vld [vmem:[%s7155_s1 + $0x64] ss:$16 sps:$4 sm:$0xff]   ;;  %v4847_v14 = vld [vmem:[%s7155_s1 + $0x6c] ss:$16 sps:$4 sm:$0xff]   ;;  %v4849_v15 = vld [vmem:[%s7155_s1 + $0x60] ss:$16 sps:$4 sm:$0xff]  }
   0x6   :  { %v4850_v16 = vld [vmem:[%s7155_s1 + $0x68] ss:$16 sps:$4 sm:$0xff]   ;;  %v4851_v17 = vld [vmem:[%s7155_s1 + $0x84] ss:$16 sps:$4 sm:$0xff]   ;;  %v4853_v18 = vld [vmem:[%s7155_s1 + $0x8c] ss:$16 sps:$4 sm:$0xff]  }
   0x7   :  { %278 = vmatpush1.bf16.msra.mxu0 %v4837_v7  ;;  %351 = vmatpush1.bf16.msra.mxu1 %v4838_v8  ;;  %v4855_v19 = vld [vmem:[%s7155_s1 + $0x80] ss:$16 sps:$4 sm:$0xff]   ;;  %v4856_v20 = vld [vmem:[%s7155_s1 + $0x88] ss:$16 sps:$4 sm:$0xff]   ;;  %v4857_v21 = vld [vmem:[%s7155_s1 + $0xa4] ss:$16 sps:$4 sm:$0xff]  }
   0x8   :  { %279 = vmatprep.subr.bf16.mxu0 %v4839_v9  ;;  %352 = vmatprep.subr.bf16.mxu1 %v4841_v10  ;;  %v4859_v22 = vld [vmem:[%s7155_s1 + $0xac] ss:$16 sps:$4 sm:$0xff]   ;;  %v4861_v23 = vld [vmem:[%s7155_s1 + $0xa0] ss:$16 sps:$4 sm:$0xff]   ;;  %v4862_v24 = vld [vmem:[%s7155_s1 + $0xa8] ss:$16 sps:$4 sm:$0xff]  }
   0x9   :  { %v4863_v25 = vld [vmem:[%s7155_s1 + $0xc4] ss:$16 sps:$4 sm:$0xff]   ;;  %v4865_v26 = vld [vmem:[%s7155_s1 + $0xcc] ss:$16 sps:$4 sm:$0xff]   ;;  %v4867_v27 = vld [vmem:[%s7155_s1 + $0xc0] ss:$16 sps:$4 sm:$0xff]  }
   0xa   :  { %v4868_v28 = vld [vmem:[%s7155_s1 + $0xc8] ss:$16 sps:$4 sm:$0xff]   ;;  %v4869_v29 = vld [vmem:[%s7155_s1 + $0xe4] ss:$16 sps:$4 sm:$0xff]   ;;  %v4871_v30 = vld [vmem:[%s7155_s1 + $0xec] ss:$16 sps:$4 sm:$0xff]  }
   0xb   :  { %280 = vmatpush1.bf16.msra.mxu0 %v4843_v11  ;;  %353 = vmatpush1.bf16.msra.mxu1 %v4844_v12  ;;  %v4873_v31 = vld [vmem:[%s7155_s1 + $0xe0] ss:$16 sps:$4 sm:$0xff]   ;;  %v4874_v32 = vld [vmem:[%s7155_s1 + $0xe8] ss:$16 sps:$4 sm:$0xff]   ;;  %v5510_v33 = vld [vmem:[%s7157_s2 + $0x4] ss:$16 sps:$4 sm:$0xff]  }
   0xc   :  { %281 = vmatprep.subr.bf16.mxu0 %v4845_v13  ;;  %354 = vmatprep.subr.bf16.mxu1 %v4847_v14  ;;  %v5515_v34 = vld [vmem:[%s7157_s2 + $0xc] ss:$16 sps:$4 sm:$0xff]   ;;  %v4875_v35 = vld [vmem:[%s7156_s0] sm:$0xff]   ;;  %v5528_v37 = vld [vmem:[%s7157_s2 + $0x8] ss:$16 sps:$4 sm:$0xff]   ;;  %v5757_v7 = vshrl.u32 %v71_v6, 7 }
   0xd   :  { %v5523_v36 = vld [vmem:[%s7157_s2] ss:$16 sps:$4 sm:$0xff]   ;;  %v5535_v38 = vld [vmem:[%s7157_s2 + $0x24] ss:$16 sps:$4 sm:$0xff]   ;;  %v5540_v39 = vld [vmem:[%s7157_s2 + $0x2c] ss:$16 sps:$4 sm:$0xff]  }
   0xe   :  { %v5545_v40 = vld [vmem:[%s7157_s2 + $0x20] ss:$16 sps:$4 sm:$0xff]   ;;  %v5552_v41 = vld [vmem:[%s7157_s2 + $0x28] ss:$16 sps:$4 sm:$0xff]   ;;  %v5559_v42 = vld [vmem:[%s7157_s2 + $0x44] ss:$16 sps:$4 sm:$0xff]  }
   0xf   :  { %282 = vmatpush1.bf16.msra.mxu0 %v4849_v15  ;;  %355 = vmatpush1.bf16.msra.mxu1 %v4850_v16  ;;  %v5564_v43 = vld [vmem:[%s7157_s2 + $0x4c] ss:$16 sps:$4 sm:$0xff]   ;;  %v5574_v45 = vld [vmem:[%s7157_s2 + $0x40] ss:$16 sps:$4 sm:$0xff]   ;;  %v5579_v46 = vld [vmem:[%s7157_s2 + $0x48] ss:$16 sps:$4 sm:$0xff]  }
  0x10   :  { %283 = vmatprep.subr.bf16.mxu0 %v4851_v17  ;;  %356 = vmatprep.subr.bf16.mxu1 %v4853_v18  ;;  %v4888_v44 = vld [vmem:[%s7156_s0 + $0x8] sm:$0xff]   ;;  %v5586_v47 = vld [vmem:[%s7157_s2 + $0x64] ss:$16 sps:$4 sm:$0xff]   ;;  %v5598_v49 = vld [vmem:[%s7157_s2 + $0x60] ss:$16 sps:$4 sm:$0xff]   ;;  %7172 = vst [vmem:[#allocation4_spill] sm:$0xff] %v5757_v7 }
  0x11   :  { %v5593_v48 = vld [vmem:[%s7157_s2 + $0x6c] ss:$16 sps:$4 sm:$0xff]   ;;  %v5603_v50 = vld [vmem:[%s7157_s2 + $0x68] ss:$16 sps:$4 sm:$0xff]   ;;  %v5610_v51 = vld [vmem:[%s7157_s2 + $0x84] ss:$16 sps:$4 sm:$0xff]  }
  0x12   :  { %v5617_v52 = vld [vmem:[%s7157_s2 + $0x8c] ss:$16 sps:$4 sm:$0xff]   ;;  %v4901_v53 = vld [vmem:[%s7156_s0 + $0x10] sm:$0xff]   ;;  %v5632_v55 = vld [vmem:[%s7157_s2 + $0x88] ss:$16 sps:$4 sm:$0xff]   ;;  %v7166_v8 = vsub.s32 2, %v5757_v7 }
  0x13   :  { %284 = vmatpush1.bf16.msra.mxu0 %v4855_v19  ;;  %357 = vmatpush1.bf16.msra.mxu1 %v4856_v20  ;;  %v5627_v54 = vld [vmem:[%s7157_s2 + $0x80] ss:$16 sps:$4 sm:$0xff]   ;;  %v5637_v56 = vld [vmem:[%s7157_s2 + $0xa4] ss:$16 sps:$4 sm:$0xff]   ;;  %v5642_v57 = vld [vmem:[%s7157_s2 + $0xac] ss:$16 sps:$4 sm:$0xff]  }
  0x14   :  { %285 = vmatprep.subr.bf16.mxu0 %v4857_v21  ;;  %358 = vmatprep.subr.bf16.mxu1 %v4859_v22  ;;  %v5651_v58 = vld [vmem:[%s7157_s2 + $0xa0] ss:$16 sps:$4 sm:$0xff]   ;;  %v5656_v59 = vld [vmem:[%s7157_s2 + $0xa8] ss:$16 sps:$4 sm:$0xff]   ;;  %v5661_v60 = vld [vmem:[%s7157_s2 + $0xc4] ss:$16 sps:$4 sm:$0xff]  }
  0x15   :  { %v5666_v61 = vld [vmem:[%s7157_s2 + $0xcc] ss:$16 sps:$4 sm:$0xff]   ;;  %v5680_v63 = vld [vmem:[%s7157_s2 + $0xc0] ss:$16 sps:$4 sm:$0xff]   ;;  %v5685_v0 = vld [vmem:[%s7157_s2 + $0xc8] ss:$16 sps:$4 sm:$0xff]  }
  0x16   :  { %v4914_v62 = vld [vmem:[%s7156_s0 + $0x18] sm:$0xff]   ;;  %v5690_v2 = vld [vmem:[%s7157_s2 + $0xe4] ss:$16 sps:$4 sm:$0xff]   ;;  %v5706_v4 = vld [vmem:[%s7157_s2 + $0xe0] ss:$16 sps:$4 sm:$0xff]   ;;  %v7164_v9 = vsub.s32 3, %v5757_v7 }
  0x17   :  { %286 = vmatpush1.bf16.msra.mxu0 %v4861_v23  ;;  %359 = vmatpush1.bf16.msra.mxu1 %v4862_v24  ;;  %v5699_v3 = vld [vmem:[%s7157_s2 + $0xec] ss:$16 sps:$4 sm:$0xff]   ;;  %v5711_v5 = vld [vmem:[%s7157_s2 + $0xe8] ss:$16 sps:$4 sm:$0xff]   ;;  %v7167_v10 = vsub.s32 0, %v5757_v7  ;;  %v7165_v12 = vsub.s32 1, %v5757_v7 }
  0x18   :  { %287 = vmatprep.subr.bf16.mxu0 %v4863_v25  ;;  %360 = vmatprep.subr.bf16.mxu1 %v4865_v26  ;;  %v69_v11 = vld [vmem:[%s7158_s3] sm:$0xf] }
  0x19   :  { %v5768_v13 = vrot.slane %v69_v11, %v7166_v8  ;;  %v5776_v16 = vrot.slane %v69_v11, %v7164_v9  ;;  %v74_v17 = vrot.slane %v69_v11, %v7167_v10  ;;  %v78_v20 = vrot.slane %v69_v11, %v7165_v12 }
  0x1b   :  { %288 = vmatpush1.bf16.msra.mxu0 %v4867_v27  ;;  %361 = vmatpush1.bf16.msra.mxu1 %v4868_v28 }
  0x1c   :  { %289 = vmatprep.subr.bf16.mxu0 %v4869_v29  ;;  %362 = vmatprep.subr.bf16.mxu1 %v4871_v30 }
  0x1f   :  { %290 = vmatpush1.bf16.msra.mxu0 %v4873_v31  ;;  %363 = vmatpush1.bf16.msra.mxu1 %v4874_v32 }
  0x20   :  { %649 = vmatprep.subr.bf16.mxu0 %v5510_v33  ;;  %690 = vmatprep.subr.bf16.mxu1 %v5515_v34 }
  0x22   :  { %308 = vmatmul.mubr.bf16.vlgmr.msra.gmra.mrb[0].mxu0 %v4875_v35  ;;  %381 = vmatmul.mubr.bf16.vlgmr.msra.gmra.mrb[0].mxu1 %v4875_v35 }
  0x23   :  { %650 = vmatpush1.bf16.msra.mxu0 %v5523_v36  ;;  %691 = vmatpush1.bf16.msra.mxu1 %v5528_v37 }
  0x24   :  { %651 = vmatprep.subr.bf16.mxu0 %v5535_v38  ;;  %692 = vmatprep.subr.bf16.mxu1 %v5540_v39 }
  0x25   :  { %317 = vmatprep.mubr.bf16.mxu0 %v7168_v1  ;;  %390 = vmatprep.mubr.bf16.mxu1 %v7168_v1 }
  0x27   :  { %652 = vmatpush1.bf16.msra.mxu0 %v5545_v40  ;;  %693 = vmatpush1.bf16.msra.mxu1 %v5552_v41 }
  0x28   :  { %653 = vmatprep.subr.bf16.mxu0 %v5559_v42  ;;  %694 = vmatprep.subr.bf16.mxu1 %v5564_v43 }
  0x2a   :  { %318 = vmatmul.mubr.bf16.gmra.mrb[4].mxu0 %v4888_v44  ;;  %391 = vmatmul.mubr.bf16.gmra.mrb[4].mxu1 %v4888_v44 }
  0x2b   :  { %654 = vmatpush1.bf16.msra.mxu0 %v5574_v45  ;;  %695 = vmatpush1.bf16.msra.mxu1 %v5579_v46 }
  0x2c   :  { %655 = vmatprep.subr.bf16.mxu0 %v5586_v47  ;;  %696 = vmatprep.subr.bf16.mxu1 %v5593_v48 }
  0x2d   :  { %327 = vmatprep.mubr.bf16.mxu0 %v7168_v1  ;;  %400 = vmatprep.mubr.bf16.mxu1 %v7168_v1 }
  0x2f   :  { %656 = vmatpush1.bf16.msra.mxu0 %v5598_v49  ;;  %697 = vmatpush1.bf16.msra.mxu1 %v5603_v50 }
  0x30   :  { %657 = vmatprep.subr.bf16.mxu0 %v5610_v51  ;;  %698 = vmatprep.subr.bf16.mxu1 %v5617_v52 }
  0x32   :  { %328 = vmatmul.mubr.bf16.gmra.mrb[8].mxu0 %v4901_v53  ;;  %401 = vmatmul.mubr.bf16.gmra.mrb[8].mxu1 %v4901_v53 }
  0x33   :  { %658 = vmatpush1.bf16.msra.mxu0 %v5627_v54  ;;  %699 = vmatpush1.bf16.msra.mxu1 %v5632_v55 }
  0x34   :  { %659 = vmatprep.subr.bf16.mxu0 %v5637_v56  ;;  %700 = vmatprep.subr.bf16.mxu1 %v5642_v57 }
  0x35   :  { %337 = vmatprep.mubr.bf16.mxu0 %v7168_v1  ;;  %410 = vmatprep.mubr.bf16.mxu1 %v7168_v1 }
  0x37   :  { %660 = vmatpush1.bf16.msra.mxu0 %v5651_v58  ;;  %701 = vmatpush1.bf16.msra.mxu1 %v5656_v59 }
  0x38   :  { %661 = vmatprep.subr.bf16.mxu0 %v5661_v60  ;;  %702 = vmatprep.subr.bf16.mxu1 %v5666_v61 }
  0x3a   :  { %338 = vmatmul.mubr.bf16.gmra.mrb[12].mxu0 %v4914_v62  ;;  %411 = vmatmul.mubr.bf16.gmra.mrb[12].mxu1 %v4914_v62 }
  0x3b   :  { %662 = vmatpush1.bf16.msra.mxu0 %v5680_v63  ;;  %703 = vmatpush1.bf16.msra.mxu1 %v5685_v0 }
  0x3c   :  { %663 = vmatprep.subr.bf16.mxu0 %v5690_v2  ;;  %704 = vmatprep.subr.bf16.mxu1 %v5699_v3 }
  0x3d   :  { %681 = vmatprep.mubr.bf16.mxu0 %v7168_v1  ;;  %722 = vmatprep.mubr.bf16.mxu1 %v7168_v1 }
  0x3f   :  { %664 = vmatpush1.bf16.msra.mxu0 %v5706_v4  ;;  %705 = vmatpush1.bf16.msra.mxu1 %v5711_v5 }
  0x40   :  { %954 = vmatprep.subr.bf16.mxu0 %v5510_v33  ;;  %995 = vmatprep.subr.bf16.mxu1 %v5515_v34 }
  0x42   :  { %682 = vmatmul.mubr.bf16.vlgmr.msra.gmra.mrb[16].mxu0 %v7168_v1  ;;  %723 = vmatmul.mubr.bf16.vlgmr.msra.gmra.mrb[16].mxu1 %v7168_v1 }
  0x43   :  { %955 = vmatpush1.bf16.msra.mxu0 %v5523_v36  ;;  %996 = vmatpush1.bf16.msra.mxu1 %v5528_v37 }
  0x44   :  { %956 = vmatprep.subr.bf16.mxu0 %v5535_v38  ;;  %997 = vmatprep.subr.bf16.mxu1 %v5540_v39 }
  0x45   :  { %986 = vmatprep.mubr.bf16.mxu0 %v7168_v1  ;;  %1027 = vmatprep.mubr.bf16.mxu1 %v7168_v1 }
  0x47   :  { %957 = vmatpush1.bf16.msra.mxu0 %v5545_v40  ;;  %998 = vmatpush1.bf16.msra.mxu1 %v5552_v41 }
  0x48   :  { %958 = vmatprep.subr.bf16.mxu0 %v5559_v42  ;;  %999 = vmatprep.subr.bf16.mxu1 %v5564_v43 }
  0x4b   :  { %959 = vmatpush1.bf16.msra.mxu0 %v5574_v45  ;;  %1000 = vmatpush1.bf16.msra.mxu1 %v5579_v46 }
  0x4c   :  { %960 = vmatprep.subr.bf16.mxu0 %v5586_v47  ;;  %1001 = vmatprep.subr.bf16.mxu1 %v5593_v48 }
  0x4f   :  { %961 = vmatpush1.bf16.msra.mxu0 %v5598_v49  ;;  %1002 = vmatpush1.bf16.msra.mxu1 %v5603_v50 }
  0x50   :  { %962 = vmatprep.subr.bf16.mxu0 %v5610_v51  ;;  %1003 = vmatprep.subr.bf16.mxu1 %v5617_v52 }
  0x53   :  { %963 = vmatpush1.bf16.msra.mxu0 %v5627_v54  ;;  %1004 = vmatpush1.bf16.msra.mxu1 %v5632_v55 }
  0x54   :  { %964 = vmatprep.subr.bf16.mxu0 %v5637_v56  ;;  %1005 = vmatprep.subr.bf16.mxu1 %v5642_v57 }
  0x57   :  { %965 = vmatpush1.bf16.msra.mxu0 %v5651_v58  ;;  %1006 = vmatpush1.bf16.msra.mxu1 %v5656_v59 }
  0x58   :  { %966 = vmatprep.subr.bf16.mxu0 %v5661_v60  ;;  %1007 = vmatprep.subr.bf16.mxu1 %v5666_v61 }
  0x5b   :  { %967 = vmatpush1.bf16.msra.mxu0 %v5680_v63  ;;  %1008 = vmatpush1.bf16.msra.mxu1 %v5685_v0 }
  0x5c   :  { %968 = vmatprep.subr.bf16.mxu0 %v5690_v2  ;;  %1009 = vmatprep.subr.bf16.mxu1 %v5699_v3 }
  0x5f   :  { %969 = vmatpush1.bf16.msra.mxu0 %v5706_v4  ;;  %1010 = vmatpush1.bf16.msra.mxu1 %v5711_v5 }
  0x60   :  { %1260 = vmatprep.subr.bf16.mxu0 %v5510_v33  ;;  %1301 = vmatprep.subr.bf16.mxu1 %v5515_v34 }
  0xf5   :  { %v5770_v14 = vpop.f32.mrb[0].mxu0  ;;  %v5772_v15 = vpop.f32.mrb[0].mxu1 }
  0xf6   :  { %v311_v18 = vpop.f32.mrb[1].mxu0  ;;  %v384_v19 = vpop.f32.mrb[1].mxu1 }
  0xf7   :  { %v313_v21 = vpop.f32.mrb[2].mxu0  ;;  %v386_v22 = vpop.f32.mrb[2].mxu1 }
  0xf8   :  { %v5782_v23 = vadd.f32 %v313_v21, %v74_v17  ;;  %v315_v24 = vpop.f32.mrb[3].mxu0  ;;  %v5785_v25 = vadd.f32 %v386_v22, %v5768_v13  ;;  %v388_v26 = vpop.f32.mrb[3].mxu1 }
  0xf9   :  { %v5787_v27 = vadd.f32 %v315_v24, %v78_v20  ;;  %v5790_v28 = vadd.f32 %v388_v26, %v5776_v16 }
  0xfd   :  { %v319_v29 = vpop.f32.mrb[4].mxu0  ;;  %v392_v30 = vpop.f32.mrb[4].mxu1 }
  0xfe   :  { %v5792_v31 = vadd.f32 %v319_v29, %v74_v17  ;;  %v321_v32 = vpop.f32.mrb[5].mxu0  ;;  %v5795_v35 = vadd.f32 %v392_v30, %v5768_v13  ;;  %v394_v44 = vpop.f32.mrb[5].mxu1 }
  0xff   :  { %v5797_v53 = vadd.f32 %v321_v32, %v78_v20  ;;  %v323_v62 = vpop.f32.mrb[6].mxu0  ;;  %v5800_v6 = vadd.f32 %v394_v44, %v5776_v16  ;;  %v396_v11 = vpop.f32.mrb[6].mxu1 }
 0x100   :  { %v5802_v21 = vadd.f32 %v323_v62, %v74_v17  ;;  %v325_v22 = vpop.f32.mrb[7].mxu0  ;;  %v5805_v24 = vadd.f32 %v396_v11, %v5768_v13  ;;  %v398_v26 = vpop.f32.mrb[7].mxu1 }
 0x101   :  { %7173 = vst [vmem:[#allocation5_spill] sm:$0xff] %v5800_v6  ;;  %v5807_v29 = vadd.f32 %v325_v22, %v78_v20  ;;  %v5810_v30 = vadd.f32 %v398_v26, %v5776_v16 }
 0x102   :  { %7174 = vst [vmem:[#allocation6_spill] sm:$0xff] %v5802_v21  ;;  %7175 = vst [vmem:[#allocation7_spill] sm:$0xff] %v5805_v24 }
 0x103   :  { %7176 = vst [vmem:[#allocation8_spill] sm:$0xff] %v5807_v29  ;;  %7177 = vst [vmem:[#allocation9_spill] sm:$0xff] %v5810_v30 }
 0x105   :  { %v329_v9 = vpop.f32.mrb[8].mxu0  ;;  %v402_v32 = vpop.f32.mrb[8].mxu1 }
 0x106   :  { %v5812_v12 = vadd.f32 %v329_v9, %v74_v17  ;;  %v331_v8 = vpop.f32.mrb[9].mxu0  ;;  %v5815_v44 = vadd.f32 %v402_v32, %v5768_v13  ;;  %v404_v62 = vpop.f32.mrb[9].mxu1 }
 0x107   :  { %v5817_v10 = vadd.f32 %v331_v8, %v78_v20  ;;  %v333_v1 = vpop.f32.mrb[10].mxu0  ;;  %v5820_v11 = vadd.f32 %v404_v62, %v5776_v16  ;;  %v406_v22 = vpop.f32.mrb[10].mxu1 }
 0x108   :  { %7178 = vst [vmem:[#allocation10_spill] sm:$0xff] %v5812_v12  ;;  %7179 = vst [vmem:[#allocation11_spill] sm:$0xff] %v5815_v44  ;;  %v5822_v7 = vadd.f32 %v333_v1, %v74_v17  ;;  %v335_v26 = vpop.f32.mrb[11].mxu0  ;;  %v5825_v30 = vadd.f32 %v406_v22, %v5768_v13  ;;  %v408_v9 = vpop.f32.mrb[11].mxu1 }
 0x109   :  { %7180 = vst [vmem:[#allocation12_spill] sm:$0xff] %v5817_v10  ;;  %7181 = vst [vmem:[#allocation13_spill] sm:$0xff] %v5820_v11  ;;  %v5827_v12 = vadd.f32 %v335_v26, %v78_v20  ;;  %v5830_v32 = vadd.f32 %v408_v9, %v5776_v16 }
 0x10a   :  { %7182 = vst [vmem:[#allocation14_spill] sm:$0xff] %v5822_v7  ;;  %7183 = vst [vmem:[#allocation15_spill] sm:$0xff] %v5825_v30 }
 0x10b   :  { %7184 = vst [vmem:[#allocation16_spill] sm:$0xff] %v5827_v12  ;;  %7185 = vst [vmem:[#allocation17_spill] sm:$0xff] %v5830_v32 }
 0x10d   :  { %v339_v44 = vpop.f32.mrb[12].mxu0  ;;  %v412_v8 = vpop.f32.mrb[12].mxu1 }
 0x10e   :  { %v5832_v10 = vadd.f32 %v339_v44, %v74_v17  ;;  %v341_v29 = vpop.f32.mrb[13].mxu0  ;;  %v5835_v62 = vadd.f32 %v412_v8, %v5768_v13  ;;  %v414_v1 = vpop.f32.mrb[13].mxu1 }
 0x10f   :  { %v5837_v7 = vadd.f32 %v341_v29, %v78_v20  ;;  %v343_v11 = vpop.f32.mrb[14].mxu0  ;;  %v5840_v22 = vadd.f32 %v414_v1, %v5776_v16  ;;  %v416_v26 = vpop.f32.mrb[14].mxu1  ;;  %v310_v29 = vadd.f32 %v5770_v14, %v74_v17  ;;  %v312_v1 = vadd.f32 %v311_v18, %v78_v20 }
 0x110   :  { %7186 = vst [vmem:[#allocation18_spill] sm:$0xff] %v5832_v10  ;;  %7187 = vst [vmem:[#allocation19_spill] sm:$0xff] %v5835_v62  ;;  %v5842_v12 = vadd.f32 %v343_v11, %v74_v17  ;;  %v345_v9 = vpop.f32.mrb[15].mxu0  ;;  %v5845_v32 = vadd.f32 %v416_v26, %v5768_v13  ;;  %v418_v44 = vpop.f32.mrb[15].mxu1 }
 0x111   :  { %7188 = vst [vmem:[#allocation20_spill] sm:$0xff] %v5837_v7  ;;  %7189 = vst [vmem:[#allocation21_spill] sm:$0xff] %v5840_v22  ;;  %v5847_v10 = vadd.f32 %v345_v9, %v78_v20  ;;  %v5850_v8 = vadd.f32 %v418_v44, %v5776_v16  ;;  %v383_v7 = vadd.f32 %v5772_v15, %v5768_v13 }
 0x112   :  { %7190 = vst [vmem:[#allocation22_spill] sm:$0xff] %v5842_v12  ;;  %7191 = vst [vmem:[#allocation23_spill] sm:$0xff] %v5845_v32  ;;  %v385_v22 = vadd.f32 %v384_v19, %v5776_v16 }
 0x113   :  { %7192 = vst [vmem:[#allocation24_spill] sm:$0xff] %v5847_v10  ;;  %7193 = vst [vmem:[#allocation25_spill] sm:$0xff] %v5850_v8 }
 0x115   :  { %v683_v11 = vpop.f32.mrb[16].mxu0  ;;  %v724_v12 = vpop.f32.mrb[16].mxu1 }
 0x116   :  { %v684_v62 = vadd.f32 %v683_v11, %v310_v29  ;;  %v725_v30 = vadd.f32 %v724_v12, %v383_v7  ;;  %v685_v26 = vpop.f32.mrb[17].mxu0  ;;  %v726_v32 = vpop.f32.mrb[17].mxu1 }
 0x117   :  { %v686_v24 = vadd.f32 %v685_v26, %v312_v1  ;;  %v727_v9 = vadd.f32 %v726_v32, %v385_v22  ;;  %v687_v10 = vpop.f32.mrb[18].mxu0  ;;  %v728_v21 = vpop.f32.mrb[18].mxu1 }
 0x118   :  { %v4484_v44 = vmul.f32 -1.442695, %v684_v62  ;;  %v688_v8 = vpop.f32.mrb[19].mxu0  ;;  %v729_v6 = vpop.f32.mrb[19].mxu1  ;;  %v4486_v13 = vmul.f32 -1.442695, %v725_v30 }
 0x119   :  { %v4485_v14 = vmul.f32 -1.442695, %v686_v24  ;;  %v7194_v8 = vmov 0  }
 0x11a   :  { %5075 = vpow2.f32 %v4484_v44 }
 0x11b   :  { %5077 = vpow2.f32 %v4485_v14 }
 0x11c   :  { %5079 = vtanh.f32 %v727_v9 }
 0x11d   :  { %5081 = vpow2.f32 %v4486_v13 }
 0x124   :  { %v5076_v15 = vpop.eup %5075 }
 0x125   :  { %v740_v17 = vadd.f32 1.0, %v5076_v15  ;;  %v5078_v16 = vpop.eup %5077 }
 0x126   :  { %v741_v7 = vadd.f32 1.0, %v5078_v16  ;;  %v5080_v12 = vpop.eup %5079 }
 0x127   :  { %5083 = vrcp.f32 %v740_v17  ;;  %v5082_v18 = vpop.eup %5081 }
 0x128   :  { %5085 = vrcp.f32 %v741_v7  ;;  %v742_v21 = vadd.f32 1.0, %v5082_v18 }
 0x12a   :  { %5087 = vrcp.f32 %v742_v21 }
 0x131   :  { %v5084_v19 = vpop.eup %5083 }
 0x132   :  { %v751_v10 = vmul.f32 %v5084_v19, %v5080_v12  ;;  %v5086_v20 = vpop.eup %5085 }
 0x133   :  { %v750_v32 = vmul.f32 0.0, %v5086_v20 }
 0x134   :  { %v5088_v24 = vpop.eup %5087 }
 0x135   :  { %v5856_v6 = vadd.f32 %v751_v10, %v750_v32 }
 0x137   :  { %5089 = vtanh.f32 %v5856_v6 }
 0x141   :  { %v5090_v30 = vpop.eup %5089 }
 0x142   :  { %v754_v62 = vmul.f32 %v5090_v30, %v5088_v24 }
 0x144   :  { %v755_v22 = vpack.c.bf16 %v754_v62, %v754_v62 }
 0x146   :  { %756 = vst [vmem:[#allocation2] sm:$0xf] %v755_v22  ;;  %987 = vmatmul.mubr.bf16.vlgmr.msra.gmra.mrb[20].mxu0 %v755_v22  ;;  %1028 = vmatmul.mubr.bf16.vlgmr.msra.gmra.mrb[20].mxu1 %v755_v22 }
 0x147   :  { %1261 = vmatpush1.bf16.msra.mxu0 %v5523_v36  ;;  %1302 = vmatpush1.bf16.msra.mxu1 %v5528_v37 }
 0x148   :  { %1262 = vmatprep.subr.bf16.mxu0 %v5535_v38  ;;  %1303 = vmatprep.subr.bf16.mxu1 %v5540_v39 }
 0x149   :  { %1292 = vmatprep.mubr.bf16.mxu0 %v7194_v8  ;;  %1333 = vmatprep.mubr.bf16.mxu1 %v7194_v8 }
 0x14b   :  { %1263 = vmatpush1.bf16.msra.mxu0 %v5545_v40  ;;  %1304 = vmatpush1.bf16.msra.mxu1 %v5552_v41 }
 0x14c   :  { %1264 = vmatprep.subr.bf16.mxu0 %v5559_v42  ;;  %1305 = vmatprep.subr.bf16.mxu1 %v5564_v43 }
 0x14f   :  { %1265 = vmatpush1.bf16.msra.mxu0 %v5574_v45  ;;  %1306 = vmatpush1.bf16.msra.mxu1 %v5579_v46 }
 0x150   :  { %1266 = vmatprep.subr.bf16.mxu0 %v5586_v47  ;;  %1307 = vmatprep.subr.bf16.mxu1 %v5593_v48 }
 0x153   :  { %1267 = vmatpush1.bf16.msra.mxu0 %v5598_v49  ;;  %1308 = vmatpush1.bf16.msra.mxu1 %v5603_v50 }
 0x154   :  { %1268 = vmatprep.subr.bf16.mxu0 %v5610_v51  ;;  %1309 = vmatprep.subr.bf16.mxu1 %v5617_v52 }
 0x157   :  { %1269 = vmatpush1.bf16.msra.mxu0 %v5627_v54  ;;  %1310 = vmatpush1.bf16.msra.mxu1 %v5632_v55 }
 0x158   :  { %1270 = vmatprep.subr.bf16.mxu0 %v5637_v56  ;;  %1311 = vmatprep.subr.bf16.mxu1 %v5642_v57 }
 0x15b   :  { %1271 = vmatpush1.bf16.msra.mxu0 %v5651_v58  ;;  %1312 = vmatpush1.bf16.msra.mxu1 %v5656_v59 }
 0x15c   :  { %1272 = vmatprep.subr.bf16.mxu0 %v5661_v60  ;;  %1313 = vmatprep.subr.bf16.mxu1 %v5666_v61 }
 0x15f   :  { %1273 = vmatpush1.bf16.msra.mxu0 %v5680_v63  ;;  %1314 = vmatpush1.bf16.msra.mxu1 %v5685_v0 }
 0x160   :  { %1274 = vmatprep.subr.bf16.mxu0 %v5690_v2  ;;  %1315 = vmatprep.subr.bf16.mxu1 %v5699_v3 }
 0x163   :  { %1275 = vmatpush1.bf16.msra.mxu0 %v5706_v4  ;;  %1316 = vmatpush1.bf16.msra.mxu1 %v5711_v5 }
 0x164   :  { %1566 = vmatprep.subr.bf16.mxu0 %v5510_v33  ;;  %1607 = vmatprep.subr.bf16.mxu1 %v5515_v34 }
 0x219   :  { %v988_v29 = vpop.f32.mrb[20].mxu0  ;;  %v1029_v1 = vpop.f32.mrb[20].mxu1 }
 0x21a   :  { %v989_v11 = vadd.f32 %v988_v29, %v5782_v23  ;;  %v1030_v26 = vadd.f32 %v1029_v1, %v5785_v25  ;;  %v990_v9 = vpop.f32.mrb[21].mxu0  ;;  %v1031_v44 = vpop.f32.mrb[21].mxu1 }
 0x21b   :  { %v991_v14 = vadd.f32 %v990_v9, %v5787_v27  ;;  %v1032_v13 = vadd.f32 %v1031_v44, %v5790_v28  ;;  %v992_v15 = vpop.f32.mrb[22].mxu0  ;;  %v1033_v17 = vpop.f32.mrb[22].mxu1  ;;  %v5970_v9 = vld [vmem:[%s7157_s2 + $0x24] ss:$16 sps:$4 sm:$0xff]   ;;  %v5975_v44 = vld [vmem:[%s7157_s2 + $0x2c] ss:$16 sps:$4 sm:$0xff]  }
 0x21c   :  { %v4519_v16 = vmul.f32 -1.442695, %v989_v11  ;;  %v993_v7 = vpop.f32.mrb[23].mxu0  ;;  %v1034_v12 = vpop.f32.mrb[23].mxu1  ;;  %v4521_v34 = vmul.f32 -1.442695, %v1030_v26 }
 0x21d   :  { %v4520_v33 = vmul.f32 -1.442695, %v991_v14  ;;  %v5956_v11 = vld [vmem:[%s7157_s2] ss:$16 sps:$4 sm:$0xff]   ;;  %v5961_v26 = vld [vmem:[%s7157_s2 + $0x8] ss:$16 sps:$4 sm:$0xff]  }
 0x21e   :  { %5091 = vpow2.f32 %v4519_v16  ;;  %v5980_v14 = vld [vmem:[%s7157_s2 + $0x20] ss:$16 sps:$4 sm:$0xff]   ;;  %v5994_v15 = vld [vmem:[%s7157_s2 + $0x44] ss:$16 sps:$4 sm:$0xff]   ;;  %v5999_v17 = vld [vmem:[%s7157_s2 + $0x4c] ss:$16 sps:$4 sm:$0xff]  }
 0x21f   :  { %5093 = vpow2.f32 %v4520_v33  ;;  %v6004_v16 = vld [vmem:[%s7157_s2 + $0x40] ss:$16 sps:$4 sm:$0xff]   ;;  %v6009_v7 = vld [vmem:[%s7157_s2 + $0x48] ss:$16 sps:$4 sm:$0xff]   ;;  %v6018_v12 = vld [vmem:[%s7157_s2 + $0x64] ss:$16 sps:$4 sm:$0xff]  }
 0x220   :  { %5095 = vtanh.f32 %v1032_v13  ;;  %v5985_v13 = vld [vmem:[%s7157_s2 + $0x28] ss:$16 sps:$4 sm:$0xff]   ;;  %v6023_v33 = vld [vmem:[%s7157_s2 + $0x6c] ss:$16 sps:$4 sm:$0xff]  }
 0x221   :  { %5097 = vpow2.f32 %v4521_v34  ;;  %v6028_v34 = vld [vmem:[%s7157_s2 + $0x60] ss:$16 sps:$4 sm:$0xff]  }
 0x228   :  { %v5092_v18 = vpop.eup %5091 }
 0x229   :  { %v1045_v19 = vadd.f32 1.0, %v5092_v18  ;;  %v5094_v23 = vpop.eup %5093  ;;  %v6033_v18 = vld [vmem:[%s7157_s2 + $0x68] ss:$16 sps:$4 sm:$0xff]  }
 0x22a   :  { %v1046_v25 = vadd.f32 1.0, %v5094_v23  ;;  %v5096_v27 = vpop.eup %5095  ;;  %v6047_v23 = vld [vmem:[%s7157_s2 + $0x8c] ss:$16 sps:$4 sm:$0xff]  }
 0x22b   :  { %5099 = vrcp.f32 %v1045_v19  ;;  %v5098_v10 = vpop.eup %5097  ;;  %v6042_v19 = vld [vmem:[%s7157_s2 + $0x84] ss:$16 sps:$4 sm:$0xff]  }
 0x22c   :  { %5101 = vrcp.f32 %v1046_v25  ;;  %v1047_v32 = vadd.f32 1.0, %v5098_v10  ;;  %v6052_v25 = vld [vmem:[%s7157_s2 + $0x80] ss:$16 sps:$4 sm:$0xff]  }
 0x22d   :  { %v6066_v10 = vld [vmem:[%s7157_s2 + $0xa0] ss:$16 sps:$4 sm:$0xff]  }
 0x22e   :  { %5103 = vrcp.f32 %v1047_v32  ;;  %v6086_v32 = vld [vmem:[%s7157_s2 + $0xc4] ss:$16 sps:$4 sm:$0xff]  }
 0x235   :  { %v5100_v28 = vpop.eup %5099 }
 0x236   :  { %v1056_v20 = vmul.f32 %v5100_v28, %v5096_v27  ;;  %v5102_v21 = vpop.eup %5101  ;;  %v6057_v27 = vld [vmem:[%s7157_s2 + $0x88] ss:$16 sps:$4 sm:$0xff]   ;;  %v6071_v28 = vld [vmem:[%s7157_s2 + $0xa4] ss:$16 sps:$4 sm:$0xff]  }
 0x237   :  { %v1055_v24 = vmul.f32 %v5102_v21, %v5856_v6  ;;  %v5951_v6 = vld [vmem:[%s7157_s2 + $0xc] ss:$16 sps:$4 sm:$0xff]  }
 0x238   :  { %v5104_v62 = vpop.eup %5103  ;;  %v6081_v21 = vld [vmem:[%s7157_s2 + $0xac] ss:$16 sps:$4 sm:$0xff]  }
 0x239   :  { %v5898_v30 = vadd.f32 %v1056_v20, %v1055_v24  ;;  %v6076_v20 = vld [vmem:[%s7157_s2 + $0xa8] ss:$16 sps:$4 sm:$0xff]   ;;  %v6092_v24 = vld [vmem:[%s7157_s2 + $0xcc] ss:$16 sps:$4 sm:$0xff]  }
 0x23b   :  { %5105 = vtanh.f32 %v5898_v30 }
 0x245   :  { %v5106_v22 = vpop.eup %5105 }
 0x246   :  { %v1059_v29 = vmul.f32 %v5106_v22, %v5104_v62  ;;  %v6105_v62 = vld [vmem:[%s7157_s2 + $0xc8] ss:$16 sps:$4 sm:$0xff]   ;;  %v6112_v22 = vld [vmem:[%s7157_s2 + $0xe4] ss:$16 sps:$4 sm:$0xff]  }
 0x248   :  { %v1060_v1 = vpack.c.bf16 %v1059_v29, %v1059_v29  ;;  %v6117_v29 = vld [vmem:[%s7157_s2 + $0xec] ss:$16 sps:$4 sm:$0xff]  }
 0x24a   :  { %1062 = vst [vmem:[#allocation2 + $0x4] sm:$0xf] %v1060_v1  ;;  %1293 = vmatmul.mubr.bf16.vlgmr.msra.gmra.mrb[24].mxu0 %v1060_v1  ;;  %1334 = vmatmul.mubr.bf16.vlgmr.msra.gmra.mrb[24].mxu1 %v1060_v1  ;;  %v6124_v1 = vld [vmem:[%s7157_s2 + $0xe0] ss:$16 sps:$4 sm:$0xff]  }
 0x24b   :  { %1567 = vmatpush1.bf16.msra.mxu0 %v5523_v36  ;;  %1608 = vmatpush1.bf16.msra.mxu1 %v5528_v37 }
 0x24c   :  { %1568 = vmatprep.subr.bf16.mxu0 %v5535_v38  ;;  %1609 = vmatprep.subr.bf16.mxu1 %v5540_v39 }
 0x24d   :  { %1598 = vmatprep.mubr.bf16.mxu0 %v7194_v8  ;;  %1639 = vmatprep.mubr.bf16.mxu1 %v7194_v8 }
 0x24f   :  { %1569 = vmatpush1.bf16.msra.mxu0 %v5545_v40  ;;  %1610 = vmatpush1.bf16.msra.mxu1 %v5552_v41 }
 0x250   :  { %1570 = vmatprep.subr.bf16.mxu0 %v5559_v42  ;;  %1611 = vmatprep.subr.bf16.mxu1 %v5564_v43  ;;  %v7195_v43 = vld [vmem:[#allocation5_spill] sm:$0xff] }
 0x253   :  { %1571 = vmatpush1.bf16.msra.mxu0 %v5574_v45  ;;  %1612 = vmatpush1.bf16.msra.mxu1 %v5579_v46 }
 0x254   :  { %1572 = vmatprep.subr.bf16.mxu0 %v5586_v47  ;;  %1613 = vmatprep.subr.bf16.mxu1 %v5593_v48 }
 0x257   :  { %1573 = vmatpush1.bf16.msra.mxu0 %v5598_v49  ;;  %1614 = vmatpush1.bf16.msra.mxu1 %v5603_v50 }
 0x258   :  { %1574 = vmatprep.subr.bf16.mxu0 %v5610_v51  ;;  %1615 = vmatprep.subr.bf16.mxu1 %v5617_v52 }
 0x25b   :  { %1575 = vmatpush1.bf16.msra.mxu0 %v5627_v54  ;;  %1616 = vmatpush1.bf16.msra.mxu1 %v5632_v55 }
 0x25c   :  { %1576 = vmatprep.subr.bf16.mxu0 %v5637_v56  ;;  %1617 = vmatprep.subr.bf16.mxu1 %v5642_v57 }
 0x25f   :  { %1577 = vmatpush1.bf16.msra.mxu0 %v5651_v58  ;;  %1618 = vmatpush1.bf16.msra.mxu1 %v5656_v59 }
 0x260   :  { %1578 = vmatprep.subr.bf16.mxu0 %v5661_v60  ;;  %1619 = vmatprep.subr.bf16.mxu1 %v5666_v61 }
 0x263   :  { %1579 = vmatpush1.bf16.msra.mxu0 %v5680_v63  ;;  %1620 = vmatpush1.bf16.msra.mxu1 %v5685_v0 }
 0x264   :  { %1580 = vmatprep.subr.bf16.mxu0 %v5690_v2  ;;  %1621 = vmatprep.subr.bf16.mxu1 %v5699_v3 }
 0x267   :  { %1581 = vmatpush1.bf16.msra.mxu0 %v5706_v4  ;;  %1622 = vmatpush1.bf16.msra.mxu1 %v5711_v5 }
 0x268   :  { %1913 = vmatprep.subr.bf16.mxu1 %v5951_v6 }
 0x31d   :  { %v1294_v36 = vpop.f32.mrb[24].mxu0  ;;  %v1335_v37 = vpop.f32.mrb[24].mxu1 }
 0x31e   :  { %v1295_v38 = vadd.f32 %v1294_v36, %v5792_v31  ;;  %v1336_v39 = vadd.f32 %v1335_v37, %v5795_v35  ;;  %v1296_v40 = vpop.f32.mrb[25].mxu0  ;;  %v1337_v41 = vpop.f32.mrb[25].mxu1  ;;  %v6129_v36 = vld [vmem:[%s7157_s2 + $0xe8] ss:$16 sps:$4 sm:$0xff]  }
 0x31f   :  { %v1297_v42 = vadd.f32 %v1296_v40, %v5797_v53  ;;  %v1338_v45 = vadd.f32 %v1337_v41, %v7195_v43  ;;  %v1298_v46 = vpop.f32.mrb[26].mxu0  ;;  %v1339_v47 = vpop.f32.mrb[26].mxu1  ;;  %v5946_v53 = vld [vmem:[%s7157_s2 + $0x4] ss:$16 sps:$4 sm:$0xff]   ;;  %v7197_v41 = vld [vmem:[#allocation7_spill] sm:$0xff] }
 0x320   :  { %v4554_v48 = vmul.f32 -1.442695, %v1295_v38  ;;  %v1299_v49 = vpop.f32.mrb[27].mxu0  ;;  %v1340_v50 = vpop.f32.mrb[27].mxu1  ;;  %v4556_v52 = vmul.f32 -1.442695, %v1336_v39  ;;  %1872 = vmatprep.subr.bf16.mxu0 %v5946_v53 }
 0x321   :  { %v4555_v51 = vmul.f32 -1.442695, %v1297_v42  ;;  %v7196_v39 = vld [vmem:[#allocation6_spill] sm:$0xff]  ;;  %v7198_v46 = vld [vmem:[#allocation8_spill] sm:$0xff] }
 0x322   :  { %5107 = vpow2.f32 %v4554_v48  ;;  %v7199_v48 = vld [vmem:[#allocation9_spill] sm:$0xff] }
 0x323   :  { %5109 = vpow2.f32 %v4555_v51 }
 0x324   :  { %5111 = vtanh.f32 %v1338_v45 }
 0x325   :  { %5113 = vpow2.f32 %v4556_v52 }
 0x32c   :  { %v5108_v54 = vpop.eup %5107 }
 0x32d   :  { %v1351_v55 = vadd.f32 1.0, %v5108_v54  ;;  %v5110_v56 = vpop.eup %5109 }
 0x32e   :  { %v1352_v57 = vadd.f32 1.0, %v5110_v56  ;;  %v5112_v58 = vpop.eup %5111 }
 0x32f   :  { %5115 = vrcp.f32 %v1351_v55  ;;  %v5114_v59 = vpop.eup %5113 }
 0x330   :  { %5117 = vrcp.f32 %v1352_v57  ;;  %v1353_v0 = vadd.f32 1.0, %v5114_v59 }
 0x332   :  { %5119 = vrcp.f32 %v1353_v0 }
 0x339   :  { %v5116_v60 = vpop.eup %5115 }
 0x33a   :  { %v1362_v61 = vmul.f32 %v5116_v60, %v5112_v58  ;;  %v5118_v63 = vpop.eup %5117 }
 0x33b   :  { %v1361_v2 = vmul.f32 %v5118_v63, %v5898_v30  ;;  %v6100_v30 = vld [vmem:[%s7157_s2 + $0xc0] ss:$16 sps:$4 sm:$0xff]  }
 0x33c   :  { %v5120_v4 = vpop.eup %5119 }
 0x33d   :  { %v5938_v3 = vadd.f32 %v1362_v61, %v1361_v2 }
 0x33f   :  { %5121 = vtanh.f32 %v5938_v3 }
 0x349   :  { %v5122_v5 = vpop.eup %5121 }
 0x34a   :  { %v1365_v31 = vmul.f32 %v5122_v5, %v5120_v4 }
 0x34c   :  { %v1366_v35 = vpack.c.bf16 %v1365_v31, %v1365_v31 }
 0x34e   :  { %1368 = vst [vmem:[#allocation2 + $0x8] sm:$0xf] %v1366_v35  ;;  %1599 = vmatmul.mubr.bf16.vlgmr.msra.gmra.mrb[28].mxu0 %v1366_v35  ;;  %1640 = vmatmul.mubr.bf16.vlgmr.msra.gmra.mrb[28].mxu1 %v1366_v35 }
 0x34f   :  { %1904 = vmatprep.mubr.bf16.mxu0 %v7194_v8  ;;  %1945 = vmatprep.mubr.bf16.mxu1 %v7194_v8 }
 0x350   :  { %1873 = vmatpush1.bf16.msra.mxu0 %v5956_v11  ;;  %1914 = vmatpush1.bf16.msra.mxu1 %v5961_v26 }
 0x351   :  { %1874 = vmatprep.subr.bf16.mxu0 %v5970_v9  ;;  %1915 = vmatprep.subr.bf16.mxu1 %v5975_v44 }
 0x354   :  { %1875 = vmatpush1.bf16.msra.mxu0 %v5980_v14  ;;  %1916 = vmatpush1.bf16.msra.mxu1 %v5985_v13 }
 0x355   :  { %1876 = vmatprep.subr.bf16.mxu0 %v5994_v15  ;;  %1917 = vmatprep.subr.bf16.mxu1 %v5999_v17 }
 0x358   :  { %1877 = vmatpush1.bf16.msra.mxu0 %v6004_v16  ;;  %1918 = vmatpush1.bf16.msra.mxu1 %v6009_v7 }
 0x359   :  { %1878 = vmatprep.subr.bf16.mxu0 %v6018_v12  ;;  %1919 = vmatprep.subr.bf16.mxu1 %v6023_v33 }
 0x35c   :  { %1879 = vmatpush1.bf16.msra.mxu0 %v6028_v34  ;;  %1920 = vmatpush1.bf16.msra.mxu1 %v6033_v18 }
 0x35d   :  { %1880 = vmatprep.subr.bf16.mxu0 %v6042_v19  ;;  %1921 = vmatprep.subr.bf16.mxu1 %v6047_v23 }
 0x360   :  { %1881 = vmatpush1.bf16.msra.mxu0 %v6052_v25  ;;  %1922 = vmatpush1.bf16.msra.mxu1 %v6057_v27 }
 0x361   :  { %1882 = vmatprep.subr.bf16.mxu0 %v6071_v28  ;;  %1923 = vmatprep.subr.bf16.mxu1 %v6081_v21 }
 0x364   :  { %1883 = vmatpush1.bf16.msra.mxu0 %v6066_v10  ;;  %1924 = vmatpush1.bf16.msra.mxu1 %v6076_v20 }
 0x365   :  { %1884 = vmatprep.subr.bf16.mxu0 %v6086_v32  ;;  %1925 = vmatprep.subr.bf16.mxu1 %v6092_v24 }
 0x368   :  { %1885 = vmatpush1.bf16.msra.mxu0 %v6100_v30  ;;  %1926 = vmatpush1.bf16.msra.mxu1 %v6105_v62 }
 0x369   :  { %1886 = vmatprep.subr.bf16.mxu0 %v6112_v22  ;;  %1927 = vmatprep.subr.bf16.mxu1 %v6117_v29 }
 0x36c   :  { %1887 = vmatpush1.bf16.msra.mxu0 %v6124_v1  ;;  %1928 = vmatpush1.bf16.msra.mxu1 %v6129_v36 }
 0x36d   :  { %2178 = vmatprep.subr.bf16.mxu0 %v5946_v53  ;;  %2219 = vmatprep.subr.bf16.mxu1 %v5951_v6 }
 0x421   :  { %v1600_v37 = vpop.f32.mrb[28].mxu0  ;;  %v1641_v38 = vpop.f32.mrb[28].mxu1 }
 0x422   :  { %v1601_v40 = vadd.f32 %v1600_v37, %v7196_v39  ;;  %v1642_v42 = vadd.f32 %v1641_v38, %v7197_v41  ;;  %v1602_v43 = vpop.f32.mrb[29].mxu0  ;;  %v1643_v45 = vpop.f32.mrb[29].mxu1 }
 0x423   :  { %v1603_v47 = vadd.f32 %v1602_v43, %v7198_v46  ;;  %v1644_v49 = vadd.f32 %v1643_v45, %v7199_v48  ;;  %v1604_v50 = vpop.f32.mrb[30].mxu0  ;;  %v1645_v51 = vpop.f32.mrb[30].mxu1  ;;  %v7200_v43 = vld [vmem:[#allocation10_spill] sm:$0xff]  ;;  %v7201_v46 = vld [vmem:[#allocation11_spill] sm:$0xff] }
 0x424   :  { %v4589_v52 = vmul.f32 -1.442695, %v1601_v40  ;;  %v1605_v54 = vpop.f32.mrb[31].mxu0  ;;  %v1646_v55 = vpop.f32.mrb[31].mxu1  ;;  %v4591_v57 = vmul.f32 -1.442695, %v1642_v42 }
 0x425   :  { %v4590_v56 = vmul.f32 -1.442695, %v1603_v47  ;;  %v7202_v50 = vld [vmem:[#allocation12_spill] sm:$0xff] }
 0x426   :  { %5123 = vpow2.f32 %v4589_v52  ;;  %v7203_v52 = vld [vmem:[#allocation13_spill] sm:$0xff] }
 0x427   :  { %5125 = vpow2.f32 %v4590_v56 }
 0x428   :  { %5127 = vtanh.f32 %v1644_v49 }
 0x429   :  { %5129 = vpow2.f32 %v4591_v57 }
 0x430   :  { %v5124_v58 = vpop.eup %5123 }
 0x431   :  { %v1657_v59 = vadd.f32 1.0, %v5124_v58  ;;  %v5126_v60 = vpop.eup %5125 }
 0x432   :  { %v1658_v61 = vadd.f32 1.0, %v5126_v60  ;;  %v5128_v63 = vpop.eup %5127 }
 0x433   :  { %5131 = vrcp.f32 %v1657_v59  ;;  %v5130_v0 = vpop.eup %5129 }
 0x434   :  { %5133 = vrcp.f32 %v1658_v61  ;;  %v1659_v31 = vadd.f32 1.0, %v5130_v0 }
 0x436   :  { %5135 = vrcp.f32 %v1659_v31 }
 0x43d   :  { %v5132_v2 = vpop.eup %5131 }
 0x43e   :  { %v1668_v4 = vmul.f32 %v5132_v2, %v5128_v63  ;;  %v5134_v5 = vpop.eup %5133 }
 0x43f   :  { %v1667_v35 = vmul.f32 %v5134_v5, %v5938_v3 }
 0x440   :  { %v5136_v38 = vpop.eup %5135 }
 0x441   :  { %v6142_v37 = vadd.f32 %v1668_v4, %v1667_v35 }
 0x443   :  { %5137 = vtanh.f32 %v6142_v37 }
 0x44d   :  { %v5138_v39 = vpop.eup %5137 }
 0x44e   :  { %v1671_v40 = vmul.f32 %v5138_v39, %v5136_v38 }
 0x450   :  { %v1672_v41 = vpack.c.bf16 %v1671_v40, %v1671_v40 }
 0x452   :  { %1674 = vst [vmem:[#allocation2 + $0xc] sm:$0xf] %v1672_v41  ;;  %1905 = vmatmul.mubr.bf16.vlgmr.msra.gmra.mrb[32].mxu0 %v1672_v41  ;;  %1946 = vmatmul.mubr.bf16.vlgmr.msra.gmra.mrb[32].mxu1 %v1672_v41 }
 0x453   :  { %2179 = vmatpush1.bf16.msra.mxu0 %v5956_v11  ;;  %2220 = vmatpush1.bf16.msra.mxu1 %v5961_v26 }
 0x454   :  { %2180 = vmatprep.subr.bf16.mxu0 %v5970_v9  ;;  %2221 = vmatprep.subr.bf16.mxu1 %v5975_v44 }
 0x455   :  { %2210 = vmatprep.mubr.bf16.mxu0 %v7194_v8  ;;  %2251 = vmatprep.mubr.bf16.mxu1 %v7194_v8 }
 0x457   :  { %2181 = vmatpush1.bf16.msra.mxu0 %v5980_v14  ;;  %2222 = vmatpush1.bf16.msra.mxu1 %v5985_v13 }
 0x458   :  { %2182 = vmatprep.subr.bf16.mxu0 %v5994_v15  ;;  %2223 = vmatprep.subr.bf16.mxu1 %v5999_v17 }
 0x45b   :  { %2183 = vmatpush1.bf16.msra.mxu0 %v6004_v16  ;;  %2224 = vmatpush1.bf16.msra.mxu1 %v6009_v7 }
 0x45c   :  { %2184 = vmatprep.subr.bf16.mxu0 %v6018_v12  ;;  %2225 = vmatprep.subr.bf16.mxu1 %v6023_v33 }
 0x45f   :  { %2185 = vmatpush1.bf16.msra.mxu0 %v6028_v34  ;;  %2226 = vmatpush1.bf16.msra.mxu1 %v6033_v18 }
 0x460   :  { %2186 = vmatprep.subr.bf16.mxu0 %v6042_v19  ;;  %2227 = vmatprep.subr.bf16.mxu1 %v6047_v23 }
 0x463   :  { %2187 = vmatpush1.bf16.msra.mxu0 %v6052_v25  ;;  %2228 = vmatpush1.bf16.msra.mxu1 %v6057_v27 }
 0x464   :  { %2188 = vmatprep.subr.bf16.mxu0 %v6071_v28  ;;  %2229 = vmatprep.subr.bf16.mxu1 %v6081_v21 }
 0x467   :  { %2189 = vmatpush1.bf16.msra.mxu0 %v6066_v10  ;;  %2230 = vmatpush1.bf16.msra.mxu1 %v6076_v20 }
 0x468   :  { %2190 = vmatprep.subr.bf16.mxu0 %v6086_v32  ;;  %2231 = vmatprep.subr.bf16.mxu1 %v6092_v24 }
 0x46b   :  { %2191 = vmatpush1.bf16.msra.mxu0 %v6100_v30  ;;  %2232 = vmatpush1.bf16.msra.mxu1 %v6105_v62 }
 0x46c   :  { %2192 = vmatprep.subr.bf16.mxu0 %v6112_v22  ;;  %2233 = vmatprep.subr.bf16.mxu1 %v6117_v29 }
 0x46f   :  { %2193 = vmatpush1.bf16.msra.mxu0 %v6124_v1  ;;  %2234 = vmatpush1.bf16.msra.mxu1 %v6129_v36 }
 0x470   :  { %2484 = vmatprep.subr.bf16.mxu0 %v5946_v53  ;;  %2525 = vmatprep.subr.bf16.mxu1 %v5951_v6 }
 0x525   :  { %v1906_v3 = vpop.f32.mrb[32].mxu0  ;;  %v1947_v42 = vpop.f32.mrb[32].mxu1 }
 0x526   :  { %v1907_v45 = vadd.f32 %v1906_v3, %v7200_v43  ;;  %v1948_v47 = vadd.f32 %v1947_v42, %v7201_v46  ;;  %v1908_v48 = vpop.f32.mrb[33].mxu0  ;;  %v1949_v49 = vpop.f32.mrb[33].mxu1 }
 0x527   :  { %v1909_v51 = vadd.f32 %v1908_v48, %v7202_v50  ;;  %v1950_v54 = vadd.f32 %v1949_v49, %v7203_v52  ;;  %v1910_v55 = vpop.f32.mrb[34].mxu0  ;;  %v1951_v56 = vpop.f32.mrb[34].mxu1  ;;  %v7204_v48 = vld [vmem:[#allocation14_spill] sm:$0xff]  ;;  %v7205_v50 = vld [vmem:[#allocation15_spill] sm:$0xff] }
 0x528   :  { %v4624_v57 = vmul.f32 -1.442695, %v1907_v45  ;;  %v1911_v58 = vpop.f32.mrb[35].mxu0  ;;  %v1952_v59 = vpop.f32.mrb[35].mxu1  ;;  %v4626_v61 = vmul.f32 -1.442695, %v1948_v47 }
 0x529   :  { %v4625_v60 = vmul.f32 -1.442695, %v1909_v51  ;;  %v7206_v55 = vld [vmem:[#allocation16_spill] sm:$0xff] }
 0x52a   :  { %5139 = vpow2.f32 %v4624_v57  ;;  %v7207_v57 = vld [vmem:[#allocation17_spill] sm:$0xff] }
 0x52b   :  { %5141 = vpow2.f32 %v4625_v60 }
 0x52c   :  { %5143 = vtanh.f32 %v1950_v54 }
 0x52d   :  { %5145 = vpow2.f32 %v4626_v61 }
 0x534   :  { %v5140_v63 = vpop.eup %5139 }
 0x535   :  { %v1963_v0 = vadd.f32 1.0, %v5140_v63  ;;  %v5142_v2 = vpop.eup %5141 }
 0x536   :  { %v1964_v4 = vadd.f32 1.0, %v5142_v2  ;;  %v5144_v5 = vpop.eup %5143 }
 0x537   :  { %5147 = vrcp.f32 %v1963_v0  ;;  %v5146_v31 = vpop.eup %5145 }
 0x538   :  { %5149 = vrcp.f32 %v1964_v4  ;;  %v1965_v40 = vadd.f32 1.0, %v5146_v31 }
 0x53a   :  { %5151 = vrcp.f32 %v1965_v40 }
 0x541   :  { %v5148_v35 = vpop.eup %5147 }
 0x542   :  { %v1974_v38 = vmul.f32 %v5148_v35, %v5144_v5  ;;  %v5150_v39 = vpop.eup %5149 }
 0x543   :  { %v1973_v41 = vmul.f32 %v5150_v39, %v6142_v37 }
 0x544   :  { %v5152_v42 = vpop.eup %5151 }
 0x545   :  { %v6184_v3 = vadd.f32 %v1974_v38, %v1973_v41 }
 0x547   :  { %5153 = vtanh.f32 %v6184_v3 }
 0x551   :  { %v5154_v43 = vpop.eup %5153 }
 0x552   :  { %v1977_v45 = vmul.f32 %v5154_v43, %v5152_v42 }
 0x554   :  { %v1978_v46 = vpack.c.bf16 %v1977_v45, %v1977_v45 }
 0x556   :  { %1980 = vst [vmem:[#allocation2 + $0x10] sm:$0xf] %v1978_v46  ;;  %2211 = vmatmul.mubr.bf16.vlgmr.msra.gmra.mrb[36].mxu0 %v1978_v46  ;;  %2252 = vmatmul.mubr.bf16.vlgmr.msra.gmra.mrb[36].mxu1 %v1978_v46 }
 0x557   :  { %2485 = vmatpush1.bf16.msra.mxu0 %v5956_v11  ;;  %2526 = vmatpush1.bf16.msra.mxu1 %v5961_v26 }
 0x558   :  { %2486 = vmatprep.subr.bf16.mxu0 %v5970_v9  ;;  %2527 = vmatprep.subr.bf16.mxu1 %v5975_v44 }
 0x559   :  { %2516 = vmatprep.mubr.bf16.mxu0 %v7194_v8  ;;  %2557 = vmatprep.mubr.bf16.mxu1 %v7194_v8 }
 0x55b   :  { %2487 = vmatpush1.bf16.msra.mxu0 %v5980_v14  ;;  %2528 = vmatpush1.bf16.msra.mxu1 %v5985_v13 }
 0x55c   :  { %2488 = vmatprep.subr.bf16.mxu0 %v5994_v15  ;;  %2529 = vmatprep.subr.bf16.mxu1 %v5999_v17 }
 0x55f   :  { %2489 = vmatpush1.bf16.msra.mxu0 %v6004_v16  ;;  %2530 = vmatpush1.bf16.msra.mxu1 %v6009_v7 }
 0x560   :  { %2490 = vmatprep.subr.bf16.mxu0 %v6018_v12  ;;  %2531 = vmatprep.subr.bf16.mxu1 %v6023_v33 }
 0x563   :  { %2491 = vmatpush1.bf16.msra.mxu0 %v6028_v34  ;;  %2532 = vmatpush1.bf16.msra.mxu1 %v6033_v18 }
 0x564   :  { %2492 = vmatprep.subr.bf16.mxu0 %v6042_v19  ;;  %2533 = vmatprep.subr.bf16.mxu1 %v6047_v23 }
 0x567   :  { %2493 = vmatpush1.bf16.msra.mxu0 %v6052_v25  ;;  %2534 = vmatpush1.bf16.msra.mxu1 %v6057_v27 }
 0x568   :  { %2494 = vmatprep.subr.bf16.mxu0 %v6071_v28  ;;  %2535 = vmatprep.subr.bf16.mxu1 %v6081_v21 }
 0x56b   :  { %2495 = vmatpush1.bf16.msra.mxu0 %v6066_v10  ;;  %2536 = vmatpush1.bf16.msra.mxu1 %v6076_v20 }
 0x56c   :  { %2496 = vmatprep.subr.bf16.mxu0 %v6086_v32  ;;  %2537 = vmatprep.subr.bf16.mxu1 %v6092_v24 }
 0x56f   :  { %2497 = vmatpush1.bf16.msra.mxu0 %v6100_v30  ;;  %2538 = vmatpush1.bf16.msra.mxu1 %v6105_v62 }
 0x570   :  { %2498 = vmatprep.subr.bf16.mxu0 %v6112_v22  ;;  %2539 = vmatprep.subr.bf16.mxu1 %v6117_v29 }
 0x573   :  { %2499 = vmatpush1.bf16.msra.mxu0 %v6124_v1  ;;  %2540 = vmatpush1.bf16.msra.mxu1 %v6129_v36 }
 0x574   :  { %2790 = vmatprep.subr.bf16.mxu0 %v5946_v53  ;;  %2831 = vmatprep.subr.bf16.mxu1 %v5951_v6 }
 0x629   :  { %v2212_v37 = vpop.f32.mrb[36].mxu0  ;;  %v2253_v47 = vpop.f32.mrb[36].mxu1 }
 0x62a   :  { %v2213_v49 = vadd.f32 %v2212_v37, %v7204_v48  ;;  %v2254_v51 = vadd.f32 %v2253_v47, %v7205_v50  ;;  %v2214_v52 = vpop.f32.mrb[37].mxu0  ;;  %v2255_v54 = vpop.f32.mrb[37].mxu1 }
 0x62b   :  { %v2215_v56 = vadd.f32 %v2214_v52, %v7206_v55  ;;  %v2256_v58 = vadd.f32 %v2255_v54, %v7207_v57  ;;  %v2216_v59 = vpop.f32.mrb[38].mxu0  ;;  %v2257_v60 = vpop.f32.mrb[38].mxu1  ;;  %v4975_v55 = vld [vmem:[%s7159_s4] ss:$16 sps:$4 sm:$0xff]  }
 0x62c   :  { %v4659_v61 = vmul.f32 -1.442695, %v2213_v49  ;;  %v2217_v63 = vpop.f32.mrb[39].mxu0  ;;  %v2258_v0 = vpop.f32.mrb[39].mxu1  ;;  %v4661_v6 = vmul.f32 -1.442695, %v2254_v51 }
 0x62d   :  { %v4660_v53 = vmul.f32 -1.442695, %v2215_v56  ;;  %v4978_v56 = vld [vmem:[%s7159_s4 + $0x8] ss:$16 sps:$4 sm:$0xff]   ;;  %v4986_v59 = vld [vmem:[%s7159_s4 + $0x2c] ss:$16 sps:$4 sm:$0xff]  }
 0x62e   :  { %5155 = vpow2.f32 %v4659_v61  ;;  %v4981_v60 = vld [vmem:[%s7159_s4 + $0x20] ss:$16 sps:$4 sm:$0xff]   ;;  %v4984_v61 = vld [vmem:[%s7159_s4 + $0x28] ss:$16 sps:$4 sm:$0xff]   ;;  %v4989_v63 = vld [vmem:[%s7159_s4 + $0x44] ss:$16 sps:$4 sm:$0xff]  }
 0x62f   :  { %5157 = vpow2.f32 %v4660_v53  ;;  %v4992_v0 = vld [vmem:[%s7159_s4 + $0x4c] ss:$16 sps:$4 sm:$0xff]   ;;  %v4987_v53 = vld [vmem:[%s7159_s4 + $0x40] ss:$16 sps:$4 sm:$0xff]  }
 0x630   :  { %5159 = vtanh.f32 %v2256_v58  ;;  %v4983_v58 = vld [vmem:[%s7159_s4 + $0x24] ss:$16 sps:$4 sm:$0xff]  }
 0x631   :  { %5161 = vpow2.f32 %v4661_v6  ;;  %v4990_v6 = vld [vmem:[%s7159_s4 + $0x48] ss:$16 sps:$4 sm:$0xff]  }
 0x638   :  { %v5156_v2 = vpop.eup %5155 }
 0x639   :  { %v2269_v4 = vadd.f32 1.0, %v5156_v2  ;;  %v5158_v5 = vpop.eup %5157  ;;  %v4995_v2 = vld [vmem:[%s7159_s4 + $0x64] ss:$16 sps:$4 sm:$0xff]  }
 0x63a   :  { %v2270_v31 = vadd.f32 1.0, %v5158_v5  ;;  %v5160_v35 = vpop.eup %5159  ;;  %v4993_v5 = vld [vmem:[%s7159_s4 + $0x60] ss:$16 sps:$4 sm:$0xff]  }
 0x63b   :  { %5163 = vrcp.f32 %v2269_v4  ;;  %v5162_v38 = vpop.eup %5161  ;;  %v4998_v4 = vld [vmem:[%s7159_s4 + $0x6c] ss:$16 sps:$4 sm:$0xff]  }
 0x63c   :  { %5165 = vrcp.f32 %v2270_v31  ;;  %v2271_v42 = vadd.f32 1.0, %v5162_v38  ;;  %v4996_v31 = vld [vmem:[%s7159_s4 + $0x68] ss:$16 sps:$4 sm:$0xff]   ;;  %v5004_v38 = vld [vmem:[%s7159_s4 + $0x8c] ss:$16 sps:$4 sm:$0xff]  }
 0x63e   :  { %5167 = vrcp.f32 %v2271_v42  ;;  %v5010_v42 = vld [vmem:[%s7159_s4 + $0xac] ss:$16 sps:$4 sm:$0xff]  }
 0x645   :  { %v5164_v39 = vpop.eup %5163 }
 0x646   :  { %v2280_v40 = vmul.f32 %v5164_v39, %v5160_v35  ;;  %v5166_v41 = vpop.eup %5165  ;;  %v5001_v35 = vld [vmem:[%s7159_s4 + $0x84] ss:$16 sps:$4 sm:$0xff]   ;;  %v4999_v39 = vld [vmem:[%s7159_s4 + $0x80] ss:$16 sps:$4 sm:$0xff]  }
 0x647   :  { %v2279_v43 = vmul.f32 %v5166_v41, %v6184_v3  ;;  %v5007_v41 = vld [vmem:[%s7159_s4 + $0xa4] ss:$16 sps:$4 sm:$0xff]  }
 0x648   :  { %v5168_v46 = vpop.eup %5167 }
 0x649   :  { %v6226_v45 = vadd.f32 %v2280_v40, %v2279_v43  ;;  %v5002_v40 = vld [vmem:[%s7159_s4 + $0x88] ss:$16 sps:$4 sm:$0xff]   ;;  %v5005_v43 = vld [vmem:[%s7159_s4 + $0xa0] ss:$16 sps:$4 sm:$0xff]  }
 0x64b   :  { %5169 = vtanh.f32 %v6226_v45 }
 0x655   :  { %v5170_v37 = vpop.eup %5169 }
 0x656   :  { %v2283_v47 = vmul.f32 %v5170_v37, %v5168_v46  ;;  %v5013_v46 = vld [vmem:[%s7159_s4 + $0xc4] ss:$16 sps:$4 sm:$0xff]   ;;  %v5016_v37 = vld [vmem:[%s7159_s4 + $0xcc] ss:$16 sps:$4 sm:$0xff]  }
 0x658   :  { %v2284_v48 = vpack.c.bf16 %v2283_v47, %v2283_v47  ;;  %v5011_v47 = vld [vmem:[%s7159_s4 + $0xc0] ss:$16 sps:$4 sm:$0xff]  }
 0x65a   :  { %2286 = vst [vmem:[#allocation2 + $0x14] sm:$0xf] %v2284_v48  ;;  %2517 = vmatmul.mubr.bf16.vlgmr.msra.gmra.mrb[40].mxu0 %v2284_v48  ;;  %2558 = vmatmul.mubr.bf16.vlgmr.msra.gmra.mrb[40].mxu1 %v2284_v48  ;;  %v5014_v48 = vld [vmem:[%s7159_s4 + $0xc8] ss:$16 sps:$4 sm:$0xff]  }
 0x65b   :  { %2791 = vmatpush1.bf16.msra.mxu0 %v5956_v11  ;;  %2832 = vmatpush1.bf16.msra.mxu1 %v5961_v26  ;;  %v4977_v11 = vld [vmem:[%s7159_s4 + $0x4] ss:$16 sps:$4 sm:$0xff]   ;;  %v4980_v26 = vld [vmem:[%s7159_s4 + $0xc] ss:$16 sps:$4 sm:$0xff]  }
 0x65c   :  { %2792 = vmatprep.subr.bf16.mxu0 %v5970_v9  ;;  %2833 = vmatprep.subr.bf16.mxu1 %v5975_v44 }
 0x65d   :  { %2822 = vmatprep.mubr.bf16.mxu0 %v7194_v8  ;;  %2863 = vmatprep.mubr.bf16.mxu1 %v7194_v8 }
 0x65f   :  { %2793 = vmatpush1.bf16.msra.mxu0 %v5980_v14  ;;  %2834 = vmatpush1.bf16.msra.mxu1 %v5985_v13  ;;  %v7208_v14 = vld [vmem:[#allocation18_spill] sm:$0xff] }
 0x660   :  { %2794 = vmatprep.subr.bf16.mxu0 %v5994_v15  ;;  %2835 = vmatprep.subr.bf16.mxu1 %v5999_v17  ;;  %v7209_v15 = vld [vmem:[#allocation19_spill] sm:$0xff] }
 0x663   :  { %2795 = vmatpush1.bf16.msra.mxu0 %v6004_v16  ;;  %2836 = vmatpush1.bf16.msra.mxu1 %v6009_v7 }
 0x664   :  { %2796 = vmatprep.subr.bf16.mxu0 %v6018_v12  ;;  %2837 = vmatprep.subr.bf16.mxu1 %v6023_v33  ;;  %v7210_v12 = vld [vmem:[#allocation20_spill] sm:$0xff] }
 0x667   :  { %2797 = vmatpush1.bf16.msra.mxu0 %v6028_v34  ;;  %2838 = vmatpush1.bf16.msra.mxu1 %v6033_v18  ;;  %v7211_v34 = vld [vmem:[#allocation21_spill] sm:$0xff] }
 0x668   :  { %2798 = vmatprep.subr.bf16.mxu0 %v6042_v19  ;;  %2839 = vmatprep.subr.bf16.mxu1 %v6047_v23 }
 0x66b   :  { %2799 = vmatpush1.bf16.msra.mxu0 %v6052_v25  ;;  %2840 = vmatpush1.bf16.msra.mxu1 %v6057_v27 }
 0x66c   :  { %2800 = vmatprep.subr.bf16.mxu0 %v6071_v28  ;;  %2841 = vmatprep.subr.bf16.mxu1 %v6081_v21 }
 0x66f   :  { %2801 = vmatpush1.bf16.msra.mxu0 %v6066_v10  ;;  %2842 = vmatpush1.bf16.msra.mxu1 %v6076_v20 }
 0x670   :  { %2802 = vmatprep.subr.bf16.mxu0 %v6086_v32  ;;  %2843 = vmatprep.subr.bf16.mxu1 %v6092_v24 }
 0x673   :  { %2803 = vmatpush1.bf16.msra.mxu0 %v6100_v30  ;;  %2844 = vmatpush1.bf16.msra.mxu1 %v6105_v62 }
 0x674   :  { %2804 = vmatprep.subr.bf16.mxu0 %v6112_v22  ;;  %2845 = vmatprep.subr.bf16.mxu1 %v6117_v29 }
 0x677   :  { %2805 = vmatpush1.bf16.msra.mxu0 %v6124_v1  ;;  %2846 = vmatpush1.bf16.msra.mxu1 %v6129_v36 }
 0x678   :  { %3147 = vmatprep.subr.bf16.mxu0 %v4977_v11  ;;  %3220 = vmatprep.subr.bf16.mxu1 %v4980_v26  ;;  %v5019_v11 = vld [vmem:[%s7159_s4 + $0xe4] ss:$16 sps:$4 sm:$0xff]   ;;  %v5022_v26 = vld [vmem:[%s7159_s4 + $0xec] ss:$16 sps:$4 sm:$0xff]  }
 0x72d   :  { %v2518_v9 = vpop.f32.mrb[40].mxu0  ;;  %v2559_v44 = vpop.f32.mrb[40].mxu1 }
 0x72e   :  { %v2519_v13 = vadd.f32 %v2518_v9, %v7208_v14  ;;  %v2560_v17 = vadd.f32 %v2559_v44, %v7209_v15  ;;  %v2520_v16 = vpop.f32.mrb[41].mxu0  ;;  %v2561_v7 = vpop.f32.mrb[41].mxu1  ;;  %v5017_v9 = vld [vmem:[%s7159_s4 + $0xe0] ss:$16 sps:$4 sm:$0xff]   ;;  %v5020_v44 = vld [vmem:[%s7159_s4 + $0xe8] ss:$16 sps:$4 sm:$0xff]  }
 0x72f   :  { %v2521_v33 = vadd.f32 %v2520_v16, %v7210_v12  ;;  %v2562_v18 = vadd.f32 %v2561_v7, %v7211_v34  ;;  %v2522_v19 = vpop.f32.mrb[42].mxu0  ;;  %v2563_v23 = vpop.f32.mrb[42].mxu1  ;;  %v5023_v14 = vld [vmem:[#allocation2] sm:$0xff]   ;;  %v5025_v15 = vld [vmem:[#allocation2 + $0x10] sm:$0xff]   ;;  %v6381_v16 = vld [vmem:[%s7160_s5 + $0xc] ss:$16 sps:$4 sm:$0xff]  }
 0x730   :  { %v4694_v25 = vmul.f32 -1.442695, %v2519_v13  ;;  %v2523_v27 = vpop.f32.mrb[43].mxu0  ;;  %v2564_v10 = vpop.f32.mrb[43].mxu1  ;;  %v4696_v20 = vmul.f32 -1.442695, %v2560_v17 }
 0x731   :  { %v4695_v28 = vmul.f32 -1.442695, %v2521_v33  ;;  %v5024_v13 = vld [vmem:[#allocation2 + $0x8] sm:$0xff]   ;;  %v6376_v17 = vld [vmem:[%s7160_s5 + $0x4] ss:$16 sps:$4 sm:$0xff]  }
 0x732   :  { %5171 = vpow2.f32 %v4694_v25  ;;  %v6387_v7 = vld [vmem:[%s7160_s5] ss:$16 sps:$4 sm:$0xff]   ;;  %v6392_v12 = vld [vmem:[%s7160_s5 + $0x8] ss:$16 sps:$4 sm:$0xff]   ;;  %v6400_v33 = vld [vmem:[%s7160_s5 + $0x24] ss:$16 sps:$4 sm:$0xff]  }
 0x733   :  { %5173 = vpow2.f32 %v4695_v28  ;;  %v6405_v34 = vld [vmem:[%s7160_s5 + $0x2c] ss:$16 sps:$4 sm:$0xff]   ;;  %v6415_v19 = vld [vmem:[%s7160_s5 + $0x28] ss:$16 sps:$4 sm:$0xff]   ;;  %v6424_v23 = vld [vmem:[%s7160_s5 + $0x44] ss:$16 sps:$4 sm:$0xff]  }
 0x734   :  { %5175 = vtanh.f32 %v2562_v18  ;;  %v6410_v18 = vld [vmem:[%s7160_s5 + $0x20] ss:$16 sps:$4 sm:$0xff]   ;;  %v6429_v25 = vld [vmem:[%s7160_s5 + $0x4c] ss:$16 sps:$4 sm:$0xff]   ;;  %v6439_v10 = vld [vmem:[%s7160_s5 + $0x48] ss:$16 sps:$4 sm:$0xff]  }
 0x735   :  { %5177 = vpow2.f32 %v4696_v20  ;;  %v6434_v27 = vld [vmem:[%s7160_s5 + $0x40] ss:$16 sps:$4 sm:$0xff]   ;;  %v6448_v28 = vld [vmem:[%s7160_s5 + $0x64] ss:$16 sps:$4 sm:$0xff]   ;;  %v6453_v20 = vld [vmem:[%s7160_s5 + $0x6c] ss:$16 sps:$4 sm:$0xff]  }
 0x73c   :  { %v5172_v21 = vpop.eup %5171 }
 0x73d   :  { %v2575_v32 = vadd.f32 1.0, %v5172_v21  ;;  %v5174_v24 = vpop.eup %5173  ;;  %v6458_v21 = vld [vmem:[%s7160_s5 + $0x60] ss:$16 sps:$4 sm:$0xff]  }
 0x73e   :  { %v2576_v30 = vadd.f32 1.0, %v5174_v24  ;;  %v5176_v62 = vpop.eup %5175  ;;  %v6472_v24 = vld [vmem:[%s7160_s5 + $0x84] ss:$16 sps:$4 sm:$0xff]  }
 0x73f   :  { %5179 = vrcp.f32 %v2575_v32  ;;  %v5178_v22 = vpop.eup %5177  ;;  %v6463_v32 = vld [vmem:[%s7160_s5 + $0x68] ss:$16 sps:$4 sm:$0xff]  }
 0x740   :  { %5181 = vrcp.f32 %v2576_v30  ;;  %v2577_v3 = vadd.f32 1.0, %v5178_v22  ;;  %v6477_v30 = vld [vmem:[%s7160_s5 + $0x8c] ss:$16 sps:$4 sm:$0xff]   ;;  %v6487_v22 = vld [vmem:[%s7160_s5 + $0x88] ss:$16 sps:$4 sm:$0xff]  }
 0x742   :  { %5183 = vrcp.f32 %v2577_v3  ;;  %v6511_v3 = vld [vmem:[%s7160_s5 + $0xa8] ss:$16 sps:$4 sm:$0xff]  }
 0x749   :  { %v5180_v29 = vpop.eup %5179 }
 0x74a   :  { %v2586_v1 = vmul.f32 %v5180_v29, %v5176_v62  ;;  %v5182_v36 = vpop.eup %5181  ;;  %v6482_v62 = vld [vmem:[%s7160_s5 + $0x80] ss:$16 sps:$4 sm:$0xff]   ;;  %v6494_v29 = vld [vmem:[%s7160_s5 + $0xa4] ss:$16 sps:$4 sm:$0xff]  }
 0x74b   :  { %v2585_v49 = vmul.f32 %v5182_v36, %v6226_v45  ;;  %v5008_v45 = vld [vmem:[%s7159_s4 + $0xa8] ss:$16 sps:$4 sm:$0xff]   ;;  %v6506_v36 = vld [vmem:[%s7160_s5 + $0xa0] ss:$16 sps:$4 sm:$0xff]  }
 0x74c   :  { %v5184_v51 = vpop.eup %5183 }
 0x74d   :  { %v6272_v50 = vadd.f32 %v2586_v1, %v2585_v49  ;;  %v6499_v1 = vld [vmem:[%s7160_s5 + $0xac] ss:$16 sps:$4 sm:$0xff]   ;;  %v6520_v49 = vld [vmem:[%s7160_s5 + $0xc4] ss:$16 sps:$4 sm:$0xff]  }
 0x74f   :  { %5185 = vtanh.f32 %v6272_v50 }
 0x759   :  { %v5186_v52 = vpop.eup %5185 }
 0x75a   :  { %v2589_v54 = vmul.f32 %v5186_v52, %v5184_v51  ;;  %v6525_v51 = vld [vmem:[%s7160_s5 + $0xcc] ss:$16 sps:$4 sm:$0xff]   ;;  %v6530_v52 = vld [vmem:[%s7160_s5 + $0xc0] ss:$16 sps:$4 sm:$0xff]  }
 0x75c   :  { %v2590_v57 = vpack.c.bf16 %v2589_v54, %v2589_v54  ;;  %v6535_v54 = vld [vmem:[%s7160_s5 + $0xc8] ss:$16 sps:$4 sm:$0xff]  }
 0x75e   :  { %2592 = vst [vmem:[#allocation2 + $0x18] sm:$0xf] %v2590_v57  ;;  %2823 = vmatmul.mubr.bf16.vlgmr.msra.gmra.mrb[44].mxu0 %v2590_v57  ;;  %2864 = vmatmul.mubr.bf16.vlgmr.msra.gmra.mrb[44].mxu1 %v2590_v57  ;;  %v6554_v57 = vld [vmem:[%s7160_s5 + $0xe0] ss:$16 sps:$4 sm:$0xff]  }
 0x75f   :  { %3148 = vmatpush1.bf16.msra.mxu0 %v4975_v55  ;;  %3221 = vmatpush1.bf16.msra.mxu1 %v4978_v56  ;;  %v6542_v55 = vld [vmem:[%s7160_s5 + $0xe4] ss:$16 sps:$4 sm:$0xff]   ;;  %v6547_v56 = vld [vmem:[%s7160_s5 + $0xec] ss:$16 sps:$4 sm:$0xff]  }
 0x760   :  { %3149 = vmatprep.subr.bf16.mxu0 %v4983_v58  ;;  %3222 = vmatprep.subr.bf16.mxu1 %v4986_v59  ;;  %v6559_v58 = vld [vmem:[%s7160_s5 + $0xe8] ss:$16 sps:$4 sm:$0xff]  }
 0x761   :  { %3179 = vmatprep.mubr.bf16.mxu0 %v7194_v8  ;;  %3252 = vmatprep.mubr.bf16.mxu1 %v7194_v8 }
 0x763   :  { %3150 = vmatpush1.bf16.msra.mxu0 %v4981_v60  ;;  %3223 = vmatpush1.bf16.msra.mxu1 %v4984_v61  ;;  %v7212_v61 = vld [vmem:[#allocation22_spill] sm:$0xff] }
 0x764   :  { %3151 = vmatprep.subr.bf16.mxu0 %v4989_v63  ;;  %3224 = vmatprep.subr.bf16.mxu1 %v4992_v0  ;;  %v7213_v0 = vld [vmem:[#allocation23_spill] sm:$0xff] }
 0x767   :  { %3152 = vmatpush1.bf16.msra.mxu0 %v4987_v53  ;;  %3225 = vmatpush1.bf16.msra.mxu1 %v4990_v6 }
 0x768   :  { %3153 = vmatprep.subr.bf16.mxu0 %v4995_v2  ;;  %3226 = vmatprep.subr.bf16.mxu1 %v4998_v4  ;;  %v7214_v4 = vld [vmem:[#allocation24_spill] sm:$0xff] }
 0x76b   :  { %3154 = vmatpush1.bf16.msra.mxu0 %v4993_v5  ;;  %3227 = vmatpush1.bf16.msra.mxu1 %v4996_v31  ;;  %v7215_v31 = vld [vmem:[#allocation25_spill] sm:$0xff] }
 0x76c   :  { %3155 = vmatprep.subr.bf16.mxu0 %v5001_v35  ;;  %3228 = vmatprep.subr.bf16.mxu1 %v5004_v38 }
 0x76f   :  { %3156 = vmatpush1.bf16.msra.mxu0 %v4999_v39  ;;  %3229 = vmatpush1.bf16.msra.mxu1 %v5002_v40 }
 0x770   :  { %3157 = vmatprep.subr.bf16.mxu0 %v5007_v41  ;;  %3230 = vmatprep.subr.bf16.mxu1 %v5010_v42 }
 0x773   :  { %3158 = vmatpush1.bf16.msra.mxu0 %v5005_v43  ;;  %3231 = vmatpush1.bf16.msra.mxu1 %v5008_v45 }
 0x774   :  { %3159 = vmatprep.subr.bf16.mxu0 %v5013_v46  ;;  %3232 = vmatprep.subr.bf16.mxu1 %v5016_v37 }
 0x777   :  { %3160 = vmatpush1.bf16.msra.mxu0 %v5011_v47  ;;  %3233 = vmatpush1.bf16.msra.mxu1 %v5014_v48 }
 0x778   :  { %3161 = vmatprep.subr.bf16.mxu0 %v5019_v11  ;;  %3234 = vmatprep.subr.bf16.mxu1 %v5022_v26 }
 0x77b   :  { %3162 = vmatpush1.bf16.msra.mxu0 %v5017_v9  ;;  %3235 = vmatpush1.bf16.msra.mxu1 %v5020_v44 }
 0x77c   :  { %3521 = vmatprep.subr.bf16.mxu0 %v6376_v17  ;;  %3562 = vmatprep.subr.bf16.mxu1 %v6381_v16 }
 0x77e   :  { %3180 = vmatmul.mubr.bf16.vlgmr.msra.gmra.mrb[48].mxu0 %v5023_v14  ;;  %3253 = vmatmul.mubr.bf16.vlgmr.msra.gmra.mrb[48].mxu1 %v5023_v14 }
 0x77f   :  { %3189 = vmatprep.mubr.bf16.mxu0 %v7194_v8  ;;  %3262 = vmatprep.mubr.bf16.mxu1 %v7194_v8 }
 0x780   :  { %3522 = vmatpush1.bf16.msra.mxu0 %v6387_v7  ;;  %3563 = vmatpush1.bf16.msra.mxu1 %v6392_v12 }
 0x781   :  { %3523 = vmatprep.subr.bf16.mxu0 %v6400_v33  ;;  %3564 = vmatprep.subr.bf16.mxu1 %v6405_v34 }
 0x784   :  { %3524 = vmatpush1.bf16.msra.mxu0 %v6410_v18  ;;  %3565 = vmatpush1.bf16.msra.mxu1 %v6415_v19 }
 0x785   :  { %3525 = vmatprep.subr.bf16.mxu0 %v6424_v23  ;;  %3566 = vmatprep.subr.bf16.mxu1 %v6429_v25 }
 0x786   :  { %3190 = vmatmul.mubr.bf16.gmra.mrb[52].mxu0 %v5024_v13  ;;  %3263 = vmatmul.mubr.bf16.gmra.mrb[52].mxu1 %v5024_v13 }
 0x787   :  { %3199 = vmatprep.mubr.bf16.mxu0 %v7194_v8  ;;  %3272 = vmatprep.mubr.bf16.mxu1 %v7194_v8 }
 0x788   :  { %3526 = vmatpush1.bf16.msra.mxu0 %v6434_v27  ;;  %3567 = vmatpush1.bf16.msra.mxu1 %v6439_v10 }
 0x789   :  { %3527 = vmatprep.subr.bf16.mxu0 %v6448_v28  ;;  %3568 = vmatprep.subr.bf16.mxu1 %v6453_v20 }
 0x78c   :  { %3528 = vmatpush1.bf16.msra.mxu0 %v6458_v21  ;;  %3569 = vmatpush1.bf16.msra.mxu1 %v6463_v32 }
 0x78d   :  { %3529 = vmatprep.subr.bf16.mxu0 %v6472_v24  ;;  %3570 = vmatprep.subr.bf16.mxu1 %v6477_v30 }
 0x78e   :  { %3200 = vmatmul.mubr.bf16.gmra.mrb[56].mxu0 %v5025_v15  ;;  %3273 = vmatmul.mubr.bf16.gmra.mrb[56].mxu1 %v5025_v15 }
 0x78f   :  { %3209 = vmatprep.mubr.bf16.mxu0 %v7194_v8  ;;  %3282 = vmatprep.mubr.bf16.mxu1 %v7194_v8 }
 0x790   :  { %3530 = vmatpush1.bf16.msra.mxu0 %v6482_v62  ;;  %3571 = vmatpush1.bf16.msra.mxu1 %v6487_v22 }
 0x791   :  { %3531 = vmatprep.subr.bf16.mxu0 %v6494_v29  ;;  %3572 = vmatprep.subr.bf16.mxu1 %v6499_v1 }
 0x794   :  { %3532 = vmatpush1.bf16.msra.mxu0 %v6506_v36  ;;  %3573 = vmatpush1.bf16.msra.mxu1 %v6511_v3 }
 0x795   :  { %3533 = vmatprep.subr.bf16.mxu0 %v6520_v49  ;;  %3574 = vmatprep.subr.bf16.mxu1 %v6525_v51 }
 0x798   :  { %3534 = vmatpush1.bf16.msra.mxu0 %v6530_v52  ;;  %3575 = vmatpush1.bf16.msra.mxu1 %v6535_v54 }
 0x799   :  { %3535 = vmatprep.subr.bf16.mxu0 %v6542_v55  ;;  %3576 = vmatprep.subr.bf16.mxu1 %v6547_v56 }
 0x79c   :  { %3536 = vmatpush1.bf16.msra.mxu0 %v6554_v57  ;;  %3577 = vmatpush1.bf16.msra.mxu1 %v6559_v58 }
 0x79d   :  { %3632 = vmatprep.subr.bf16.mxu0 %v6376_v17  ;;  %3673 = vmatprep.subr.bf16.mxu1 %v6381_v16 }
 0x831   :  { %v2824_v59 = vpop.f32.mrb[44].mxu0  ;;  %v2865_v60 = vpop.f32.mrb[44].mxu1 }
 0x832   :  { %v2825_v63 = vadd.f32 %v2824_v59, %v7212_v61  ;;  %v2866_v53 = vadd.f32 %v2865_v60, %v7213_v0  ;;  %v2826_v6 = vpop.f32.mrb[45].mxu0  ;;  %v2867_v2 = vpop.f32.mrb[45].mxu1 }
 0x833   :  { %v2827_v5 = vadd.f32 %v2826_v6, %v7214_v4  ;;  %v2868_v35 = vadd.f32 %v2867_v2, %v7215_v31  ;;  %v2828_v38 = vpop.f32.mrb[46].mxu0  ;;  %v2869_v39 = vpop.f32.mrb[46].mxu1 }
 0x834   :  { %v4729_v40 = vmul.f32 -1.442695, %v2825_v63  ;;  %v2829_v41 = vpop.f32.mrb[47].mxu0  ;;  %v2870_v42 = vpop.f32.mrb[47].mxu1  ;;  %v4731_v45 = vmul.f32 -1.442695, %v2866_v53 }
 0x835   :  { %v4730_v43 = vmul.f32 -1.442695, %v2827_v5 }
 0x836   :  { %5187 = vpow2.f32 %v4729_v40 }
 0x837   :  { %5189 = vpow2.f32 %v4730_v43 }
 0x838   :  { %5191 = vtanh.f32 %v2868_v35 }
 0x839   :  { %5193 = vpow2.f32 %v4731_v45 }
 0x840   :  { %v5188_v46 = vpop.eup %5187 }
 0x841   :  { %v2881_v37 = vadd.f32 1.0, %v5188_v46  ;;  %v5190_v47 = vpop.eup %5189 }
 0x842   :  { %v2882_v48 = vadd.f32 1.0, %v5190_v47  ;;  %v5192_v11 = vpop.eup %5191 }
 0x843   :  { %5195 = vrcp.f32 %v2881_v37  ;;  %v5194_v26 = vpop.eup %5193 }
 0x844   :  { %5197 = vrcp.f32 %v2882_v48  ;;  %v2883_v13 = vadd.f32 1.0, %v5194_v26 }
 0x846   :  { %5199 = vrcp.f32 %v2883_v13 }
 0x84d   :  { %v5196_v9 = vpop.eup %5195 }
 0x84e   :  { %v2892_v44 = vmul.f32 %v5196_v9, %v5192_v11  ;;  %v5198_v14 = vpop.eup %5197 }
 0x84f   :  { %v2891_v15 = vmul.f32 %v5198_v14, %v6272_v50 }
 0x850   :  { %v5200_v42 = vpop.eup %5199 }
 0x851   :  { %v6572_v59 = vpop.f32.mrb[48].mxu0  ;;  %v6574_v60 = vpop.f32.mrb[48].mxu1  ;;  %v2893_v61 = vadd.f32 %v2892_v44, %v2891_v15  ;;  %v2941_v15 = vld [vmem:[%s7163_s6] sm:$0xf] }
 0x852   :  { %v6576_v63 = vpop.f32.mrb[49].mxu0  ;;  %v6578_v0 = vpop.f32.mrb[49].mxu1 }
 0x853   :  { %v6580_v53 = vpop.f32.mrb[50].mxu0  ;;  %v6582_v6 = vpop.f32.mrb[50].mxu1  ;;  %5201 = vtanh.f32 %v2893_v61  ;;  %2900 = vst [vmem:[%s7161_s8] sm:$0xff] %v2893_v61 }
 0x854   :  { %v6587_v50 = vpop.f32.mrb[51].mxu0  ;;  %v6589_v2 = vpop.f32.mrb[51].mxu1 }
 0x859   :  { %v6591_v4 = vpop.f32.mrb[52].mxu0  ;;  %v6593_v5 = vpop.f32.mrb[52].mxu1 }
 0x85a   :  { %7216 = vst [vmem:[#allocation5_spill] sm:$0xff] %v6593_v5  ;;  %v6595_v31 = vpop.f32.mrb[53].mxu0  ;;  %v6597_v35 = vpop.f32.mrb[53].mxu1 }
 0x85b   :  { %7217 = vst [vmem:[#allocation6_spill] sm:$0xff] %v6595_v31  ;;  %7218 = vst [vmem:[#allocation7_spill] sm:$0xff] %v6597_v35  ;;  %v6599_v38 = vpop.f32.mrb[54].mxu0  ;;  %v6601_v39 = vpop.f32.mrb[54].mxu1 }
 0x85c   :  { %7219 = vst [vmem:[#allocation8_spill] sm:$0xff] %v6599_v38  ;;  %7220 = vst [vmem:[#allocation9_spill] sm:$0xff] %v6601_v39  ;;  %v6603_v40 = vpop.f32.mrb[55].mxu0  ;;  %v6605_v41 = vpop.f32.mrb[55].mxu1 }
 0x85d   :  { %7221 = vst [vmem:[#allocation10_spill] sm:$0xff] %v6603_v40  ;;  %7222 = vst [vmem:[#allocation11_spill] sm:$0xff] %v6605_v41  ;;  %v5202_v43 = vpop.eup %5201 }
 0x85e   :  { %v2895_v45 = vmul.f32 %v5202_v43, %v5200_v42 }
 0x860   :  { %v2896_v46 = vpack.c.bf16 %v2895_v45, %v2895_v45  ;;  %2899 = vst [vmem:[%s7162_s7] sm:$0xff] %v2895_v45 }
 0x861   :  { %v6610_v37 = vpop.f32.mrb[56].mxu0  ;;  %v6612_v47 = vpop.f32.mrb[56].mxu1 }
 0x862   :  { %7223 = vst [vmem:[#allocation12_spill] sm:$0xff] %v6610_v37  ;;  %7224 = vst [vmem:[#allocation13_spill] sm:$0xff] %v6612_v47  ;;  %v6614_v48 = vpop.f32.mrb[57].mxu0  ;;  %v6616_v11 = vpop.f32.mrb[57].mxu1 }
 0x863   :  { %7225 = vst [vmem:[#allocation14_spill] sm:$0xff] %v6614_v48  ;;  %7226 = vst [vmem:[#allocation15_spill] sm:$0xff] %v6616_v11  ;;  %v6618_v26 = vpop.f32.mrb[58].mxu0  ;;  %v6620_v9 = vpop.f32.mrb[58].mxu1 }
 0x864   :  { %2898 = vst [vmem:[#allocation2 + $0x1c] sm:$0xf] %v2896_v46  ;;  %7227 = vst [vmem:[#allocation16_spill] sm:$0xff] %v6618_v26  ;;  %v6622_v44 = vpop.f32.mrb[59].mxu0  ;;  %v6624_v14 = vpop.f32.mrb[59].mxu1 }
 0x865   :  { %7228 = vst [vmem:[#allocation17_spill] sm:$0xff] %v6620_v9  ;;  %7229 = vst [vmem:[#allocation18_spill] sm:$0xff] %v6622_v44 }
 0x866   :  { %7230 = vst [vmem:[#allocation19_spill] sm:$0xff] %v6624_v14  ;;  %v7237_v14 = vld [vmem:[#allocation4_spill] sm:$0xff] }
 0x867   :  { %v7238_v44 = vsub.s32 0, %v7237_v14  ;;  %v7239_v26 = vsub.s32 2, %v7237_v14 }
 0x869   :  { %v6681_v9 = vrot.slane %v2941_v15, %v7238_v44  ;;  %v6685_v11 = vrot.slane %v2941_v15, %v7239_v26 }
 0x86b   :  { %v5062_v13 = vld [vmem:[#allocation2 + $0x18] sm:$0xff]   ;;  %v3182_v44 = vadd.f32 %v6572_v59, %v6681_v9 }
 0x86c   :  { %3210 = vmatmul.mubr.bf16.gmra.mrb[60].mxu0 %v5062_v13  ;;  %3283 = vmatmul.mubr.bf16.gmra.mrb[60].mxu1 %v5062_v13 }
 0x86d   :  { %3553 = vmatprep.mubr.bf16.mxu0 %v7194_v8  ;;  %3594 = vmatprep.mubr.bf16.mxu1 %v7194_v8 }
 0x874   :  { %3554 = vmatmul.mubr.bf16.vlgmr.msra.gmra.mrb[64].mxu0 %v7194_v8  ;;  %3595 = vmatmul.mubr.bf16.vlgmr.msra.gmra.mrb[64].mxu1 %v7194_v8 }
 0x875   :  { %3633 = vmatpush1.bf16.msra.mxu0 %v6387_v7  ;;  %3674 = vmatpush1.bf16.msra.mxu1 %v6392_v12 }
 0x876   :  { %3634 = vmatprep.subr.bf16.mxu0 %v6400_v33  ;;  %3675 = vmatprep.subr.bf16.mxu1 %v6405_v34 }
 0x877   :  { %3664 = vmatprep.mubr.bf16.mxu0 %v7194_v8  ;;  %3705 = vmatprep.mubr.bf16.mxu1 %v7194_v8 }
 0x879   :  { %3635 = vmatpush1.bf16.msra.mxu0 %v6410_v18  ;;  %3676 = vmatpush1.bf16.msra.mxu1 %v6415_v19 }
 0x87a   :  { %3636 = vmatprep.subr.bf16.mxu0 %v6424_v23  ;;  %3677 = vmatprep.subr.bf16.mxu1 %v6429_v25 }
 0x87d   :  { %3637 = vmatpush1.bf16.msra.mxu0 %v6434_v27  ;;  %3678 = vmatpush1.bf16.msra.mxu1 %v6439_v10 }
 0x87e   :  { %3638 = vmatprep.subr.bf16.mxu0 %v6448_v28  ;;  %3679 = vmatprep.subr.bf16.mxu1 %v6453_v20 }
 0x881   :  { %3639 = vmatpush1.bf16.msra.mxu0 %v6458_v21  ;;  %3680 = vmatpush1.bf16.msra.mxu1 %v6463_v32 }
 0x882   :  { %3640 = vmatprep.subr.bf16.mxu0 %v6472_v24  ;;  %3681 = vmatprep.subr.bf16.mxu1 %v6477_v30 }
 0x885   :  { %3641 = vmatpush1.bf16.msra.mxu0 %v6482_v62  ;;  %3682 = vmatpush1.bf16.msra.mxu1 %v6487_v22 }
 0x886   :  { %3642 = vmatprep.subr.bf16.mxu0 %v6494_v29  ;;  %3683 = vmatprep.subr.bf16.mxu1 %v6499_v1 }
 0x889   :  { %3643 = vmatpush1.bf16.msra.mxu0 %v6506_v36  ;;  %3684 = vmatpush1.bf16.msra.mxu1 %v6511_v3 }
 0x88a   :  { %3644 = vmatprep.subr.bf16.mxu0 %v6520_v49  ;;  %3685 = vmatprep.subr.bf16.mxu1 %v6525_v51 }
 0x88d   :  { %3645 = vmatpush1.bf16.msra.mxu0 %v6530_v52  ;;  %3686 = vmatpush1.bf16.msra.mxu1 %v6535_v54 }
 0x88e   :  { %3646 = vmatprep.subr.bf16.mxu0 %v6542_v55  ;;  %3687 = vmatprep.subr.bf16.mxu1 %v6547_v56 }
 0x891   :  { %3647 = vmatpush1.bf16.msra.mxu0 %v6554_v57  ;;  %3688 = vmatpush1.bf16.msra.mxu1 %v6559_v58 }
 0x892   :  { %3743 = vmatprep.subr.bf16.mxu0 %v6376_v17  ;;  %3784 = vmatprep.subr.bf16.mxu1 %v6381_v16 }
 0x93f   :  { %v6667_v61 = vpop.f32.mrb[60].mxu0  ;;  %v6669_v42 = vpop.f32.mrb[60].mxu1 }
 0x940   :  { %7231 = vst [vmem:[#allocation20_spill] sm:$0xff] %v6667_v61  ;;  %7232 = vst [vmem:[#allocation21_spill] sm:$0xff] %v6669_v42  ;;  %v6671_v43 = vpop.f32.mrb[61].mxu0  ;;  %v6673_v45 = vpop.f32.mrb[61].mxu1 }
 0x941   :  { %7233 = vst [vmem:[#allocation22_spill] sm:$0xff] %v6671_v43  ;;  %7234 = vst [vmem:[#allocation23_spill] sm:$0xff] %v6673_v45  ;;  %v6675_v46 = vpop.f32.mrb[62].mxu0  ;;  %v6677_v13 = vpop.f32.mrb[62].mxu1  ;;  %v7242_v43 = vsub.s32 1, %v7237_v14 }
 0x942   :  { %7235 = vst [vmem:[#allocation24_spill] sm:$0xff] %v6675_v46  ;;  %7236 = vst [vmem:[#allocation25_spill] sm:$0xff] %v6677_v13  ;;  %v6687_v48 = vpop.f32.mrb[63].mxu0  ;;  %v6689_v61 = vpop.f32.mrb[63].mxu1  ;;  %v7243_v46 = vsub.s32 3, %v7237_v14  ;;  %v3255_v13 = vadd.f32 %v6574_v60, %v6685_v11 }
 0x943   :  { %7240 = vst [vmem:[#allocation4_spill] sm:$0xff] %v6687_v48  ;;  %7241 = vst [vmem:[#allocation26_spill] sm:$0xff] %v6689_v61  ;;  %v6693_v42 = vrot.slane %v2941_v15, %v7242_v43 }
 0x944   :  { %v6697_v45 = vrot.slane %v2941_v15, %v7243_v46 }
 0x945   :  { %v3184_v26 = vadd.f32 %v6576_v63, %v6693_v42 }
 0x946   :  { %v3257_v61 = vadd.f32 %v6578_v0, %v6697_v45 }
 0x947   :  { %v3555_v48 = vpop.f32.mrb[64].mxu0  ;;  %v3596_v47 = vpop.f32.mrb[64].mxu1 }
 0x948   :  { %v3556_v43 = vadd.f32 %v3555_v48, %v3182_v44  ;;  %v3597_v37 = vadd.f32 %v3596_v47, %v3255_v13  ;;  %v3557_v41 = vpop.f32.mrb[65].mxu0  ;;  %v3598_v14 = vpop.f32.mrb[65].mxu1 }
 0x949   :  { %v3558_v15 = vadd.f32 %v3557_v41, %v3184_v26  ;;  %v3599_v46 = vadd.f32 %v3598_v14, %v3257_v61  ;;  %v3559_v40 = vpop.f32.mrb[66].mxu0  ;;  %v3600_v39 = vpop.f32.mrb[66].mxu1  ;;  %v3188_v14 = vadd.f32 %v6587_v50, %v6693_v42 }
 0x94a   :  { %v4800_v59 = vmul.f32 -1.442695, %v3556_v43  ;;  %v3560_v38 = vpop.f32.mrb[67].mxu0  ;;  %v3601_v35 = vpop.f32.mrb[67].mxu1  ;;  %v4802_v63 = vmul.f32 -1.442695, %v3597_v37  ;;  %v3259_v43 = vadd.f32 %v6582_v6, %v6685_v11 }
 0x94b   :  { %v4801_v60 = vmul.f32 -1.442695, %v3558_v15  ;;  %v3261_v15 = vadd.f32 %v6589_v2, %v6697_v45 }
 0x94c   :  { %5203 = vpow2.f32 %v4800_v59 }
 0x94d   :  { %5205 = vpow2.f32 %v4801_v60 }
 0x94e   :  { %5207 = vtanh.f32 %v3599_v46 }
 0x94f   :  { %5209 = vpow2.f32 %v4802_v63 }
 0x956   :  { %v5204_v31 = vpop.eup %5203 }
 0x957   :  { %v3612_v5 = vadd.f32 1.0, %v5204_v31  ;;  %v5206_v0 = vpop.eup %5205 }
 0x958   :  { %v3613_v47 = vadd.f32 1.0, %v5206_v0  ;;  %v5208_v48 = vpop.eup %5207 }
 0x959   :  { %5211 = vrcp.f32 %v3612_v5  ;;  %v5210_v41 = vpop.eup %5209  ;;  %v3186_v5 = vadd.f32 %v6580_v53, %v6681_v9 }
 0x95a   :  { %5213 = vrcp.f32 %v3613_v47  ;;  %v3614_v13 = vadd.f32 1.0, %v5210_v41 }
 0x95c   :  { %5215 = vrcp.f32 %v3614_v13 }
 0x963   :  { %v5212_v61 = vpop.eup %5211 }
 0x964   :  { %v3623_v40 = vmul.f32 %v5212_v61, %v5208_v48  ;;  %v5214_v39 = vpop.eup %5213 }
 0x965   :  { %v3622_v38 = vmul.f32 0.0, %v5214_v39 }
 0x966   :  { %v5216_v37 = vpop.eup %5215 }
 0x967   :  { %v6707_v35 = vadd.f32 %v3623_v40, %v3622_v38 }
 0x969   :  { %5217 = vtanh.f32 %v6707_v35 }
 0x973   :  { %v5218_v31 = vpop.eup %5217 }
 0x974   :  { %v3626_v44 = vmul.f32 %v5218_v31, %v5216_v37 }
 0x976   :  { %v3627_v26 = vpack.c.bf16 %v3626_v44, %v3626_v44 }
 0x978   :  { %3665 = vmatmul.mubr.bf16.vlgmr.msra.gmra.mrb[68].mxu0 %v3627_v26  ;;  %3706 = vmatmul.mubr.bf16.vlgmr.msra.gmra.mrb[68].mxu1 %v3627_v26 }
 0x979   :  { %3744 = vmatpush1.bf16.msra.mxu0 %v6387_v7  ;;  %3785 = vmatpush1.bf16.msra.mxu1 %v6392_v12 }
 0x97a   :  { %3745 = vmatprep.subr.bf16.mxu0 %v6400_v33  ;;  %3786 = vmatprep.subr.bf16.mxu1 %v6405_v34 }
 0x97b   :  { %3775 = vmatprep.mubr.bf16.mxu0 %v7194_v8  ;;  %3816 = vmatprep.mubr.bf16.mxu1 %v7194_v8 }
 0x97d   :  { %3746 = vmatpush1.bf16.msra.mxu0 %v6410_v18  ;;  %3787 = vmatpush1.bf16.msra.mxu1 %v6415_v19 }
 0x97e   :  { %3747 = vmatprep.subr.bf16.mxu0 %v6424_v23  ;;  %3788 = vmatprep.subr.bf16.mxu1 %v6429_v25 }
 0x981   :  { %3748 = vmatpush1.bf16.msra.mxu0 %v6434_v27  ;;  %3789 = vmatpush1.bf16.msra.mxu1 %v6439_v10 }
 0x982   :  { %3749 = vmatprep.subr.bf16.mxu0 %v6448_v28  ;;  %3790 = vmatprep.subr.bf16.mxu1 %v6453_v20 }
 0x985   :  { %3750 = vmatpush1.bf16.msra.mxu0 %v6458_v21  ;;  %3791 = vmatpush1.bf16.msra.mxu1 %v6463_v32 }
 0x986   :  { %3751 = vmatprep.subr.bf16.mxu0 %v6472_v24  ;;  %3792 = vmatprep.subr.bf16.mxu1 %v6477_v30 }
 0x989   :  { %3752 = vmatpush1.bf16.msra.mxu0 %v6482_v62  ;;  %3793 = vmatpush1.bf16.msra.mxu1 %v6487_v22 }
 0x98a   :  { %3753 = vmatprep.subr.bf16.mxu0 %v6494_v29  ;;  %3794 = vmatprep.subr.bf16.mxu1 %v6499_v1 }
 0x98d   :  { %3754 = vmatpush1.bf16.msra.mxu0 %v6506_v36  ;;  %3795 = vmatpush1.bf16.msra.mxu1 %v6511_v3 }
 0x98e   :  { %3755 = vmatprep.subr.bf16.mxu0 %v6520_v49  ;;  %3796 = vmatprep.subr.bf16.mxu1 %v6525_v51 }
 0x991   :  { %3756 = vmatpush1.bf16.msra.mxu0 %v6530_v52  ;;  %3797 = vmatpush1.bf16.msra.mxu1 %v6535_v54 }
 0x992   :  { %3757 = vmatprep.subr.bf16.mxu0 %v6542_v55  ;;  %3798 = vmatprep.subr.bf16.mxu1 %v6547_v56 }
 0x995   :  { %3758 = vmatpush1.bf16.msra.mxu0 %v6554_v57  ;;  %3799 = vmatpush1.bf16.msra.mxu1 %v6559_v58 }
 0x996   :  { %3854 = vmatprep.subr.bf16.mxu0 %v6376_v17  ;;  %3895 = vmatprep.subr.bf16.mxu1 %v6381_v16 }
 0xa4b   :  { %v3666_v46 = vpop.f32.mrb[68].mxu0  ;;  %v3707_v59 = vpop.f32.mrb[68].mxu1 }
 0xa4c   :  { %v3667_v60 = vadd.f32 %v3666_v46, %v3186_v5  ;;  %v3708_v63 = vadd.f32 %v3707_v59, %v3259_v43  ;;  %v3668_v0 = vpop.f32.mrb[69].mxu0  ;;  %v3709_v47 = vpop.f32.mrb[69].mxu1 }
 0xa4d   :  { %v3669_v48 = vadd.f32 %v3668_v0, %v3188_v14  ;;  %v3710_v41 = vadd.f32 %v3709_v47, %v3261_v15  ;;  %v3670_v61 = vpop.f32.mrb[70].mxu0  ;;  %v3711_v40 = vpop.f32.mrb[70].mxu1 }
 0xa4e   :  { %v4803_v53 = vmul.f32 -1.442695, %v3667_v60  ;;  %v3671_v39 = vpop.f32.mrb[71].mxu0  ;;  %v3712_v13 = vpop.f32.mrb[71].mxu1  ;;  %v4805_v50 = vmul.f32 -1.442695, %v3708_v63 }
 0xa4f   :  { %v4804_v6 = vmul.f32 -1.442695, %v3669_v48  ;;  %v7244_v48 = vld [vmem:[#allocation5_spill] sm:$0xff]  ;;  %v7245_v61 = vld [vmem:[#allocation6_spill] sm:$0xff] }
 0xa50   :  { %5219 = vpow2.f32 %v4803_v53  ;;  %v3194_v40 = vadd.f32 %v7245_v61, %v6693_v42  ;;  %v7246_v53 = vld [vmem:[#allocation7_spill] sm:$0xff] }
 0xa51   :  { %5221 = vpow2.f32 %v4804_v6  ;;  %v3267_v39 = vadd.f32 %v7246_v53, %v6697_v45 }
 0xa52   :  { %5223 = vtanh.f32 %v3710_v41  ;;  %v3265_v41 = vadd.f32 %v7244_v48, %v6685_v11 }
 0xa53   :  { %5225 = vpow2.f32 %v4805_v50 }
 0xa5a   :  { %v5220_v38 = vpop.eup %5219 }
 0xa5b   :  { %v3723_v37 = vadd.f32 1.0, %v5220_v38  ;;  %v5222_v2 = vpop.eup %5221 }
 0xa5c   :  { %v3724_v31 = vadd.f32 1.0, %v5222_v2  ;;  %v5224_v44 = vpop.eup %5223 }
 0xa5d   :  { %5227 = vrcp.f32 %v3723_v37  ;;  %v5226_v26 = vpop.eup %5225 }
 0xa5e   :  { %5229 = vrcp.f32 %v3724_v31  ;;  %v3725_v15 = vadd.f32 1.0, %v5226_v26 }
 0xa60   :  { %5231 = vrcp.f32 %v3725_v15 }
 0xa67   :  { %v5228_v5 = vpop.eup %5227 }
 0xa68   :  { %v3734_v43 = vmul.f32 %v5228_v5, %v5224_v44  ;;  %v5230_v14 = vpop.eup %5229 }
 0xa69   :  { %v3733_v46 = vmul.f32 %v5230_v14, %v6707_v35  ;;  %v3192_v35 = vadd.f32 %v6591_v4, %v6681_v9 }
 0xa6a   :  { %v5232_v60 = vpop.eup %5231 }
 0xa6b   :  { %v6753_v59 = vadd.f32 %v3734_v43, %v3733_v46 }
 0xa6d   :  { %5233 = vtanh.f32 %v6753_v59 }
 0xa77   :  { %v5234_v63 = vpop.eup %5233 }
 0xa78   :  { %v3737_v0 = vmul.f32 %v5234_v63, %v5232_v60 }
 0xa7a   :  { %v3738_v47 = vpack.c.bf16 %v3737_v0, %v3737_v0 }
 0xa7c   :  { %3776 = vmatmul.mubr.bf16.vlgmr.msra.gmra.mrb[72].mxu0 %v3738_v47  ;;  %3817 = vmatmul.mubr.bf16.vlgmr.msra.gmra.mrb[72].mxu1 %v3738_v47 }
 0xa7d   :  { %3855 = vmatpush1.bf16.msra.mxu0 %v6387_v7  ;;  %3896 = vmatpush1.bf16.msra.mxu1 %v6392_v12 }
 0xa7e   :  { %3856 = vmatprep.subr.bf16.mxu0 %v6400_v33  ;;  %3897 = vmatprep.subr.bf16.mxu1 %v6405_v34 }
 0xa7f   :  { %3886 = vmatprep.mubr.bf16.mxu0 %v7194_v8  ;;  %3927 = vmatprep.mubr.bf16.mxu1 %v7194_v8 }
 0xa81   :  { %3857 = vmatpush1.bf16.msra.mxu0 %v6410_v18  ;;  %3898 = vmatpush1.bf16.msra.mxu1 %v6415_v19 }
 0xa82   :  { %3858 = vmatprep.subr.bf16.mxu0 %v6424_v23  ;;  %3899 = vmatprep.subr.bf16.mxu1 %v6429_v25 }
 0xa85   :  { %3859 = vmatpush1.bf16.msra.mxu0 %v6434_v27  ;;  %3900 = vmatpush1.bf16.msra.mxu1 %v6439_v10 }
 0xa86   :  { %3860 = vmatprep.subr.bf16.mxu0 %v6448_v28  ;;  %3901 = vmatprep.subr.bf16.mxu1 %v6453_v20 }
 0xa89   :  { %3861 = vmatpush1.bf16.msra.mxu0 %v6458_v21  ;;  %3902 = vmatpush1.bf16.msra.mxu1 %v6463_v32 }
 0xa8a   :  { %3862 = vmatprep.subr.bf16.mxu0 %v6472_v24  ;;  %3903 = vmatprep.subr.bf16.mxu1 %v6477_v30 }
 0xa8d   :  { %3863 = vmatpush1.bf16.msra.mxu0 %v6482_v62  ;;  %3904 = vmatpush1.bf16.msra.mxu1 %v6487_v22 }
 0xa8e   :  { %3864 = vmatprep.subr.bf16.mxu0 %v6494_v29  ;;  %3905 = vmatprep.subr.bf16.mxu1 %v6499_v1 }
 0xa91   :  { %3865 = vmatpush1.bf16.msra.mxu0 %v6506_v36  ;;  %3906 = vmatpush1.bf16.msra.mxu1 %v6511_v3 }
 0xa92   :  { %3866 = vmatprep.subr.bf16.mxu0 %v6520_v49  ;;  %3907 = vmatprep.subr.bf16.mxu1 %v6525_v51 }
 0xa95   :  { %3867 = vmatpush1.bf16.msra.mxu0 %v6530_v52  ;;  %3908 = vmatpush1.bf16.msra.mxu1 %v6535_v54 }
 0xa96   :  { %3868 = vmatprep.subr.bf16.mxu0 %v6542_v55  ;;  %3909 = vmatprep.subr.bf16.mxu1 %v6547_v56 }
 0xa99   :  { %3869 = vmatpush1.bf16.msra.mxu0 %v6554_v57  ;;  %3910 = vmatpush1.bf16.msra.mxu1 %v6559_v58 }
 0xa9a   :  { %3965 = vmatprep.subr.bf16.mxu0 %v6376_v17  ;;  %4006 = vmatprep.subr.bf16.mxu1 %v6381_v16 }
 0xb4f   :  { %v3777_v13 = vpop.f32.mrb[72].mxu0  ;;  %v3818_v6 = vpop.f32.mrb[72].mxu1 }
 0xb50   :  { %v3778_v50 = vadd.f32 %v3777_v13, %v3192_v35  ;;  %v3819_v38 = vadd.f32 %v3818_v6, %v3265_v41  ;;  %v3779_v37 = vpop.f32.mrb[73].mxu0  ;;  %v3820_v2 = vpop.f32.mrb[73].mxu1 }
 0xb51   :  { %v3780_v31 = vadd.f32 %v3779_v37, %v3194_v40  ;;  %v3821_v44 = vadd.f32 %v3820_v2, %v3267_v39  ;;  %v3781_v26 = vpop.f32.mrb[74].mxu0  ;;  %v3822_v5 = vpop.f32.mrb[74].mxu1 }
 0xb52   :  { %v4806_v4 = vmul.f32 -1.442695, %v3778_v50  ;;  %v3782_v43 = vpop.f32.mrb[75].mxu0  ;;  %v3823_v14 = vpop.f32.mrb[75].mxu1  ;;  %v4808_v46 = vmul.f32 -1.442695, %v3819_v38 }
 0xb53   :  { %v4807_v15 = vmul.f32 -1.442695, %v3780_v31  ;;  %v7248_v31 = vld [vmem:[#allocation9_spill] sm:$0xff]  ;;  %v7249_v26 = vld [vmem:[#allocation10_spill] sm:$0xff] }
 0xb54   :  { %5235 = vpow2.f32 %v4806_v4  ;;  %v3198_v5 = vadd.f32 %v7249_v26, %v6693_v42  ;;  %v7250_v4 = vld [vmem:[#allocation11_spill] sm:$0xff] }
 0xb55   :  { %5237 = vpow2.f32 %v4807_v15  ;;  %v3271_v43 = vadd.f32 %v7250_v4, %v6697_v45 }
 0xb56   :  { %5239 = vtanh.f32 %v3821_v44  ;;  %v3269_v44 = vadd.f32 %v7248_v31, %v6685_v11 }
 0xb57   :  { %5241 = vpow2.f32 %v4808_v46 }
 0xb5e   :  { %v5236_v60 = vpop.eup %5235 }
 0xb5f   :  { %v3834_v63 = vadd.f32 1.0, %v5236_v60  ;;  %v5238_v0 = vpop.eup %5237 }
 0xb60   :  { %v3835_v47 = vadd.f32 1.0, %v5238_v0  ;;  %v5240_v35 = vpop.eup %5239 }
 0xb61   :  { %5243 = vrcp.f32 %v3834_v63  ;;  %v5242_v48 = vpop.eup %5241 }
 0xb62   :  { %5245 = vrcp.f32 %v3835_v47  ;;  %v3836_v53 = vadd.f32 1.0, %v5242_v48 }
 0xb64   :  { %5247 = vrcp.f32 %v3836_v53 }
 0xb6b   :  { %v5244_v41 = vpop.eup %5243 }
 0xb6c   :  { %v3845_v61 = vmul.f32 %v5244_v41, %v5240_v35  ;;  %v5246_v40 = vpop.eup %5245 }
 0xb6d   :  { %v3844_v39 = vmul.f32 %v5246_v40, %v6753_v59  ;;  %v7247_v59 = vld [vmem:[#allocation8_spill] sm:$0xff] }
 0xb6e   :  { %v5248_v6 = vpop.eup %5247  ;;  %v3196_v2 = vadd.f32 %v7247_v59, %v6681_v9 }
 0xb6f   :  { %v6799_v13 = vadd.f32 %v3845_v61, %v3844_v39 }
 0xb71   :  { %5249 = vtanh.f32 %v6799_v13 }
 0xb7b   :  { %v5250_v50 = vpop.eup %5249 }
 0xb7c   :  { %v3848_v38 = vmul.f32 %v5250_v50, %v5248_v6 }
 0xb7e   :  { %v3849_v37 = vpack.c.bf16 %v3848_v38, %v3848_v38 }
 0xb80   :  { %3887 = vmatmul.mubr.bf16.vlgmr.msra.gmra.mrb[76].mxu0 %v3849_v37  ;;  %3928 = vmatmul.mubr.bf16.vlgmr.msra.gmra.mrb[76].mxu1 %v3849_v37 }
 0xb81   :  { %3966 = vmatpush1.bf16.msra.mxu0 %v6387_v7  ;;  %4007 = vmatpush1.bf16.msra.mxu1 %v6392_v12 }
 0xb82   :  { %3967 = vmatprep.subr.bf16.mxu0 %v6400_v33  ;;  %4008 = vmatprep.subr.bf16.mxu1 %v6405_v34 }
 0xb83   :  { %3997 = vmatprep.mubr.bf16.mxu0 %v7194_v8  ;;  %4038 = vmatprep.mubr.bf16.mxu1 %v7194_v8 }
 0xb85   :  { %3968 = vmatpush1.bf16.msra.mxu0 %v6410_v18  ;;  %4009 = vmatpush1.bf16.msra.mxu1 %v6415_v19 }
 0xb86   :  { %3969 = vmatprep.subr.bf16.mxu0 %v6424_v23  ;;  %4010 = vmatprep.subr.bf16.mxu1 %v6429_v25 }
 0xb89   :  { %3970 = vmatpush1.bf16.msra.mxu0 %v6434_v27  ;;  %4011 = vmatpush1.bf16.msra.mxu1 %v6439_v10 }
 0xb8a   :  { %3971 = vmatprep.subr.bf16.mxu0 %v6448_v28  ;;  %4012 = vmatprep.subr.bf16.mxu1 %v6453_v20 }
 0xb8d   :  { %3972 = vmatpush1.bf16.msra.mxu0 %v6458_v21  ;;  %4013 = vmatpush1.bf16.msra.mxu1 %v6463_v32 }
 0xb8e   :  { %3973 = vmatprep.subr.bf16.mxu0 %v6472_v24  ;;  %4014 = vmatprep.subr.bf16.mxu1 %v6477_v30 }
 0xb91   :  { %3974 = vmatpush1.bf16.msra.mxu0 %v6482_v62  ;;  %4015 = vmatpush1.bf16.msra.mxu1 %v6487_v22 }
 0xb92   :  { %3975 = vmatprep.subr.bf16.mxu0 %v6494_v29  ;;  %4016 = vmatprep.subr.bf16.mxu1 %v6499_v1 }
 0xb95   :  { %3976 = vmatpush1.bf16.msra.mxu0 %v6506_v36  ;;  %4017 = vmatpush1.bf16.msra.mxu1 %v6511_v3 }
 0xb96   :  { %3977 = vmatprep.subr.bf16.mxu0 %v6520_v49  ;;  %4018 = vmatprep.subr.bf16.mxu1 %v6525_v51 }
 0xb99   :  { %3978 = vmatpush1.bf16.msra.mxu0 %v6530_v52  ;;  %4019 = vmatpush1.bf16.msra.mxu1 %v6535_v54 }
 0xb9a   :  { %3979 = vmatprep.subr.bf16.mxu0 %v6542_v55  ;;  %4020 = vmatprep.subr.bf16.mxu1 %v6547_v56 }
 0xb9d   :  { %3980 = vmatpush1.bf16.msra.mxu0 %v6554_v57  ;;  %4021 = vmatpush1.bf16.msra.mxu1 %v6559_v58 }
 0xb9e   :  { %4076 = vmatprep.subr.bf16.mxu0 %v6376_v17  ;;  %4117 = vmatprep.subr.bf16.mxu1 %v6381_v16 }
 0xc53   :  { %v3888_v14 = vpop.f32.mrb[76].mxu0  ;;  %v3929_v15 = vpop.f32.mrb[76].mxu1 }
 0xc54   :  { %v3889_v46 = vadd.f32 %v3888_v14, %v3196_v2  ;;  %v3930_v60 = vadd.f32 %v3929_v15, %v3269_v44  ;;  %v3890_v63 = vpop.f32.mrb[77].mxu0  ;;  %v3931_v17 = vpop.f32.mrb[77].mxu1 }
 0xc55   :  { %v3891_v0 = vadd.f32 %v3890_v63, %v3198_v5  ;;  %v3932_v16 = vadd.f32 %v3931_v17, %v3271_v43  ;;  %v3892_v47 = vpop.f32.mrb[78].mxu0  ;;  %v3933_v35 = vpop.f32.mrb[78].mxu1 }
 0xc56   :  { %v4809_v48 = vmul.f32 -1.442695, %v3889_v46  ;;  %v3893_v41 = vpop.f32.mrb[79].mxu0  ;;  %v3934_v61 = vpop.f32.mrb[79].mxu1  ;;  %v4811_v53 = vmul.f32 -1.442695, %v3930_v60 }
 0xc57   :  { %v4810_v40 = vmul.f32 -1.442695, %v3891_v0 }
 0xc58   :  { %5251 = vpow2.f32 %v4809_v48 }
 0xc59   :  { %5253 = vpow2.f32 %v4810_v40  ;;  %v6907_v40 = vld [vmem:[%s7160_s5] ss:$16 sps:$4 sm:$0xff]  }
 0xc5a   :  { %5255 = vtanh.f32 %v3932_v16 }
 0xc5b   :  { %5257 = vpow2.f32 %v4811_v53  ;;  %v6913_v53 = vld [vmem:[%s7160_s5 + $0x8] ss:$16 sps:$4 sm:$0xff]  }
 0xc62   :  { %v5252_v39 = vpop.eup %5251 }
 0xc63   :  { %v3945_v6 = vadd.f32 1.0, %v5252_v39  ;;  %v5254_v50 = vpop.eup %5253  ;;  %v6919_v39 = vld [vmem:[%s7160_s5 + $0x24] ss:$16 sps:$4 sm:$0xff]  }
 0xc64   :  { %v3946_v38 = vadd.f32 1.0, %v5254_v50  ;;  %v5256_v37 = vpop.eup %5255  ;;  %v6933_v50 = vld [vmem:[%s7160_s5 + $0x20] ss:$16 sps:$4 sm:$0xff]  }
 0xc65   :  { %5259 = vrcp.f32 %v3945_v6  ;;  %v5258_v59 = vpop.eup %5257  ;;  %v6925_v6 = vld [vmem:[%s7160_s5 + $0x2c] ss:$16 sps:$4 sm:$0xff]  }
 0xc66   :  { %5261 = vrcp.f32 %v3946_v38  ;;  %v3947_v26 = vadd.f32 1.0, %v5258_v59  ;;  %v6939_v38 = vld [vmem:[%s7160_s5 + $0x28] ss:$16 sps:$4 sm:$0xff]   ;;  %v6951_v59 = vld [vmem:[%s7160_s5 + $0x4c] ss:$16 sps:$4 sm:$0xff]  }
 0xc68   :  { %5263 = vrcp.f32 %v3947_v26  ;;  %v6975_v26 = vld [vmem:[%s7160_s5 + $0x6c] ss:$16 sps:$4 sm:$0xff]  }
 0xc6f   :  { %v5260_v2 = vpop.eup %5259 }
 0xc70   :  { %v3956_v31 = vmul.f32 %v5260_v2, %v5256_v37  ;;  %v5262_v44 = vpop.eup %5261  ;;  %v6945_v37 = vld [vmem:[%s7160_s5 + $0x44] ss:$16 sps:$4 sm:$0xff]   ;;  %v6957_v2 = vld [vmem:[%s7160_s5 + $0x40] ss:$16 sps:$4 sm:$0xff]  }
 0xc71   :  { %v3955_v5 = vmul.f32 %v5262_v44, %v6799_v13  ;;  %v6969_v44 = vld [vmem:[%s7160_s5 + $0x64] ss:$16 sps:$4 sm:$0xff]  }
 0xc72   :  { %v5264_v43 = vpop.eup %5263 }
 0xc73   :  { %v6845_v4 = vadd.f32 %v3956_v31, %v3955_v5  ;;  %v6963_v31 = vld [vmem:[%s7160_s5 + $0x48] ss:$16 sps:$4 sm:$0xff]   ;;  %v6981_v5 = vld [vmem:[%s7160_s5 + $0x60] ss:$16 sps:$4 sm:$0xff]  }
 0xc75   :  { %5265 = vtanh.f32 %v6845_v4 }
 0xc7f   :  { %v5266_v14 = vpop.eup %5265 }
 0xc80   :  { %v3959_v15 = vmul.f32 %v5266_v14, %v5264_v43  ;;  %v6993_v43 = vld [vmem:[%s7160_s5 + $0x84] ss:$16 sps:$4 sm:$0xff]   ;;  %v6999_v14 = vld [vmem:[%s7160_s5 + $0x8c] ss:$16 sps:$4 sm:$0xff]  }
 0xc82   :  { %v3960_v46 = vpack.c.bf16 %v3959_v15, %v3959_v15  ;;  %v7005_v15 = vld [vmem:[%s7160_s5 + $0x80] ss:$16 sps:$4 sm:$0xff]  }
 0xc84   :  { %3998 = vmatmul.mubr.bf16.vlgmr.msra.gmra.mrb[80].mxu0 %v3960_v46  ;;  %4039 = vmatmul.mubr.bf16.vlgmr.msra.gmra.mrb[80].mxu1 %v3960_v46  ;;  %v7011_v46 = vld [vmem:[%s7160_s5 + $0x88] ss:$16 sps:$4 sm:$0xff]  }
 0xc85   :  { %4077 = vmatpush1.bf16.msra.mxu0 %v6387_v7  ;;  %4118 = vmatpush1.bf16.msra.mxu1 %v6392_v12  ;;  %v6883_v7 = vld [vmem:[%s7160_s5 + $0x4] ss:$16 sps:$4 sm:$0xff]   ;;  %v6889_v12 = vld [vmem:[%s7160_s5 + $0xc] ss:$16 sps:$4 sm:$0xff]  }
 0xc86   :  { %4078 = vmatprep.subr.bf16.mxu0 %v6400_v33  ;;  %4119 = vmatprep.subr.bf16.mxu1 %v6405_v34  ;;  %v7251_v33 = vld [vmem:[#allocation12_spill] sm:$0xff] }
 0xc87   :  { %4108 = vmatprep.mubr.bf16.mxu0 %v7194_v8  ;;  %4149 = vmatprep.mubr.bf16.mxu1 %v7194_v8  ;;  %v3202_v34 = vadd.f32 %v7251_v33, %v6681_v9  ;;  %v7017_v33 = vld [vmem:[%s7160_s5 + $0xa4] ss:$16 sps:$4 sm:$0xff]  }
 0xc89   :  { %4079 = vmatpush1.bf16.msra.mxu0 %v6410_v18  ;;  %4120 = vmatpush1.bf16.msra.mxu1 %v6415_v19  ;;  %v7252_v18 = vld [vmem:[#allocation13_spill] sm:$0xff] }
 0xc8a   :  { %4080 = vmatprep.subr.bf16.mxu0 %v6424_v23  ;;  %4121 = vmatprep.subr.bf16.mxu1 %v6429_v25  ;;  %v3275_v19 = vadd.f32 %v7252_v18, %v6685_v11  ;;  %v7253_v23 = vld [vmem:[#allocation14_spill] sm:$0xff] }
 0xc8b   :  { %v3204_v25 = vadd.f32 %v7253_v23, %v6693_v42  ;;  %v7029_v18 = vld [vmem:[%s7160_s5 + $0xa0] ss:$16 sps:$4 sm:$0xff]   ;;  %v7041_v23 = vld [vmem:[%s7160_s5 + $0xc4] ss:$16 sps:$4 sm:$0xff]  }
 0xc8d   :  { %4081 = vmatpush1.bf16.msra.mxu0 %v6434_v27  ;;  %4122 = vmatpush1.bf16.msra.mxu1 %v6439_v10  ;;  %v7254_v27 = vld [vmem:[#allocation15_spill] sm:$0xff] }
 0xc8e   :  { %4082 = vmatprep.subr.bf16.mxu0 %v6448_v28  ;;  %4123 = vmatprep.subr.bf16.mxu1 %v6453_v20  ;;  %v3277_v10 = vadd.f32 %v7254_v27, %v6697_v45  ;;  %v7053_v27 = vld [vmem:[%s7160_s5 + $0xc0] ss:$16 sps:$4 sm:$0xff]  }
 0xc91   :  { %4083 = vmatpush1.bf16.msra.mxu0 %v6458_v21  ;;  %4124 = vmatpush1.bf16.msra.mxu1 %v6463_v32 }
 0xc92   :  { %4084 = vmatprep.subr.bf16.mxu0 %v6472_v24  ;;  %4125 = vmatprep.subr.bf16.mxu1 %v6477_v30 }
 0xc95   :  { %4085 = vmatpush1.bf16.msra.mxu0 %v6482_v62  ;;  %4126 = vmatpush1.bf16.msra.mxu1 %v6487_v22 }
 0xc96   :  { %4086 = vmatprep.subr.bf16.mxu0 %v6494_v29  ;;  %4127 = vmatprep.subr.bf16.mxu1 %v6499_v1 }
 0xc99   :  { %4087 = vmatpush1.bf16.msra.mxu0 %v6506_v36  ;;  %4128 = vmatpush1.bf16.msra.mxu1 %v6511_v3 }
 0xc9a   :  { %4088 = vmatprep.subr.bf16.mxu0 %v6520_v49  ;;  %4129 = vmatprep.subr.bf16.mxu1 %v6525_v51 }
 0xc9d   :  { %4089 = vmatpush1.bf16.msra.mxu0 %v6530_v52  ;;  %4130 = vmatpush1.bf16.msra.mxu1 %v6535_v54 }
 0xc9e   :  { %4090 = vmatprep.subr.bf16.mxu0 %v6542_v55  ;;  %4131 = vmatprep.subr.bf16.mxu1 %v6547_v56 }
 0xca1   :  { %4091 = vmatpush1.bf16.msra.mxu0 %v6554_v57  ;;  %4132 = vmatpush1.bf16.msra.mxu1 %v6559_v58 }
 0xca2   :  { %4187 = vmatprep.subr.bf16.mxu0 %v6883_v7  ;;  %4228 = vmatprep.subr.bf16.mxu1 %v6889_v12 }
 0xd57   :  { %v3999_v28 = vpop.f32.mrb[80].mxu0  ;;  %v4040_v20 = vpop.f32.mrb[80].mxu1 }
 0xd58   :  { %v4000_v21 = vadd.f32 %v3999_v28, %v3202_v34  ;;  %v4041_v32 = vadd.f32 %v4040_v20, %v3275_v19  ;;  %v4001_v24 = vpop.f32.mrb[81].mxu0  ;;  %v4042_v30 = vpop.f32.mrb[81].mxu1  ;;  %v7023_v34 = vld [vmem:[%s7160_s5 + $0xac] ss:$16 sps:$4 sm:$0xff]   ;;  %v7035_v19 = vld [vmem:[%s7160_s5 + $0xa8] ss:$16 sps:$4 sm:$0xff]  }
 0xd59   :  { %v4002_v62 = vadd.f32 %v4001_v24, %v3204_v25  ;;  %v4043_v22 = vadd.f32 %v4042_v30, %v3277_v10  ;;  %v4003_v29 = vpop.f32.mrb[82].mxu0  ;;  %v4044_v1 = vpop.f32.mrb[82].mxu1  ;;  %v7047_v25 = vld [vmem:[%s7160_s5 + $0xcc] ss:$16 sps:$4 sm:$0xff]   ;;  %v7059_v10 = vld [vmem:[%s7160_s5 + $0xc8] ss:$16 sps:$4 sm:$0xff]  }
 0xd5a   :  { %v4812_v36 = vmul.f32 -1.442695, %v4000_v21  ;;  %v4004_v3 = vpop.f32.mrb[83].mxu0  ;;  %v4045_v49 = vpop.f32.mrb[83].mxu1  ;;  %v4814_v52 = vmul.f32 -1.442695, %v4041_v32 }
 0xd5b   :  { %v4813_v51 = vmul.f32 -1.442695, %v4002_v62  ;;  %v7065_v28 = vld [vmem:[%s7160_s5 + $0xe4] ss:$16 sps:$4 sm:$0xff]   ;;  %v7071_v20 = vld [vmem:[%s7160_s5 + $0xec] ss:$16 sps:$4 sm:$0xff]  }
 0xd5c   :  { %5267 = vpow2.f32 %v4812_v36  ;;  %v7077_v21 = vld [vmem:[%s7160_s5 + $0xe0] ss:$16 sps:$4 sm:$0xff]   ;;  %v7083_v32 = vld [vmem:[%s7160_s5 + $0xe8] ss:$16 sps:$4 sm:$0xff]  }
 0xd5d   :  { %5269 = vpow2.f32 %v4813_v51  ;;  %v7255_v24 = vld [vmem:[#allocation16_spill] sm:$0xff]  ;;  %v7256_v62 = vld [vmem:[#allocation17_spill] sm:$0xff]  ;;  %v7257_v29 = vld [vmem:[#allocation18_spill] sm:$0xff] }
 0xd5e   :  { %5271 = vtanh.f32 %v4043_v22  ;;  %v3206_v30 = vadd.f32 %v7255_v24, %v6681_v9  ;;  %v3279_v22 = vadd.f32 %v7256_v62, %v6685_v11  ;;  %v3208_v1 = vadd.f32 %v7257_v29, %v6693_v42  ;;  %v7258_v36 = vld [vmem:[#allocation19_spill] sm:$0xff] }
 0xd5f   :  { %5273 = vpow2.f32 %v4814_v52  ;;  %v3281_v3 = vadd.f32 %v7258_v36, %v6697_v45 }
 0xd66   :  { %v5268_v54 = vpop.eup %5267 }
 0xd67   :  { %v4056_v55 = vadd.f32 1.0, %v5268_v54  ;;  %v5270_v56 = vpop.eup %5269 }
 0xd68   :  { %v4057_v57 = vadd.f32 1.0, %v5270_v56  ;;  %v5272_v58 = vpop.eup %5271 }
 0xd69   :  { %5275 = vrcp.f32 %v4056_v55  ;;  %v5274_v13 = vpop.eup %5273 }
 0xd6a   :  { %5277 = vrcp.f32 %v4057_v57  ;;  %v4058_v0 = vadd.f32 1.0, %v5274_v13 }
 0xd6c   :  { %5279 = vrcp.f32 %v4058_v0 }
 0xd73   :  { %v5276_v60 = vpop.eup %5275 }
 0xd74   :  { %v4067_v63 = vmul.f32 %v5276_v60, %v5272_v58  ;;  %v5278_v17 = vpop.eup %5277 }
 0xd75   :  { %v4066_v16 = vmul.f32 %v5278_v17, %v6845_v4  ;;  %v6987_v4 = vld [vmem:[%s7160_s5 + $0x68] ss:$16 sps:$4 sm:$0xff]  }
 0xd76   :  { %v5280_v35 = vpop.eup %5279 }
 0xd77   :  { %v6901_v47 = vadd.f32 %v4067_v63, %v4066_v16 }
 0xd79   :  { %5281 = vtanh.f32 %v6901_v47 }
 0xd83   :  { %v5282_v48 = vpop.eup %5281 }
 0xd84   :  { %v4070_v41 = vmul.f32 %v5282_v48, %v5280_v35 }
 0xd86   :  { %v4071_v61 = vpack.c.bf16 %v4070_v41, %v4070_v41 }
 0xd88   :  { %4109 = vmatmul.mubr.bf16.vlgmr.msra.gmra.mrb[84].mxu0 %v4071_v61  ;;  %4150 = vmatmul.mubr.bf16.vlgmr.msra.gmra.mrb[84].mxu1 %v4071_v61 }
 0xd89   :  { %4188 = vmatpush1.bf16.msra.mxu0 %v6907_v40  ;;  %4229 = vmatpush1.bf16.msra.mxu1 %v6913_v53 }
 0xd8a   :  { %4189 = vmatprep.subr.bf16.mxu0 %v6919_v39  ;;  %4230 = vmatprep.subr.bf16.mxu1 %v6925_v6 }
 0xd8b   :  { %4219 = vmatprep.mubr.bf16.mxu0 %v7194_v8  ;;  %4260 = vmatprep.mubr.bf16.mxu1 %v7194_v8 }
 0xd8d   :  { %4190 = vmatpush1.bf16.msra.mxu0 %v6933_v50  ;;  %4231 = vmatpush1.bf16.msra.mxu1 %v6939_v38 }
 0xd8e   :  { %4191 = vmatprep.subr.bf16.mxu0 %v6945_v37  ;;  %4232 = vmatprep.subr.bf16.mxu1 %v6951_v59 }
 0xd91   :  { %4192 = vmatpush1.bf16.msra.mxu0 %v6957_v2  ;;  %4233 = vmatpush1.bf16.msra.mxu1 %v6963_v31 }
 0xd92   :  { %4193 = vmatprep.subr.bf16.mxu0 %v6969_v44  ;;  %4234 = vmatprep.subr.bf16.mxu1 %v6975_v26 }
 0xd95   :  { %4194 = vmatpush1.bf16.msra.mxu0 %v6981_v5  ;;  %4235 = vmatpush1.bf16.msra.mxu1 %v6987_v4 }
 0xd96   :  { %4195 = vmatprep.subr.bf16.mxu0 %v6993_v43  ;;  %4236 = vmatprep.subr.bf16.mxu1 %v6999_v14 }
 0xd99   :  { %4196 = vmatpush1.bf16.msra.mxu0 %v7005_v15  ;;  %4237 = vmatpush1.bf16.msra.mxu1 %v7011_v46 }
 0xd9a   :  { %4197 = vmatprep.subr.bf16.mxu0 %v7017_v33  ;;  %4238 = vmatprep.subr.bf16.mxu1 %v7023_v34 }
 0xd9d   :  { %4198 = vmatpush1.bf16.msra.mxu0 %v7029_v18  ;;  %4239 = vmatpush1.bf16.msra.mxu1 %v7035_v19 }
 0xd9e   :  { %4199 = vmatprep.subr.bf16.mxu0 %v7041_v23  ;;  %4240 = vmatprep.subr.bf16.mxu1 %v7047_v25 }
 0xda1   :  { %4200 = vmatpush1.bf16.msra.mxu0 %v7053_v27  ;;  %4241 = vmatpush1.bf16.msra.mxu1 %v7059_v10 }
 0xda2   :  { %4201 = vmatprep.subr.bf16.mxu0 %v7065_v28  ;;  %4242 = vmatprep.subr.bf16.mxu1 %v7071_v20 }
 0xda5   :  { %4202 = vmatpush1.bf16.msra.mxu0 %v7077_v21  ;;  %4243 = vmatpush1.bf16.msra.mxu1 %v7083_v32 }
 0xda6   :  { %4298 = vmatprep.subr.bf16.mxu0 %v6883_v7  ;;  %4339 = vmatprep.subr.bf16.mxu1 %v6889_v12 }
 0xe5b   :  { %v4110_v49 = vpop.f32.mrb[84].mxu0  ;;  %v4151_v51 = vpop.f32.mrb[84].mxu1 }
 0xe5c   :  { %v4111_v52 = vadd.f32 %v4110_v49, %v3206_v30  ;;  %v4152_v54 = vadd.f32 %v4151_v51, %v3279_v22  ;;  %v4112_v55 = vpop.f32.mrb[85].mxu0  ;;  %v4153_v7 = vpop.f32.mrb[85].mxu1 }
 0xe5d   :  { %v4113_v56 = vadd.f32 %v4112_v55, %v3208_v1  ;;  %v4154_v12 = vadd.f32 %v4153_v7, %v3281_v3  ;;  %v4114_v57 = vpop.f32.mrb[86].mxu0  ;;  %v4155_v58 = vpop.f32.mrb[86].mxu1 }
 0xe5e   :  { %v4815_v13 = vmul.f32 -1.442695, %v4111_v52  ;;  %v4115_v60 = vpop.f32.mrb[87].mxu0  ;;  %v4156_v63 = vpop.f32.mrb[87].mxu1  ;;  %v4817_v0 = vmul.f32 -1.442695, %v4152_v54 }
 0xe5f   :  { %v4816_v17 = vmul.f32 -1.442695, %v4113_v56  ;;  %v7264_v63 = vld [vmem:[#allocation25_spill] sm:$0xff] }
 0xe60   :  { %5283 = vpow2.f32 %v4815_v13  ;;  %v7263_v13 = vld [vmem:[#allocation24_spill] sm:$0xff] }
 0xe61   :  { %5285 = vpow2.f32 %v4816_v17  ;;  %v3216_v60 = vadd.f32 %v7263_v13, %v6681_v9  ;;  %v3289_v17 = vadd.f32 %v7264_v63, %v6685_v11 }
 0xe62   :  { %5287 = vtanh.f32 %v4154_v12 }
 0xe63   :  { %5289 = vpow2.f32 %v4817_v0  ;;  %v7265_v0 = vld [vmem:[#allocation4_spill] sm:$0xff] }
 0xe6a   :  { %v5284_v16 = vpop.eup %5283 }
 0xe6b   :  { %v4167_v35 = vadd.f32 1.0, %v5284_v16  ;;  %v5286_v48 = vpop.eup %5285  ;;  %v3218_v16 = vadd.f32 %v7265_v0, %v6693_v42 }
 0xe6c   :  { %v4168_v41 = vadd.f32 1.0, %v5286_v48  ;;  %v5288_v61 = vpop.eup %5287 }
 0xe6d   :  { %5291 = vrcp.f32 %v4167_v35  ;;  %v5290_v24 = vpop.eup %5289  ;;  %v7266_v35 = vld [vmem:[#allocation26_spill] sm:$0xff] }
 0xe6e   :  { %5293 = vrcp.f32 %v4168_v41  ;;  %v4169_v29 = vadd.f32 1.0, %v5290_v24  ;;  %v3291_v48 = vadd.f32 %v7266_v35, %v6697_v45 }
 0xe70   :  { %5295 = vrcp.f32 %v4169_v29 }
 0xe77   :  { %v5292_v30 = vpop.eup %5291 }
 0xe78   :  { %v4178_v62 = vmul.f32 %v5292_v30, %v5288_v61  ;;  %v5294_v22 = vpop.eup %5293 }
 0xe79   :  { %v4177_v1 = vmul.f32 %v5294_v22, %v6901_v47 }
 0xe7a   :  { %v5296_v3 = vpop.eup %5295 }
 0xe7b   :  { %v7097_v36 = vadd.f32 %v4178_v62, %v4177_v1 }
 0xe7d   :  { %5297 = vtanh.f32 %v7097_v36 }
 0xe87   :  { %v5298_v49 = vpop.eup %5297 }
 0xe88   :  { %v4181_v51 = vmul.f32 %v5298_v49, %v5296_v3 }
 0xe8a   :  { %v4182_v52 = vpack.c.bf16 %v4181_v51, %v4181_v51 }
 0xe8c   :  { %4220 = vmatmul.mubr.bf16.vlgmr.msra.gmra.mrb[88].mxu0 %v4182_v52  ;;  %4261 = vmatmul.mubr.bf16.vlgmr.msra.gmra.mrb[88].mxu1 %v4182_v52 }
 0xe8d   :  { %4299 = vmatpush1.bf16.msra.mxu0 %v6907_v40  ;;  %4340 = vmatpush1.bf16.msra.mxu1 %v6913_v53  ;;  %v7260_v40 = vld [vmem:[#allocation21_spill] sm:$0xff] }
 0xe8e   :  { %4300 = vmatprep.subr.bf16.mxu0 %v6919_v39  ;;  %4341 = vmatprep.subr.bf16.mxu1 %v6925_v6  ;;  %v3285_v53 = vadd.f32 %v7260_v40, %v6685_v11  ;;  %v7261_v39 = vld [vmem:[#allocation22_spill] sm:$0xff] }
 0xe8f   :  { %4330 = vmatprep.mubr.bf16.mxu0 %v7194_v8  ;;  %4371 = vmatprep.mubr.bf16.mxu1 %v7194_v8  ;;  %v7259_v8 = vld [vmem:[#allocation20_spill] sm:$0xff]  ;;  %v3214_v6 = vadd.f32 %v7261_v39, %v6693_v42 }
 0xe90   :  { %v3212_v47 = vadd.f32 %v7259_v8, %v6681_v9 }
 0xe91   :  { %4301 = vmatpush1.bf16.msra.mxu0 %v6933_v50  ;;  %4342 = vmatpush1.bf16.msra.mxu1 %v6939_v38  ;;  %v7262_v50 = vld [vmem:[#allocation23_spill] sm:$0xff] }
 0xe92   :  { %4302 = vmatprep.subr.bf16.mxu0 %v6945_v37  ;;  %4343 = vmatprep.subr.bf16.mxu1 %v6951_v59  ;;  %v3287_v38 = vadd.f32 %v7262_v50, %v6697_v45 }
 0xe95   :  { %4303 = vmatpush1.bf16.msra.mxu0 %v6957_v2  ;;  %4344 = vmatpush1.bf16.msra.mxu1 %v6963_v31 }
 0xe96   :  { %4304 = vmatprep.subr.bf16.mxu0 %v6969_v44  ;;  %4345 = vmatprep.subr.bf16.mxu1 %v6975_v26 }
 0xe99   :  { %4305 = vmatpush1.bf16.msra.mxu0 %v6981_v5  ;;  %4346 = vmatpush1.bf16.msra.mxu1 %v6987_v4 }
 0xe9a   :  { %4306 = vmatprep.subr.bf16.mxu0 %v6993_v43  ;;  %4347 = vmatprep.subr.bf16.mxu1 %v6999_v14 }
 0xe9d   :  { %4307 = vmatpush1.bf16.msra.mxu0 %v7005_v15  ;;  %4348 = vmatpush1.bf16.msra.mxu1 %v7011_v46 }
 0xe9e   :  { %4308 = vmatprep.subr.bf16.mxu0 %v7017_v33  ;;  %4349 = vmatprep.subr.bf16.mxu1 %v7023_v34 }
 0xea1   :  { %4309 = vmatpush1.bf16.msra.mxu0 %v7029_v18  ;;  %4350 = vmatpush1.bf16.msra.mxu1 %v7035_v19 }
 0xea2   :  { %4310 = vmatprep.subr.bf16.mxu0 %v7041_v23  ;;  %4351 = vmatprep.subr.bf16.mxu1 %v7047_v25 }
 0xea5   :  { %4311 = vmatpush1.bf16.msra.mxu0 %v7053_v27  ;;  %4352 = vmatpush1.bf16.msra.mxu1 %v7059_v10 }
 0xea6   :  { %4312 = vmatprep.subr.bf16.mxu0 %v7065_v28  ;;  %4353 = vmatprep.subr.bf16.mxu1 %v7071_v20 }
 0xea9   :  { %4313 = vmatpush1.bf16.msra.mxu0 %v7077_v21  ;;  %4354 = vmatpush1.bf16.msra.mxu1 %v7083_v32 }
 0xf5f   :  { %v4221_v37 = vpop.f32.mrb[88].mxu0  ;;  %v4262_v59 = vpop.f32.mrb[88].mxu1 }
 0xf60   :  { %v4222_v2 = vadd.f32 %v4221_v37, %v3212_v47  ;;  %v4263_v31 = vadd.f32 %v4262_v59, %v3285_v53  ;;  %v4223_v44 = vpop.f32.mrb[89].mxu0  ;;  %v4264_v26 = vpop.f32.mrb[89].mxu1 }
 0xf61   :  { %v4224_v5 = vadd.f32 %v4223_v44, %v3214_v6  ;;  %v4265_v4 = vadd.f32 %v4264_v26, %v3287_v38  ;;  %v4225_v43 = vpop.f32.mrb[90].mxu0  ;;  %v4266_v14 = vpop.f32.mrb[90].mxu1 }
 0xf62   :  { %v4818_v15 = vmul.f32 -1.442695, %v4222_v2  ;;  %v4226_v46 = vpop.f32.mrb[91].mxu0  ;;  %v4267_v33 = vpop.f32.mrb[91].mxu1  ;;  %v4820_v18 = vmul.f32 -1.442695, %v4263_v31 }
 0xf63   :  { %v4819_v34 = vmul.f32 -1.442695, %v4224_v5 }
 0xf64   :  { %5299 = vpow2.f32 %v4818_v15 }
 0xf65   :  { %5301 = vpow2.f32 %v4819_v34 }
 0xf66   :  { %5303 = vtanh.f32 %v4265_v4 }
 0xf67   :  { %5305 = vpow2.f32 %v4820_v18 }
 0xf6e   :  { %v5300_v19 = vpop.eup %5299 }
 0xf6f   :  { %v4278_v23 = vadd.f32 1.0, %v5300_v19  ;;  %v5302_v25 = vpop.eup %5301 }
 0xf70   :  { %v4279_v27 = vadd.f32 1.0, %v5302_v25  ;;  %v5304_v10 = vpop.eup %5303 }
 0xf71   :  { %5307 = vrcp.f32 %v4278_v23  ;;  %v5306_v28 = vpop.eup %5305 }
 0xf72   :  { %5309 = vrcp.f32 %v4279_v27  ;;  %v4280_v54 = vadd.f32 1.0, %v5306_v28 }
 0xf74   :  { %5311 = vrcp.f32 %v4280_v54 }
 0xf7b   :  { %v5308_v20 = vpop.eup %5307 }
 0xf7c   :  { %v4289_v21 = vmul.f32 %v5308_v20, %v5304_v10  ;;  %v5310_v32 = vpop.eup %5309 }
 0xf7d   :  { %v4288_v55 = vmul.f32 %v5310_v32, %v7097_v36 }
 0xf7e   :  { %v5312_v56 = vpop.eup %5311 }
 0xf7f   :  { %v4290_v7 = vadd.f32 %v4289_v21, %v4288_v55 }
 0xf81   :  { %5313 = vtanh.f32 %v4290_v7 }
 0xf8b   :  { %v5314_v12 = vpop.eup %5313 }
 0xf8c   :  { %v4292_v57 = vmul.f32 %v5314_v12, %v5312_v56 }
 0xf8e   :  { %v4293_v58 = vpack.c.bf16 %v4292_v57, %v4292_v57 }
 0xf90   :  { %4331 = vmatmul.mubr.bf16.vlgmr.msra.gmra.mrb[92].mxu0 %v4293_v58  ;;  %4372 = vmatmul.mubr.bf16.vlgmr.msra.gmra.mrb[92].mxu1 %v4293_v58 }
0x1063   :  { %v4332_v41 = vpop.f32.mrb[92].mxu0  ;;  %v4373_v61 = vpop.f32.mrb[92].mxu1 }
0x1064   :  { %v4333_v24 = vadd.f32 %v4332_v41, %v3216_v60  ;;  %v4374_v30 = vadd.f32 %v4373_v61, %v3289_v17  ;;  %v4334_v62 = vpop.f32.mrb[93].mxu0  ;;  %v4375_v22 = vpop.f32.mrb[93].mxu1 }
0x1065   :  { %v4335_v29 = vadd.f32 %v4334_v62, %v3218_v16  ;;  %v4376_v1 = vadd.f32 %v4375_v22, %v3291_v48  ;;  %v4336_v36 = vpop.f32.mrb[94].mxu0  ;;  %v4377_v3 = vpop.f32.mrb[94].mxu1 }
0x1066   :  { %v4821_v9 = vmul.f32 -1.442695, %v4333_v24  ;;  %v4337_v49 = vpop.f32.mrb[95].mxu0  ;;  %v4378_v51 = vpop.f32.mrb[95].mxu1  ;;  %v4823_v42 = vmul.f32 -1.442695, %v4374_v30 }
0x1067   :  { %v4822_v11 = vmul.f32 -1.442695, %v4335_v29 }
0x1068   :  { %5315 = vpow2.f32 %v4821_v9 }
0x1069   :  { %5317 = vpow2.f32 %v4822_v11 }
0x106a   :  { %5319 = vtanh.f32 %v4376_v1 }
0x106b   :  { %5321 = vpow2.f32 %v4823_v42 }
0x1072   :  { %v5316_v52 = vpop.eup %5315 }
0x1073   :  { %v4389_v8 = vadd.f32 1.0, %v5316_v52  ;;  %v5318_v45 = vpop.eup %5317 }
0x1074   :  { %v4390_v47 = vadd.f32 1.0, %v5318_v45  ;;  %v5320_v40 = vpop.eup %5319 }
0x1075   :  { %5323 = vrcp.f32 %v4389_v8  ;;  %v5322_v53 = vpop.eup %5321 }
0x1076   :  { %5325 = vrcp.f32 %v4390_v47  ;;  %v4391_v38 = vadd.f32 1.0, %v5322_v53 }
0x1078   :  { %5327 = vrcp.f32 %v4391_v38 }
0x107f   :  { %v5324_v39 = vpop.eup %5323 }
0x1080   :  { %v4400_v6 = vmul.f32 %v5324_v39, %v5320_v40  ;;  %v5326_v50 = vpop.eup %5325 }
0x1081   :  { %v4399_v37 = vmul.f32 %v5326_v50, %v4290_v7 }
0x1082   :  { %v5328_v2 = vpop.eup %5327 }
0x1083   :  { %v4401_v59 = vadd.f32 %v4400_v6, %v4399_v37 }
0x1085   :  { %5329 = vtanh.f32 %v4401_v59  ;;  %4825 = vst [vmem:[%s7161_s8 + $0x8] sm:$0xff] %v4401_v59 }
0x108f   :  { %v5330_v31 = vpop.eup %5329 }
0x1090   :  { %v4403_v44 = vmul.f32 %v5330_v31, %v5328_v2 }
0x1092   :  { %4824 = vst [vmem:[%s7162_s7 + $0x8] sm:$0xff] %v4403_v44 }

</bundles_post_ra>
